<compile_context>
chip_gen: v7x
topology: tpu7x:2x2x1
jax: 0.10.0
libtpu: 0.0.40
codegen_flags: <defaults>
</compile_context>

<pallas_src>
import functools
import math

import jax
import jax.numpy as jnp
from jax.experimental import pallas as pl
from jax.experimental.pallas import tpu as pltpu

_VMEM_LIMIT = 64 * 1024 * 1024  # explicit scoped-VMEM ceiling (safe on v5e/v6e/v7x)


# ----------------------------- helpers -----------------------------

def _round_up(v, m):
    return ((v + m - 1) // m) * m


def _choose_tile(dim, max_tile):
    """Return (tile, padded_dim). Full-dim block if it fits, else max_tile with padding."""
    if dim <= max_tile:
        return dim, dim
    return max_tile, _round_up(dim, max_tile)


def _seq_tile(s, max_tile):
    """Sequence tile for attention; full extent when small or not evenly divisible."""
    if s <= max_tile or s % max_tile != 0:
        # TODO(synk): pad + mask ragged sequence lengths instead of a full-extent tile.
        return s
    return max_tile


# ----------------------------- matmul kernels -----------------------------

def _matmul_kernel(x_ref, w_ref, b_ref, o_ref, acc_ref, *, activation, n_k):
    kk = pl.program_id(2)

    @pl.when(kk == 0)
    def _():
        acc_ref[...] = jnp.zeros_like(acc_ref)

    acc_ref[...] += jnp.dot(x_ref[...], w_ref[...], preferred_element_type=jnp.float32)

    @pl.when(kk == n_k - 1)
    def _():
        y = acc_ref[...] + b_ref[...]
        if activation == "relu":
            y = jnp.maximum(y, 0.0)
        o_ref[...] = y.astype(o_ref.dtype)


def linear(x, w, b, activation=None, out_dtype=jnp.bfloat16):
    """y = act(x @ w + b); M/N/K tiled, bf16 MXU operands, f32 accumulation."""
    orig_shape = x.shape
    K = orig_shape[-1]
    N = w.shape[1]
    x2 = x.reshape(-1, K)
    M = x2.shape[0]

    tm, Mp = _choose_tile(M, 512)
    tn, Np = _choose_tile(N, 512)
    tk, Kp = _choose_tile(K, 512)

    xb = x2 if x2.dtype == jnp.bfloat16 else x2.astype(jnp.bfloat16)
    wb = w if w.dtype == jnp.bfloat16 else w.astype(jnp.bfloat16)
    bb = b.astype(jnp.float32).reshape(1, N)
    if Mp != M or Kp != K:
        xb = jnp.pad(xb, ((0, Mp - M), (0, Kp - K)))
    if Kp != K or Np != N:
        wb = jnp.pad(wb, ((0, Kp - K), (0, Np - N)))
    if Np != N:
        bb = jnp.pad(bb, ((0, 0), (0, Np - N)))

    grid = (Mp // tm, Np // tn, Kp // tk)
    out = pl.pallas_call(
        functools.partial(_matmul_kernel, activation=activation, n_k=grid[2]),
        out_shape=jax.ShapeDtypeStruct((Mp, Np), out_dtype),
        grid=grid,
        in_specs=[
            pl.BlockSpec((tm, tk), lambda i, j, k: (i, k)),
            pl.BlockSpec((tk, tn), lambda i, j, k: (k, j)),
            pl.BlockSpec((1, tn), lambda i, j, k: (0, j)),
        ],
        out_specs=pl.BlockSpec((tm, tn), lambda i, j, k: (i, j)),
        scratch_shapes=[pltpu.VMEM((tm, tn), jnp.float32)],
        compiler_params=pltpu.CompilerParams(
            dimension_semantics=("parallel", "parallel", "arbitrary"),
            vmem_limit_bytes=_VMEM_LIMIT),
    )(xb, wb, bb)
    if Mp != M or Np != N:
        out = out[:M, :N]
    return out.reshape(orig_shape[:-1] + (N,))


def _matmul_res_ln_kernel(x_ref, w_ref, b_ref, r_ref, g_ref, bt_ref, o_ref, acc_ref,
                          *, n_k, eps):
    kk = pl.program_id(1)

    @pl.when(kk == 0)
    def _():
        acc_ref[...] = jnp.zeros_like(acc_ref)

    acc_ref[...] += jnp.dot(x_ref[...], w_ref[...], preferred_element_type=jnp.float32)

    @pl.when(kk == n_k - 1)
    def _():
        y = acc_ref[...] + b_ref[...] + r_ref[...].astype(jnp.float32)
        mu = jnp.mean(y, axis=-1, keepdims=True)
        var = jnp.mean(jnp.square(y - mu), axis=-1, keepdims=True)
        o_ref[...] = ((y - mu) * jax.lax.rsqrt(var + eps) * g_ref[...]
                      + bt_ref[...]).astype(o_ref.dtype)


def linear_add_layernorm(x, w, b, residual, gamma, beta, eps=1e-5, out_dtype=jnp.bfloat16):
    """LayerNorm(residual + (x @ w + b)) fused into the matmul epilogue.

    Feature dim N kept whole per block (LN needs the full row); M/K tiled. tm is kept at
    256 because the full-N residual/weight/accumulator blocks scale with E (v7x VMEM budget).
    """
    orig_shape = residual.shape
    K = x.shape[-1]
    N = w.shape[1]
    x2 = x.reshape(-1, K)
    r2 = residual.reshape(-1, N)
    M = x2.shape[0]

    tm, Mp = _choose_tile(M, 256)
    tk, Kp = _choose_tile(K, 512)

    xb = x2 if x2.dtype == jnp.bfloat16 else x2.astype(jnp.bfloat16)
    wb = w if w.dtype == jnp.bfloat16 else w.astype(jnp.bfloat16)
    if Mp != M or Kp != K:
        xb = jnp.pad(xb, ((0, Mp - M), (0, Kp - K)))
    if Kp != K:
        wb = jnp.pad(wb, ((0, Kp - K), (0, 0)))
    rp = jnp.pad(r2, ((0, Mp - M), (0, 0))) if Mp != M else r2

    grid = (Mp // tm, Kp // tk)
    out = pl.pallas_call(
        functools.partial(_matmul_res_ln_kernel, n_k=grid[1], eps=eps),
        out_shape=jax.ShapeDtypeStruct((Mp, N), out_dtype),
        grid=grid,
        in_specs=[
            pl.BlockSpec((tm, tk), lambda i, k: (i, k)),
            pl.BlockSpec((tk, N), lambda i, k: (k, 0)),
            pl.BlockSpec((1, N), lambda i, k: (0, 0)),
            pl.BlockSpec((tm, N), lambda i, k: (i, 0)),
            pl.BlockSpec((1, N), lambda i, k: (0, 0)),
            pl.BlockSpec((1, N), lambda i, k: (0, 0)),
        ],
        out_specs=pl.BlockSpec((tm, N), lambda i, k: (i, 0)),
        scratch_shapes=[pltpu.VMEM((tm, N), jnp.float32)],
        compiler_params=pltpu.CompilerParams(
            dimension_semantics=("parallel", "arbitrary"),
            vmem_limit_bytes=_VMEM_LIMIT),
    )(xb, wb, b.astype(jnp.float32).reshape(1, N), rp,
      gamma.reshape(1, N), beta.reshape(1, N))
    if Mp != M:
        out = out[:M]
    return out.reshape(orig_shape[:-1] + (N,))


# ----------------------------- flash attention kernel -----------------------------

def _flash_attn_kernel(q_ref, k_ref, v_ref, o_ref, m_scr, l_scr, acc_scr,
                       *, num_heads, dh, causal, scale, n_kv, tq, tk):
    qi = pl.program_id(1)
    ki = pl.program_id(2)

    @pl.when(ki == 0)
    def _():
        m_scr[...] = jnp.full_like(m_scr, -jnp.inf)
        l_scr[...] = jnp.zeros_like(l_scr)
        acc_scr[...] = jnp.zeros_like(acc_scr)

    # fold the 1/sqrt(dh) scale into q (O(tq*E) instead of O(H*tq*tk))
    q = (q_ref[0].astype(jnp.float32) * scale).astype(jnp.bfloat16)   # (tq, E)
    k = k_ref[0]                                                      # (tk, E) bf16
    v = v_ref[0]                                                      # (tk, E) bf16

    if causal:
        row = qi * tq + jax.lax.broadcasted_iota(jnp.int32, (tq, tk), 0)
        col = ki * tk + jax.lax.broadcasted_iota(jnp.int32, (tq, tk), 1)
        mask = col <= row                                             # single 2-D mask

    for h in range(num_heads):                                        # static unroll
        sl = slice(h * dh, (h + 1) * dh)
        q_h = q[:, sl]
        k_h = k[:, sl]
        v_h = v[:, sl]
        s = jnp.einsum("qd,kd->qk", q_h, k_h,
                       preferred_element_type=jnp.float32)            # (tq, tk) f32
        if causal:
            s = jnp.where(mask, s, jnp.float32(-1e30))
        m_prev = m_scr[h]                                             # (tq, 1)
        l_prev = l_scr[h]
        m_new = jnp.maximum(m_prev, jnp.max(s, axis=-1, keepdims=True))
        alpha = jnp.exp(m_prev - m_new)
        p = jnp.exp(s - m_new)
        l_scr[h] = alpha * l_prev + jnp.sum(p, axis=-1, keepdims=True)
        acc_scr[:, sl] = alpha * acc_scr[:, sl] + jnp.dot(
            p.astype(jnp.bfloat16), v_h, preferred_element_type=jnp.float32)
        m_scr[h] = m_new

    @pl.when(ki == n_kv - 1)
    def _():
        for h in range(num_heads):
            sl = slice(h * dh, (h + 1) * dh)
            acc_scr[:, sl] = acc_scr[:, sl] * pl.reciprocal(l_scr[h], approx=True)
        o_ref[0] = acc_scr[...].astype(o_ref.dtype)                   # lane-dense (tq, E)


def flash_attention(q, k, v, num_heads, causal, out_dtype=jnp.bfloat16):
    """q: (B, Sq, E); k, v: (B, Sk, E) bf16 -> (B, Sq, E) in out_dtype.

    Heads are split inside the kernel (no wrapper head transpose); output is written
    head-concatenated (lane-dense), so no post-transpose/reshape is needed either.
    """
    B, Sq, E = q.shape
    Sk = k.shape[1]
    dh = E // num_heads
    scale = 1.0 / math.sqrt(dh)

    tq = _seq_tile(Sq, 256)
    tk = _seq_tile(Sk, 512)
    n_q = Sq // tq
    n_kv = Sk // tk
    grid = (B, n_q, n_kv)

    kernel = functools.partial(
        _flash_attn_kernel, num_heads=num_heads, dh=dh, causal=causal,
        scale=scale, n_kv=n_kv, tq=tq, tk=tk)

    return pl.pallas_call(
        kernel,
        out_shape=jax.ShapeDtypeStruct((B, Sq, E), out_dtype),
        grid=grid,
        in_specs=[
            pl.BlockSpec((1, tq, E), lambda b, i, j: (b, i, 0)),
            pl.BlockSpec((1, tk, E), lambda b, i, j: (b, j, 0)),
            pl.BlockSpec((1, tk, E), lambda b, i, j: (b, j, 0)),
        ],
        out_specs=pl.BlockSpec((1, tq, E), lambda b, i, j: (b, i, 0)),
        scratch_shapes=[
            pltpu.VMEM((num_heads, tq, 1), jnp.float32),   # running max per head
            pltpu.VMEM((num_heads, tq, 1), jnp.float32),   # running denom per head
            pltpu.VMEM((tq, E), jnp.float32),              # lane-dense output accumulator
        ],
        compiler_params=pltpu.CompilerParams(
            dimension_semantics=("parallel", "parallel", "arbitrary"),
            vmem_limit_bytes=_VMEM_LIMIT),
    )(q, k, v)


# ----------------------------- model glue (plain JAX) -----------------------------

def sinusoidal_pe(seq_len, d):
    pos = jnp.arange(seq_len, dtype=jnp.float32)[:, None]
    i = jnp.arange(d // 2, dtype=jnp.float32)[None, :]
    angle = pos / jnp.power(10000.0, 2.0 * i / d)
    pe = jnp.zeros((seq_len, d), jnp.float32)
    pe = pe.at[:, 0::2].set(jnp.sin(angle))
    pe = pe.at[:, 1::2].set(jnp.cos(angle))
    return pe


def encoder_fwd(p, src, num_heads):
    B, S = src.shape
    E = p["embed"].shape[1]
    x = (jnp.take(p["embed"], src, axis=0) + sinusoidal_pe(S, E)[None]).astype(jnp.bfloat16)
    qkv = linear(x, p["wqkv"]["w"], p["wqkv"]["b"])                 # fused Q/K/V projection
    q, k, v = jnp.split(qkv, 3, axis=-1)
    a = flash_attention(q, k, v, num_heads, causal=False)
    x = linear_add_layernorm(a, p["wo"]["w"], p["wo"]["b"], x, p["ln1_g"], p["ln1_b"])
    h = linear(x, p["ff1"]["w"], p["ff1"]["b"], activation="relu")
    x = linear_add_layernorm(h, p["ff2"]["w"], p["ff2"]["b"], x, p["ln2_g"], p["ln2_b"])
    return x


def decoder_fwd(p, trg, enc_k, enc_v, num_heads):
    B, S = trg.shape
    E = p["embed"].shape[1]
    y = (jnp.take(p["embed"], trg, axis=0) + sinusoidal_pe(S, E)[None]).astype(jnp.bfloat16)
    # masked self-attention (fused QKV projection)
    qkv = linear(y, p["self_qkv"]["w"], p["self_qkv"]["b"])
    q, k, v = jnp.split(qkv, 3, axis=-1)
    a = flash_attention(q, k, v, num_heads, causal=True)
    y = linear_add_layernorm(a, p["self_o"]["w"], p["self_o"]["b"], y, p["ln1_g"], p["ln1_b"])
    # cross-attention (K, V supplied by the Transformer-level encoder_k/v linears)
    q = linear(y, p["cross_q"]["w"], p["cross_q"]["b"])
    a = flash_attention(q, enc_k, enc_v, num_heads, causal=False)
    y = linear_add_layernorm(a, p["cross_o"]["w"], p["cross_o"]["b"], y, p["ln2_g"], p["ln2_b"])
    # feed-forward
    h = linear(y, p["ff1"]["w"], p["ff1"]["b"], activation="relu")
    y = linear_add_layernorm(h, p["ff2"]["w"], p["ff2"]["b"], y, p["ln3_g"], p["ln3_b"])
    return y


def transformer_fwd(params, src, trg, num_heads):
    B, S_src = src.shape
    enc = encoder_fwd(params["encoder"], src, num_heads)
    # encoder_k_linear + encoder_v_linear fused into one (E, 2E) projection
    kv = linear(enc, params["enc_kv"]["w"], params["enc_kv"]["b"])
    enc_k, enc_v = jnp.split(kv, 2, axis=-1)
    enc_k = enc_k.reshape(B, S_src, -1)
    enc_v = enc_v.reshape(B, S_src, -1)
    dec = decoder_fwd(params["decoder"], trg, enc_k, enc_v, num_heads)
    logits = linear(dec, params["out"]["w"], params["out"]["b"], out_dtype=jnp.float32)
    return logits


# ----------------------------- parameter init -----------------------------

def init_params(key, vocab, E, F):
    keys = iter(jax.random.split(key, 64))

    def dense(din, dout):
        # weights stored pre-cast to bf16 (no per-call cast in the hot path); biases f32.
        w = jax.random.normal(next(keys), (din, dout), jnp.float32) * 0.02
        return {"w": w.astype(jnp.bfloat16), "b": jnp.zeros((dout,), jnp.float32)}

    enc = {
        "embed": jax.random.normal(next(keys), (vocab, E), jnp.float32) * 0.02,
        "wqkv": dense(E, 3 * E), "wo": dense(E, E),
        "ln1_g": jnp.ones((E,), jnp.float32), "ln1_b": jnp.zeros((E,), jnp.float32),
        "ff1": dense(E, F), "ff2": dense(F, E),
        "ln2_g": jnp.ones((E,), jnp.float32), "ln2_b": jnp.zeros((E,), jnp.float32),
    }
    dec = {
        "embed": jax.random.normal(next(keys), (vocab, E), jnp.float32) * 0.02,
        "self_qkv": dense(E, 3 * E), "self_o": dense(E, E),
        "ln1_g": jnp.ones((E,), jnp.float32), "ln1_b": jnp.zeros((E,), jnp.float32),
        "cross_q": dense(E, E), "cross_o": dense(E, E),
        "ln2_g": jnp.ones((E,), jnp.float32), "ln2_b": jnp.zeros((E,), jnp.float32),
        "ff1": dense(E, F), "ff2": dense(F, E),
        "ln3_g": jnp.ones((E,), jnp.float32), "ln3_b": jnp.zeros((E,), jnp.float32),
    }
    return {
        "encoder": enc,
        "decoder": dec,
        "enc_kv": dense(E, 2 * E),  # fused encoder_k_linear + encoder_v_linear
        "out": dense(E, vocab),     # Transformer.output_linear
    }


# ----------------------------- main -----------------------------

if __name__ == "__main__":
    VOCAB = 64
    EMBED = 32
    HEADS = 4
    FFN = 64
    BATCH = 2
    SEQ = 8

    key = jax.random.PRNGKey(0)
    k_params, k_src, k_trg = jax.random.split(key, 3)

    params = init_params(k_params, VOCAB, EMBED, FFN)
    src = jax.random.randint(k_src, (BATCH, SEQ), 0, VOCAB, dtype=jnp.int32)
    trg = jax.random.randint(k_trg, (BATCH, SEQ), 0, VOCAB, dtype=jnp.int32)

    fwd = jax.jit(functools.partial(transformer_fwd, num_heads=HEADS))
    logits = fwd(params, src, trg)
    jax.block_until_ready(logits)

    assert logits.shape == (BATCH, SEQ, VOCAB), logits.shape
    assert bool(jnp.all(jnp.isfinite(logits)))
    print("KERNEL_OK")
</pallas_src>

<mosaic_0001>
module attributes {stable_mosaic.version = 11 : i64} {
  func.func @_matmul_kernel(%arg0: i32, %arg1: i32, %arg2: i32, %arg3: memref<16x32xbf16, #tpu.memory_space<vmem>>, %arg4: memref<32x96xbf16, #tpu.memory_space<vmem>>, %arg5: memref<1x96xf32, #tpu.memory_space<vmem>>, %arg6: memref<16x96xbf16, #tpu.memory_space<vmem>>, %arg7: memref<16x96xf32, #tpu.memory_space<vmem>>) attributes {dimension_semantics = [#tpu.dimension_semantics<parallel>, #tpu.dimension_semantics<parallel>, #tpu.dimension_semantics<arbitrary>], iteration_bounds = array<i64: 1, 1, 1>, scalar_prefetch = 0 : i64, scratch_operands = 1 : i64, tpu.core_type = #tpu.core_type<tc>, window_params = [{transform_indices = @transform_0, window_bounds = array<i64: 16, 32>}, {transform_indices = @transform_1, window_bounds = array<i64: 32, 96>}, {transform_indices = @transform_2, window_bounds = array<i64: 1, 96>}, {transform_indices = @transform_3, window_bounds = array<i64: 16, 96>}]} {
    %c0_i32 = arith.constant 0 : i32
    %0 = arith.cmpi eq, %arg2, %c0_i32 : i32
    %1 = arith.extui %0 : i1 to i32
    %c0_i32_0 = arith.constant 0 : i32
    %2 = arith.cmpi ne, %1, %c0_i32_0 : i32
    scf.if %2 {
      %cst_10 = arith.constant 0.000000e+00 : f32
      %12 = vector.broadcast %cst_10 : f32 to vector<16x96xf32>
      %c0_11 = arith.constant 0 : index
      %c0_12 = arith.constant 0 : index
      %13 = vector.load %arg7[%c0_11, %c0_12] : memref<16x96xf32, #tpu.memory_space<vmem>>, vector<16x96xf32>
      tpu.vector_store %arg7[%c0_11, %c0_12], %12 {strides = array<i32>} : memref<16x96xf32, #tpu.memory_space<vmem>>, vector<16x96xf32>,
    } else {
    }
    %c0 = arith.constant 0 : index
    %c0_1 = arith.constant 0 : index
    %3 = vector.load %arg7[%c0, %c0_1] : memref<16x96xf32, #tpu.memory_space<vmem>>, vector<16x96xf32>
    %c0_2 = arith.constant 0 : index
    %c0_3 = arith.constant 0 : index
    %4 = vector.load %arg3[%c0_2, %c0_3] : memref<16x32xbf16, #tpu.memory_space<vmem>>, vector<16x32xbf16>
    %c0_4 = arith.constant 0 : index
    %c0_5 = arith.constant 0 : index
    %5 = vector.load %arg4[%c0_4, %c0_5] : memref<32x96xbf16, #tpu.memory_space<vmem>>, vector<32x96xbf16>
    %cst = arith.constant dense<0.000000e+00> : vector<16x96xf32>
    %6 = tpu.matmul %4, %5, %cst {dimension_numbers = #tpu.dot_dimension_numbers<[1], [0], [0], [1], [0, 0, 1, 1], [], []>} : vector<16x32xbf16>, vector<32x96xbf16>, vector<16x96xf32> -> vector<16x96xf32>
    %7 = arith.addf %3, %6 : vector<16x96xf32>
    %c0_6 = arith.constant 0 : index
    %c0_7 = arith.constant 0 : index
    %8 = vector.load %arg7[%c0_6, %c0_7] : memref<16x96xf32, #tpu.memory_space<vmem>>, vector<16x96xf32>
    tpu.vector_store %arg7[%c0_6, %c0_7], %7 {strides = array<i32>} : memref<16x96xf32, #tpu.memory_space<vmem>>, vector<16x96xf32>,
    %c0_i32_8 = arith.constant 0 : i32
    %9 = arith.cmpi eq, %arg2, %c0_i32_8 : i32
    %10 = arith.extui %9 : i1 to i32
    %c0_i32_9 = arith.constant 0 : i32
    %11 = arith.cmpi ne, %10, %c0_i32_9 : i32
    scf.if %11 {
      %c0_10 = arith.constant 0 : index
      %c0_11 = arith.constant 0 : index
      %12 = vector.load %arg7[%c0_10, %c0_11] : memref<16x96xf32, #tpu.memory_space<vmem>>, vector<16x96xf32>
      %c0_12 = arith.constant 0 : index
      %c0_13 = arith.constant 0 : index
      %13 = vector.load %arg5[%c0_12, %c0_13] : memref<1x96xf32, #tpu.memory_space<vmem>>, vector<1x96xf32>
      %14 = vector.broadcast %13 : vector<1x96xf32> to vector<16x96xf32>
      %15 = arith.addf %12, %14 : vector<16x96xf32>
      %16 = arith.truncf %15 : vector<16x96xf32> to vector<16x96xbf16>
      %c0_14 = arith.constant 0 : index
      %c0_15 = arith.constant 0 : index
      %17 = vector.load %arg6[%c0_14, %c0_15] : memref<16x96xbf16, #tpu.memory_space<vmem>>, vector<16x96xbf16>
      tpu.vector_store %arg6[%c0_14, %c0_15], %16 {strides = array<i32>} : memref<16x96xbf16, #tpu.memory_space<vmem>>, vector<16x96xbf16>,
    } else {
    }
    return
  }
  func.func @transform_0(%arg0: i32, %arg1: i32, %arg2: i32) -> (i32, i32) {
    %c0_i32 = arith.constant 0 : i32
    return %arg0, %arg2 : i32, i32
  }
  func.func @transform_1(%arg0: i32, %arg1: i32, %arg2: i32) -> (i32, i32) {
    %c0_i32 = arith.constant 0 : i32
    return %arg2, %arg1 : i32, i32
  }
  func.func @transform_2(%arg0: i32, %arg1: i32, %arg2: i32) -> (i32, i32) {
    %c0_i32 = arith.constant 0 : i32
    %c0_i32_0 = arith.constant 0 : i32
    return %c0_i32, %arg1 : i32, i32
  }
  func.func @transform_3(%arg0: i32, %arg1: i32, %arg2: i32) -> (i32, i32) {
    %c0_i32 = arith.constant 0 : i32
    return %arg0, %arg1 : i32, i32
  }
}

module attributes {stable_mosaic.version = 11 : i64} {
  func.func @_matmul_kernel(%arg0: i32, %arg1: i32, %arg2: i32, %arg3: memref<16x32xbf16, #tpu.memory_space<vmem>>, %arg4: memref<32x64xbf16, #tpu.memory_space<vmem>>, %arg5: memref<1x64xf32, #tpu.memory_space<vmem>>, %arg6: memref<16x64xbf16, #tpu.memory_space<vmem>>, %arg7: memref<16x64xf32, #tpu.memory_space<vmem>>) attributes {dimension_semantics = [#tpu.dimension_semantics<parallel>, #tpu.dimension_semantics<parallel>, #tpu.dimension_semantics<arbitrary>], iteration_bounds = array<i64: 1, 1, 1>, scalar_prefetch = 0 : i64, scratch_operands = 1 : i64, tpu.core_type = #tpu.core_type<tc>, window_params = [{transform_indices = @transform_0, window_bounds = array<i64: 16, 32>}, {transform_indices = @transform_1, window_bounds = array<i64: 32, 64>}, {transform_indices = @transform_2, window_bounds = array<i64: 1, 64>}, {transform_indices = @transform_3, window_bounds = array<i64: 16, 64>}]} {
    %c0_i32 = arith.constant 0 : i32
    %0 = arith.cmpi eq, %arg2, %c0_i32 : i32
    %1 = arith.extui %0 : i1 to i32
    %c0_i32_0 = arith.constant 0 : i32
    %2 = arith.cmpi ne, %1, %c0_i32_0 : i32
    scf.if %2 {
      %cst_10 = arith.constant 0.000000e+00 : f32
      %12 = vector.broadcast %cst_10 : f32 to vector<16x64xf32>
      %c0_11 = arith.constant 0 : index
      %c0_12 = arith.constant 0 : index
      %13 = vector.load %arg7[%c0_11, %c0_12] : memref<16x64xf32, #tpu.memory_space<vmem>>, vector<16x64xf32>
      tpu.vector_store %arg7[%c0_11, %c0_12], %12 {strides = array<i32>} : memref<16x64xf32, #tpu.memory_space<vmem>>, vector<16x64xf32>,
    } else {
    }
    %c0 = arith.constant 0 : index
    %c0_1 = arith.constant 0 : index
    %3 = vector.load %arg7[%c0, %c0_1] : memref<16x64xf32, #tpu.memory_space<vmem>>, vector<16x64xf32>
    %c0_2 = arith.constant 0 : index
    %c0_3 = arith.constant 0 : index
    %4 = vector.load %arg3[%c0_2, %c0_3] : memref<16x32xbf16, #tpu.memory_space<vmem>>, vector<16x32xbf16>
    %c0_4 = arith.constant 0 : index
    %c0_5 = arith.constant 0 : index
    %5 = vector.load %arg4[%c0_4, %c0_5] : memref<32x64xbf16, #tpu.memory_space<vmem>>, vector<32x64xbf16>
    %cst = arith.constant dense<0.000000e+00> : vector<16x64xf32>
    %6 = tpu.matmul %4, %5, %cst {dimension_numbers = #tpu.dot_dimension_numbers<[1], [0], [0], [1], [0, 0, 1, 1], [], []>} : vector<16x32xbf16>, vector<32x64xbf16>, vector<16x64xf32> -> vector<16x64xf32>
    %7 = arith.addf %3, %6 : vector<16x64xf32>
    %c0_6 = arith.constant 0 : index
    %c0_7 = arith.constant 0 : index
    %8 = vector.load %arg7[%c0_6, %c0_7] : memref<16x64xf32, #tpu.memory_space<vmem>>, vector<16x64xf32>
    tpu.vector_store %arg7[%c0_6, %c0_7], %7 {strides = array<i32>} : memref<16x64xf32, #tpu.memory_space<vmem>>, vector<16x64xf32>,
    %c0_i32_8 = arith.constant 0 : i32
    %9 = arith.cmpi eq, %arg2, %c0_i32_8 : i32
    %10 = arith.extui %9 : i1 to i32
    %c0_i32_9 = arith.constant 0 : i32
    %11 = arith.cmpi ne, %10, %c0_i32_9 : i32
    scf.if %11 {
      %c0_10 = arith.constant 0 : index
      %c0_11 = arith.constant 0 : index
      %12 = vector.load %arg7[%c0_10, %c0_11] : memref<16x64xf32, #tpu.memory_space<vmem>>, vector<16x64xf32>
      %c0_12 = arith.constant 0 : index
      %c0_13 = arith.constant 0 : index
      %13 = vector.load %arg5[%c0_12, %c0_13] : memref<1x64xf32, #tpu.memory_space<vmem>>, vector<1x64xf32>
      %14 = vector.broadcast %13 : vector<1x64xf32> to vector<16x64xf32>
      %15 = arith.addf %12, %14 : vector<16x64xf32>
      %cst_14 = arith.constant 0.000000e+00 : f32
      %16 = vector.broadcast %cst_14 : f32 to vector<16x64xf32>
      %17 = arith.maximumf %15, %16 : vector<16x64xf32>
      %18 = arith.truncf %17 : vector<16x64xf32> to vector<16x64xbf16>
      %c0_15 = arith.constant 0 : index
      %c0_16 = arith.constant 0 : index
      %19 = vector.load %arg6[%c0_15, %c0_16] : memref<16x64xbf16, #tpu.memory_space<vmem>>, vector<16x64xbf16>
      tpu.vector_store %arg6[%c0_15, %c0_16], %18 {strides = array<i32>} : memref<16x64xbf16, #tpu.memory_space<vmem>>, vector<16x64xbf16>,
    } else {
    }
    return
  }
  func.func @transform_0(%arg0: i32, %arg1: i32, %arg2: i32) -> (i32, i32) {
    %c0_i32 = arith.constant 0 : i32
    return %arg0, %arg2 : i32, i32
  }
  func.func @transform_1(%arg0: i32, %arg1: i32, %arg2: i32) -> (i32, i32) {
    %c0_i32 = arith.constant 0 : i32
    return %arg2, %arg1 : i32, i32
  }
  func.func @transform_2(%arg0: i32, %arg1: i32, %arg2: i32) -> (i32, i32) {
    %c0_i32 = arith.constant 0 : i32
    %c0_i32_0 = arith.constant 0 : i32
    return %c0_i32, %arg1 : i32, i32
  }
  func.func @transform_3(%arg0: i32, %arg1: i32, %arg2: i32) -> (i32, i32) {
    %c0_i32 = arith.constant 0 : i32
    return %arg0, %arg1 : i32, i32
  }
}

module attributes {stable_mosaic.version = 11 : i64} {
  func.func @_flash_attn_kernel(%arg0: i32, %arg1: i32, %arg2: i32, %arg3: memref<1x8x32xbf16, #tpu.memory_space<vmem>>, %arg4: memref<1x8x32xbf16, #tpu.memory_space<vmem>>, %arg5: memref<1x8x32xbf16, #tpu.memory_space<vmem>>, %arg6: memref<1x8x32xbf16, #tpu.memory_space<vmem>>, %arg7: memref<4x8x1xf32, #tpu.memory_space<vmem>>, %arg8: memref<4x8x1xf32, #tpu.memory_space<vmem>>, %arg9: memref<8x32xf32, #tpu.memory_space<vmem>>) attributes {dimension_semantics = [#tpu.dimension_semantics<parallel>, #tpu.dimension_semantics<parallel>, #tpu.dimension_semantics<arbitrary>], iteration_bounds = array<i64: 2, 1, 1>, scalar_prefetch = 0 : i64, scratch_operands = 3 : i64, tpu.core_type = #tpu.core_type<tc>, window_params = [{transform_indices = @transform_0, window_bounds = array<i64: 1, 8, 32>}, {transform_indices = @transform_1, window_bounds = array<i64: 1, 8, 32>}, {transform_indices = @transform_2, window_bounds = array<i64: 1, 8, 32>}, {transform_indices = @transform_3, window_bounds = array<i64: 1, 8, 32>}]} {
    %c0_i32 = arith.constant 0 : i32
    %0 = arith.cmpi eq, %arg2, %c0_i32 : i32
    %1 = arith.extui %0 : i1 to i32
    %c0_i32_0 = arith.constant 0 : i32
    %2 = arith.cmpi ne, %1, %c0_i32_0 : i32
    scf.if %2 {
      %cst_85 = arith.constant 0xFF800000 : f32
      %148 = vector.broadcast %cst_85 : f32 to vector<4x8x1xf32>
      %c0_86 = arith.constant 0 : index
      %c0_87 = arith.constant 0 : index
      %c0_88 = arith.constant 0 : index
      %149 = vector.load %arg7[%c0_86, %c0_87, %c0_88] : memref<4x8x1xf32, #tpu.memory_space<vmem>>, vector<4x8x1xf32>
      tpu.vector_store %arg7[%c0_86, %c0_87, %c0_88], %148 {strides = array<i32>} : memref<4x8x1xf32, #tpu.memory_space<vmem>>, vector<4x8x1xf32>,
      %cst_89 = arith.constant 0.000000e+00 : f32
      %150 = vector.broadcast %cst_89 : f32 to vector<4x8x1xf32>
      %c0_90 = arith.constant 0 : index
      %c0_91 = arith.constant 0 : index
      %c0_92 = arith.constant 0 : index
      %151 = vector.load %arg8[%c0_90, %c0_91, %c0_92] : memref<4x8x1xf32, #tpu.memory_space<vmem>>, vector<4x8x1xf32>
      tpu.vector_store %arg8[%c0_90, %c0_91, %c0_92], %150 {strides = array<i32>} : memref<4x8x1xf32, #tpu.memory_space<vmem>>, vector<4x8x1xf32>,
      %cst_93 = arith.constant 0.000000e+00 : f32
      %152 = vector.broadcast %cst_93 : f32 to vector<8x32xf32>
      %c0_94 = arith.constant 0 : index
      %c0_95 = arith.constant 0 : index
      %153 = vector.load %arg9[%c0_94, %c0_95] : memref<8x32xf32, #tpu.memory_space<vmem>>, vector<8x32xf32>
      tpu.vector_store %arg9[%c0_94, %c0_95], %152 {strides = array<i32>} : memref<8x32xf32, #tpu.memory_space<vmem>>, vector<8x32xf32>,
    } else {
    }
    %c0 = arith.constant 0 : index
    %c0_1 = arith.constant 0 : index
    %c0_2 = arith.constant 0 : index
    %3 = vector.load %arg3[%c0, %c0_1, %c0_2] : memref<1x8x32xbf16, #tpu.memory_space<vmem>>, vector<1x8x32xbf16>
    %4 = vector.shape_cast %3 : vector<1x8x32xbf16> to vector<8x32xbf16>
    %5 = arith.extf %4 : vector<8x32xbf16> to vector<8x32xf32>
    %cst = arith.constant 0.353553385 : f32
    %6 = vector.broadcast %cst : f32 to vector<8x32xf32>
    %7 = arith.mulf %5, %6 : vector<8x32xf32>
    %8 = arith.truncf %7 : vector<8x32xf32> to vector<8x32xbf16>
    %c0_3 = arith.constant 0 : index
    %c0_4 = arith.constant 0 : index
    %c0_5 = arith.constant 0 : index
    %9 = vector.load %arg4[%c0_3, %c0_4, %c0_5] : memref<1x8x32xbf16, #tpu.memory_space<vmem>>, vector<1x8x32xbf16>
    %10 = vector.shape_cast %9 : vector<1x8x32xbf16> to vector<8x32xbf16>
    %c0_6 = arith.constant 0 : index
    %c0_7 = arith.constant 0 : index
    %c0_8 = arith.constant 0 : index
    %11 = vector.load %arg5[%c0_6, %c0_7, %c0_8] : memref<1x8x32xbf16, #tpu.memory_space<vmem>>, vector<1x8x32xbf16>
    %12 = vector.shape_cast %11 : vector<1x8x32xbf16> to vector<8x32xbf16>
    %13 = vector.extract_strided_slice %8 {offsets = [0, 0], sizes = [8, 8], strides = [1, 1]} : vector<8x32xbf16> to vector<8x8xbf16>
    %14 = vector.extract_strided_slice %10 {offsets = [0, 0], sizes = [8, 8], strides = [1, 1]} : vector<8x32xbf16> to vector<8x8xbf16>
    %15 = vector.extract_strided_slice %12 {offsets = [0, 0], sizes = [8, 8], strides = [1, 1]} : vector<8x32xbf16> to vector<8x8xbf16>
    "tpu.trace_start"() <{level = 10 : i32, message = "qd,kd->qk"}> : () -> ()
    %cst_9 = arith.constant dense<0.000000e+00> : vector<8x8xf32>
    %16 = tpu.matmul %13, %14, %cst_9 {dimension_numbers = #tpu.dot_dimension_numbers<[1], [1], [0], [0], [0, 0, 1, 0], [], []>} : vector<8x8xbf16>, vector<8x8xbf16>, vector<8x8xf32> -> vector<8x8xf32>
    "tpu.trace_stop"() : () -> ()
    %c0_10 = arith.constant 0 : index
    %c0_11 = arith.constant 0 : index
    %c0_12 = arith.constant 0 : index
    %17 = vector.load %arg7[%c0_10, %c0_11, %c0_12] : memref<4x8x1xf32, #tpu.memory_space<vmem>>, vector<1x8x1xf32>
    %18 = vector.shape_cast %17 : vector<1x8x1xf32> to vector<8x1xf32>
    %c0_13 = arith.constant 0 : index
    %c0_14 = arith.constant 0 : index
    %c0_15 = arith.constant 0 : index
    %19 = vector.load %arg8[%c0_13, %c0_14, %c0_15] : memref<4x8x1xf32, #tpu.memory_space<vmem>>, vector<1x8x1xf32>
    %20 = vector.shape_cast %19 : vector<1x8x1xf32> to vector<8x1xf32>
    %cst_16 = arith.constant dense<0xFF800000> : vector<8xf32>
    %21 = vector.multi_reduction <maximumf>, %16, %cst_16 [1] : vector<8x8xf32> to vector<8xf32>
    %22 = vector.shape_cast %21 : vector<8xf32> to vector<8x1xf32>
    %23 = arith.maximumf %18, %22 : vector<8x1xf32>
    %24 = arith.subf %18, %23 : vector<8x1xf32>
    %25 = math.exp %24 : vector<8x1xf32>
    %26 = vector.broadcast %23 : vector<8x1xf32> to vector<8x8xf32>
    %27 = arith.subf %16, %26 : vector<8x8xf32>
    %28 = math.exp %27 : vector<8x8xf32>
    %29 = arith.mulf %25, %20 : vector<8x1xf32>
    %cst_17 = arith.constant dense<0.000000e+00> : vector<8xf32>
    %30 = vector.multi_reduction <add>, %28, %cst_17 [1] : vector<8x8xf32> to vector<8xf32>
    %31 = vector.shape_cast %30 : vector<8xf32> to vector<8x1xf32>
    %32 = arith.addf %29, %31 : vector<8x1xf32>
    %c0_18 = arith.constant 0 : index
    %c0_19 = arith.constant 0 : index
    %c0_20 = arith.constant 0 : index
    %33 = vector.load %arg8[%c0_18, %c0_19, %c0_20] : memref<4x8x1xf32, #tpu.memory_space<vmem>>, vector<1x8x1xf32>
    %34 = vector.shape_cast %33 : vector<1x8x1xf32> to vector<8x1xf32>
    %35 = vector.shape_cast %32 : vector<8x1xf32> to vector<1x8x1xf32>
    tpu.vector_store %arg8[%c0_18, %c0_19, %c0_20], %35 {strides = array<i32>} : memref<4x8x1xf32, #tpu.memory_space<vmem>>, vector<1x8x1xf32>,
    %c0_21 = arith.constant 0 : index
    %c0_22 = arith.constant 0 : index
    %36 = vector.load %arg9[%c0_21, %c0_22] : memref<8x32xf32, #tpu.memory_space<vmem>>, vector<8x8xf32>
    %37 = vector.broadcast %25 : vector<8x1xf32> to vector<8x8xf32>
    %38 = arith.mulf %37, %36 : vector<8x8xf32>
    %39 = arith.truncf %28 : vector<8x8xf32> to vector<8x8xbf16>
    %cst_23 = arith.constant dense<0.000000e+00> : vector<8x8xf32>
    %40 = tpu.matmul %39, %15, %cst_23 {dimension_numbers = #tpu.dot_dimension_numbers<[1], [0], [0], [1], [0, 0, 1, 1], [], []>} : vector<8x8xbf16>, vector<8x8xbf16>, vector<8x8xf32> -> vector<8x8xf32>
    %41 = arith.addf %38, %40 : vector<8x8xf32>
    %c0_24 = arith.constant 0 : index
    %c0_25 = arith.constant 0 : index
    %42 = vector.load %arg9[%c0_24, %c0_25] : memref<8x32xf32, #tpu.memory_space<vmem>>, vector<8x8xf32>
    tpu.vector_store %arg9[%c0_24, %c0_25], %41 {strides = array<i32>} : memref<8x32xf32, #tpu.memory_space<vmem>>, vector<8x8xf32>,
    %c0_26 = arith.constant 0 : index
    %c0_27 = arith.constant 0 : index
    %c0_28 = arith.constant 0 : index
    %43 = vector.load %arg7[%c0_26, %c0_27, %c0_28] : memref<4x8x1xf32, #tpu.memory_space<vmem>>, vector<1x8x1xf32>
    %44 = vector.shape_cast %43 : vector<1x8x1xf32> to vector<8x1xf32>
    %45 = vector.shape_cast %23 : vector<8x1xf32> to vector<1x8x1xf32>
    tpu.vector_store %arg7[%c0_26, %c0_27, %c0_28], %45 {strides = array<i32>} : memref<4x8x1xf32, #tpu.memory_space<vmem>>, vector<1x8x1xf32>,
    %46 = vector.extract_strided_slice %8 {offsets = [0, 8], sizes = [8, 8], strides = [1, 1]} : vector<8x32xbf16> to vector<8x8xbf16>
    %47 = vector.extract_strided_slice %10 {offsets = [0, 8], sizes = [8, 8], strides = [1, 1]} : vector<8x32xbf16> to vector<8x8xbf16>
    %48 = vector.extract_strided_slice %12 {offsets = [0, 8], sizes = [8, 8], strides = [1, 1]} : vector<8x32xbf16> to vector<8x8xbf16>
    "tpu.trace_start"() <{level = 10 : i32, message = "qd,kd->qk"}> : () -> ()
    %cst_29 = arith.constant dense<0.000000e+00> : vector<8x8xf32>
    %49 = tpu.matmul %46, %47, %cst_29 {dimension_numbers = #tpu.dot_dimension_numbers<[1], [1], [0], [0], [0, 0, 1, 0], [], []>} : vector<8x8xbf16>, vector<8x8xbf16>, vector<8x8xf32> -> vector<8x8xf32>
    "tpu.trace_stop"() : () -> ()
    %c1 = arith.constant 1 : index
    %c0_30 = arith.constant 0 : index
    %c0_31 = arith.constant 0 : index
    %50 = vector.load %arg7[%c1, %c0_30, %c0_31] : memref<4x8x1xf32, #tpu.memory_space<vmem>>, vector<1x8x1xf32>
    %51 = vector.shape_cast %50 : vector<1x8x1xf32> to vector<8x1xf32>
    %c1_32 = arith.constant 1 : index
    %c0_33 = arith.constant 0 : index
    %c0_34 = arith.constant 0 : index
    %52 = vector.load %arg8[%c1_32, %c0_33, %c0_34] : memref<4x8x1xf32, #tpu.memory_space<vmem>>, vector<1x8x1xf32>
    %53 = vector.shape_cast %52 : vector<1x8x1xf32> to vector<8x1xf32>
    %cst_35 = arith.constant dense<0xFF800000> : vector<8xf32>
    %54 = vector.multi_reduction <maximumf>, %49, %cst_35 [1] : vector<8x8xf32> to vector<8xf32>
    %55 = vector.shape_cast %54 : vector<8xf32> to vector<8x1xf32>
    %56 = arith.maximumf %51, %55 : vector<8x1xf32>
    %57 = arith.subf %51, %56 : vector<8x1xf32>
    %58 = math.exp %57 : vector<8x1xf32>
    %59 = vector.broadcast %56 : vector<8x1xf32> to vector<8x8xf32>
    %60 = arith.subf %49, %59 : vector<8x8xf32>
    %61 = math.exp %60 : vector<8x8xf32>
    %62 = arith.mulf %58, %53 : vector<8x1xf32>
    %cst_36 = arith.constant dense<0.000000e+00> : vector<8xf32>
    %63 = vector.multi_reduction <add>, %61, %cst_36 [1] : vector<8x8xf32> to vector<8xf32>
    %64 = vector.shape_cast %63 : vector<8xf32> to vector<8x1xf32>
    %65 = arith.addf %62, %64 : vector<8x1xf32>
    %c1_37 = arith.constant 1 : index
    %c0_38 = arith.constant 0 : index
    %c0_39 = arith.constant 0 : index
    %66 = vector.load %arg8[%c1_37, %c0_38, %c0_39] : memref<4x8x1xf32, #tpu.memory_space<vmem>>, vector<1x8x1xf32>
    %67 = vector.shape_cast %66 : vector<1x8x1xf32> to vector<8x1xf32>
    %68 = vector.shape_cast %65 : vector<8x1xf32> to vector<1x8x1xf32>
    tpu.vector_store %arg8[%c1_37, %c0_38, %c0_39], %68 {strides = array<i32>} : memref<4x8x1xf32, #tpu.memory_space<vmem>>, vector<1x8x1xf32>,
    %c0_40 = arith.constant 0 : index
    %c8 = arith.constant 8 : index
    %69 = vector.load %arg9[%c0_40, %c8] : memref<8x32xf32, #tpu.memory_space<vmem>>, vector<8x8xf32>
    %70 = vector.broadcast %58 : vector<8x1xf32> to vector<8x8xf32>
    %71 = arith.mulf %70, %69 : vector<8x8xf32>
    %72 = arith.truncf %61 : vector<8x8xf32> to vector<8x8xbf16>
    %cst_41 = arith.constant dense<0.000000e+00> : vector<8x8xf32>
    %73 = tpu.matmul %72, %48, %cst_41 {dimension_numbers = #tpu.dot_dimension_numbers<[1], [0], [0], [1], [0, 0, 1, 1], [], []>} : vector<8x8xbf16>, vector<8x8xbf16>, vector<8x8xf32> -> vector<8x8xf32>
    %74 = arith.addf %71, %73 : vector<8x8xf32>
    %c0_42 = arith.constant 0 : index
    %c8_43 = arith.constant 8 : index
    %75 = vector.load %arg9[%c0_42, %c8_43] : memref<8x32xf32, #tpu.memory_space<vmem>>, vector<8x8xf32>
    tpu.vector_store %arg9[%c0_42, %c8_43], %74 {strides = array<i32>} : memref<8x32xf32, #tpu.memory_space<vmem>>, vector<8x8xf32>,
    %c1_44 = arith.constant 1 : index
    %c0_45 = arith.constant 0 : index
    %c0_46 = arith.constant 0 : index
    %76 = vector.load %arg7[%c1_44, %c0_45, %c0_46] : memref<4x8x1xf32, #tpu.memory_space<vmem>>, vector<1x8x1xf32>
    %77 = vector.shape_cast %76 : vector<1x8x1xf32> to vector<8x1xf32>
    %78 = vector.shape_cast %56 : vector<8x1xf32> to vector<1x8x1xf32>
    tpu.vector_store %arg7[%c1_44, %c0_45, %c0_46], %78 {strides = array<i32>} : memref<4x8x1xf32, #tpu.memory_space<vmem>>, vector<1x8x1xf32>,
    %79 = vector.extract_strided_slice %8 {offsets = [0, 16], sizes = [8, 8], strides = [1, 1]} : vector<8x32xbf16> to vector<8x8xbf16>
    %80 = vector.extract_strided_slice %10 {offsets = [0, 16], sizes = [8, 8], strides = [1, 1]} : vector<8x32xbf16> to vector<8x8xbf16>
    %81 = vector.extract_strided_slice %12 {offsets = [0, 16], sizes = [8, 8], strides = [1, 1]} : vector<8x32xbf16> to vector<8x8xbf16>
    "tpu.trace_start"() <{level = 10 : i32, message = "qd,kd->qk"}> : () -> ()
    %cst_47 = arith.constant dense<0.000000e+00> : vector<8x8xf32>
    %82 = tpu.matmul %79, %80, %cst_47 {dimension_numbers = #tpu.dot_dimension_numbers<[1], [1], [0], [0], [0, 0, 1, 0], [], []>} : vector<8x8xbf16>, vector<8x8xbf16>, vector<8x8xf32> -> vector<8x8xf32>
    "tpu.trace_stop"() : () -> ()
    %c2 = arith.constant 2 : index
    %c0_48 = arith.constant 0 : index
    %c0_49 = arith.constant 0 : index
    %83 = vector.load %arg7[%c2, %c0_48, %c0_49] : memref<4x8x1xf32, #tpu.memory_space<vmem>>, vector<1x8x1xf32>
    %84 = vector.shape_cast %83 : vector<1x8x1xf32> to vector<8x1xf32>
    %c2_50 = arith.constant 2 : index
    %c0_51 = arith.constant 0 : index
    %c0_52 = arith.constant 0 : index
    %85 = vector.load %arg8[%c2_50, %c0_51, %c0_52] : memref<4x8x1xf32, #tpu.memory_space<vmem>>, vector<1x8x1xf32>
    %86 = vector.shape_cast %85 : vector<1x8x1xf32> to vector<8x1xf32>
    %cst_53 = arith.constant dense<0xFF800000> : vector<8xf32>
    %87 = vector.multi_reduction <maximumf>, %82, %cst_53 [1] : vector<8x8xf32> to vector<8xf32>
    %88 = vector.shape_cast %87 : vector<8xf32> to vector<8x1xf32>
    %89 = arith.maximumf %84, %88 : vector<8x1xf32>
    %90 = arith.subf %84, %89 : vector<8x1xf32>
    %91 = math.exp %90 : vector<8x1xf32>
    %92 = vector.broadcast %89 : vector<8x1xf32> to vector<8x8xf32>
    %93 = arith.subf %82, %92 : vector<8x8xf32>
    %94 = math.exp %93 : vector<8x8xf32>
    %95 = arith.mulf %91, %86 : vector<8x1xf32>
    %cst_54 = arith.constant dense<0.000000e+00> : vector<8xf32>
    %96 = vector.multi_reduction <add>, %94, %cst_54 [1] : vector<8x8xf32> to vector<8xf32>
    %97 = vector.shape_cast %96 : vector<8xf32> to vector<8x1xf32>
    %98 = arith.addf %95, %97 : vector<8x1xf32>
    %c2_55 = arith.constant 2 : index
    %c0_56 = arith.constant 0 : index
    %c0_57 = arith.constant 0 : index
    %99 = vector.load %arg8[%c2_55, %c0_56, %c0_57] : memref<4x8x1xf32, #tpu.memory_space<vmem>>, vector<1x8x1xf32>
    %100 = vector.shape_cast %99 : vector<1x8x1xf32> to vector<8x1xf32>
    %101 = vector.shape_cast %98 : vector<8x1xf32> to vector<1x8x1xf32>
    tpu.vector_store %arg8[%c2_55, %c0_56, %c0_57], %101 {strides = array<i32>} : memref<4x8x1xf32, #tpu.memory_space<vmem>>, vector<1x8x1xf32>,
    %c0_58 = arith.constant 0 : index
    %c16 = arith.constant 16 : index
    %102 = vector.load %arg9[%c0_58, %c16] : memref<8x32xf32, #tpu.memory_space<vmem>>, vector<8x8xf32>
    %103 = vector.broadcast %91 : vector<8x1xf32> to vector<8x8xf32>
    %104 = arith.mulf %103, %102 : vector<8x8xf32>
    %105 = arith.truncf %94 : vector<8x8xf32> to vector<8x8xbf16>
    %cst_59 = arith.constant dense<0.000000e+00> : vector<8x8xf32>
    %106 = tpu.matmul %105, %81, %cst_59 {dimension_numbers = #tpu.dot_dimension_numbers<[1], [0], [0], [1], [0, 0, 1, 1], [], []>} : vector<8x8xbf16>, vector<8x8xbf16>, vector<8x8xf32> -> vector<8x8xf32>
    %107 = arith.addf %104, %106 : vector<8x8xf32>
    %c0_60 = arith.constant 0 : index
    %c16_61 = arith.constant 16 : index
    %108 = vector.load %arg9[%c0_60, %c16_61] : memref<8x32xf32, #tpu.memory_space<vmem>>, vector<8x8xf32>
    tpu.vector_store %arg9[%c0_60, %c16_61], %107 {strides = array<i32>} : memref<8x32xf32, #tpu.memory_space<vmem>>, vector<8x8xf32>,
    %c2_62 = arith.constant 2 : index
    %c0_63 = arith.constant 0 : index
    %c0_64 = arith.constant 0 : index
    %109 = vector.load %arg7[%c2_62, %c0_63, %c0_64] : memref<4x8x1xf32, #tpu.memory_space<vmem>>, vector<1x8x1xf32>
    %110 = vector.shape_cast %109 : vector<1x8x1xf32> to vector<8x1xf32>
    %111 = vector.shape_cast %89 : vector<8x1xf32> to vector<1x8x1xf32>
    tpu.vector_store %arg7[%c2_62, %c0_63, %c0_64], %111 {strides = array<i32>} : memref<4x8x1xf32, #tpu.memory_space<vmem>>, vector<1x8x1xf32>,
    %112 = vector.extract_strided_slice %8 {offsets = [0, 24], sizes = [8, 8], strides = [1, 1]} : vector<8x32xbf16> to vector<8x8xbf16>
    %113 = vector.extract_strided_slice %10 {offsets = [0, 24], sizes = [8, 8], strides = [1, 1]} : vector<8x32xbf16> to vector<8x8xbf16>
    %114 = vector.extract_strided_slice %12 {offsets = [0, 24], sizes = [8, 8], strides = [1, 1]} : vector<8x32xbf16> to vector<8x8xbf16>
    "tpu.trace_start"() <{level = 10 : i32, message = "qd,kd->qk"}> : () -> ()
    %cst_65 = arith.constant dense<0.000000e+00> : vector<8x8xf32>
    %115 = tpu.matmul %112, %113, %cst_65 {dimension_numbers = #tpu.dot_dimension_numbers<[1], [1], [0], [0], [0, 0, 1, 0], [], []>} : vector<8x8xbf16>, vector<8x8xbf16>, vector<8x8xf32> -> vector<8x8xf32>
    "tpu.trace_stop"() : () -> ()
    %c3 = arith.constant 3 : index
    %c0_66 = arith.constant 0 : index
    %c0_67 = arith.constant 0 : index
    %116 = vector.load %arg7[%c3, %c0_66, %c0_67] : memref<4x8x1xf32, #tpu.memory_space<vmem>>, vector<1x8x1xf32>
    %117 = vector.shape_cast %116 : vector<1x8x1xf32> to vector<8x1xf32>
    %c3_68 = arith.constant 3 : index
    %c0_69 = arith.constant 0 : index
    %c0_70 = arith.constant 0 : index
    %118 = vector.load %arg8[%c3_68, %c0_69, %c0_70] : memref<4x8x1xf32, #tpu.memory_space<vmem>>, vector<1x8x1xf32>
    %119 = vector.shape_cast %118 : vector<1x8x1xf32> to vector<8x1xf32>
    %cst_71 = arith.constant dense<0xFF800000> : vector<8xf32>
    %120 = vector.multi_reduction <maximumf>, %115, %cst_71 [1] : vector<8x8xf32> to vector<8xf32>
    %121 = vector.shape_cast %120 : vector<8xf32> to vector<8x1xf32>
    %122 = arith.maximumf %117, %121 : vector<8x1xf32>
    %123 = arith.subf %117, %122 : vector<8x1xf32>
    %124 = math.exp %123 : vector<8x1xf32>
    %125 = vector.broadcast %122 : vector<8x1xf32> to vector<8x8xf32>
    %126 = arith.subf %115, %125 : vector<8x8xf32>
    %127 = math.exp %126 : vector<8x8xf32>
    %128 = arith.mulf %124, %119 : vector<8x1xf32>
    %cst_72 = arith.constant dense<0.000000e+00> : vector<8xf32>
    %129 = vector.multi_reduction <add>, %127, %cst_72 [1] : vector<8x8xf32> to vector<8xf32>
    %130 = vector.shape_cast %129 : vector<8xf32> to vector<8x1xf32>
    %131 = arith.addf %128, %130 : vector<8x1xf32>
    %c3_73 = arith.constant 3 : index
    %c0_74 = arith.constant 0 : index
    %c0_75 = arith.constant 0 : index
    %132 = vector.load %arg8[%c3_73, %c0_74, %c0_75] : memref<4x8x1xf32, #tpu.memory_space<vmem>>, vector<1x8x1xf32>
    %133 = vector.shape_cast %132 : vector<1x8x1xf32> to vector<8x1xf32>
    %134 = vector.shape_cast %131 : vector<8x1xf32> to vector<1x8x1xf32>
    tpu.vector_store %arg8[%c3_73, %c0_74, %c0_75], %134 {strides = array<i32>} : memref<4x8x1xf32, #tpu.memory_space<vmem>>, vector<1x8x1xf32>,
    %c0_76 = arith.constant 0 : index
    %c24 = arith.constant 24 : index
    %135 = vector.load %arg9[%c0_76, %c24] : memref<8x32xf32, #tpu.memory_space<vmem>>, vector<8x8xf32>
    %136 = vector.broadcast %124 : vector<8x1xf32> to vector<8x8xf32>
    %137 = arith.mulf %136, %135 : vector<8x8xf32>
    %138 = arith.truncf %127 : vector<8x8xf32> to vector<8x8xbf16>
    %cst_77 = arith.constant dense<0.000000e+00> : vector<8x8xf32>
    %139 = tpu.matmul %138, %114, %cst_77 {dimension_numbers = #tpu.dot_dimension_numbers<[1], [0], [0], [1], [0, 0, 1, 1], [], []>} : vector<8x8xbf16>, vector<8x8xbf16>, vector<8x8xf32> -> vector<8x8xf32>
    %140 = arith.addf %137, %139 : vector<8x8xf32>
    %c0_78 = arith.constant 0 : index
    %c24_79 = arith.constant 24 : index
    %141 = vector.load %arg9[%c0_78, %c24_79] : memref<8x32xf32, #tpu.memory_space<vmem>>, vector<8x8xf32>
    tpu.vector_store %arg9[%c0_78, %c24_79], %140 {strides = array<i32>} : memref<8x32xf32, #tpu.memory_space<vmem>>, vector<8x8xf32>,
    %c3_80 = arith.constant 3 : index
    %c0_81 = arith.constant 0 : index
    %c0_82 = arith.constant 0 : index
    %142 = vector.load %arg7[%c3_80, %c0_81, %c0_82] : memref<4x8x1xf32, #tpu.memory_space<vmem>>, vector<1x8x1xf32>
    %143 = vector.shape_cast %142 : vector<1x8x1xf32> to vector<8x1xf32>
    %144 = vector.shape_cast %122 : vector<8x1xf32> to vector<1x8x1xf32>
    tpu.vector_store %arg7[%c3_80, %c0_81, %c0_82], %144 {strides = array<i32>} : memref<4x8x1xf32, #tpu.memory_space<vmem>>, vector<1x8x1xf32>,
    %c0_i32_83 = arith.constant 0 : i32
    %145 = arith.cmpi eq, %arg2, %c0_i32_83 : i32
    %146 = arith.extui %145 : i1 to i32
    %c0_i32_84 = arith.constant 0 : i32
    %147 = arith.cmpi ne, %146, %c0_i32_84 : i32
    scf.if %147 {
      %c0_85 = arith.constant 0 : index
      %c0_86 = arith.constant 0 : index
      %148 = vector.load %arg9[%c0_85, %c0_86] : memref<8x32xf32, #tpu.memory_space<vmem>>, vector<8x8xf32>
      %c0_87 = arith.constant 0 : index
      %c0_88 = arith.constant 0 : index
      %c0_89 = arith.constant 0 : index
      %149 = vector.load %arg8[%c0_87, %c0_88, %c0_89] : memref<4x8x1xf32, #tpu.memory_space<vmem>>, vector<1x8x1xf32>
      %150 = vector.shape_cast %149 : vector<1x8x1xf32> to vector<8x1xf32>
      %151 = tpu.reciprocal %150 {approx = true} : vector<8x1xf32> -> vector<8x1xf32>
      %152 = vector.broadcast %151 : vector<8x1xf32> to vector<8x8xf32>
      %153 = arith.mulf %148, %152 : vector<8x8xf32>
      %c0_90 = arith.constant 0 : index
      %c0_91 = arith.constant 0 : index
      %154 = vector.load %arg9[%c0_90, %c0_91] : memref<8x32xf32, #tpu.memory_space<vmem>>, vector<8x8xf32>
      tpu.vector_store %arg9[%c0_90, %c0_91], %153 {strides = array<i32>} : memref<8x32xf32, #tpu.memory_space<vmem>>, vector<8x8xf32>,
      %c0_92 = arith.constant 0 : index
      %c8_93 = arith.constant 8 : index
      %155 = vector.load %arg9[%c0_92, %c8_93] : memref<8x32xf32, #tpu.memory_space<vmem>>, vector<8x8xf32>
      %c1_94 = arith.constant 1 : index
      %c0_95 = arith.constant 0 : index
      %c0_96 = arith.constant 0 : index
      %156 = vector.load %arg8[%c1_94, %c0_95, %c0_96] : memref<4x8x1xf32, #tpu.memory_space<vmem>>, vector<1x8x1xf32>
      %157 = vector.shape_cast %156 : vector<1x8x1xf32> to vector<8x1xf32>
      %158 = tpu.reciprocal %157 {approx = true} : vector<8x1xf32> -> vector<8x1xf32>
      %159 = vector.broadcast %158 : vector<8x1xf32> to vector<8x8xf32>
      %160 = arith.mulf %155, %159 : vector<8x8xf32>
      %c0_97 = arith.constant 0 : index
      %c8_98 = arith.constant 8 : index
      %161 = vector.load %arg9[%c0_97, %c8_98] : memref<8x32xf32, #tpu.memory_space<vmem>>, vector<8x8xf32>
      tpu.vector_store %arg9[%c0_97, %c8_98], %160 {strides = array<i32>} : memref<8x32xf32, #tpu.memory_space<vmem>>, vector<8x8xf32>,
      %c0_99 = arith.constant 0 : index
      %c16_100 = arith.constant 16 : index
      %162 = vector.load %arg9[%c0_99, %c16_100] : memref<8x32xf32, #tpu.memory_space<vmem>>, vector<8x8xf32>
      %c2_101 = arith.constant 2 : index
      %c0_102 = arith.constant 0 : index
      %c0_103 = arith.constant 0 : index
      %163 = vector.load %arg8[%c2_101, %c0_102, %c0_103] : memref<4x8x1xf32, #tpu.memory_space<vmem>>, vector<1x8x1xf32>
      %164 = vector.shape_cast %163 : vector<1x8x1xf32> to vector<8x1xf32>
      %165 = tpu.reciprocal %164 {approx = true} : vector<8x1xf32> -> vector<8x1xf32>
      %166 = vector.broadcast %165 : vector<8x1xf32> to vector<8x8xf32>
      %167 = arith.mulf %162, %166 : vector<8x8xf32>
      %c0_104 = arith.constant 0 : index
      %c16_105 = arith.constant 16 : index
      %168 = vector.load %arg9[%c0_104, %c16_105] : memref<8x32xf32, #tpu.memory_space<vmem>>, vector<8x8xf32>
      tpu.vector_store %arg9[%c0_104, %c16_105], %167 {strides = array<i32>} : memref<8x32xf32, #tpu.memory_space<vmem>>, vector<8x8xf32>,
      %c0_106 = arith.constant 0 : index
      %c24_107 = arith.constant 24 : index
      %169 = vector.load %arg9[%c0_106, %c24_107] : memref<8x32xf32, #tpu.memory_space<vmem>>, vector<8x8xf32>
      %c3_108 = arith.constant 3 : index
      %c0_109 = arith.constant 0 : index
      %c0_110 = arith.constant 0 : index
      %170 = vector.load %arg8[%c3_108, %c0_109, %c0_110] : memref<4x8x1xf32, #tpu.memory_space<vmem>>, vector<1x8x1xf32>
      %171 = vector.shape_cast %170 : vector<1x8x1xf32> to vector<8x1xf32>
      %172 = tpu.reciprocal %171 {approx = true} : vector<8x1xf32> -> vector<8x1xf32>
      %173 = vector.broadcast %172 : vector<8x1xf32> to vector<8x8xf32>
      %174 = arith.mulf %169, %173 : vector<8x8xf32>
      %c0_111 = arith.constant 0 : index
      %c24_112 = arith.constant 24 : index
      %175 = vector.load %arg9[%c0_111, %c24_112] : memref<8x32xf32, #tpu.memory_space<vmem>>, vector<8x8xf32>
      tpu.vector_store %arg9[%c0_111, %c24_112], %174 {strides = array<i32>} : memref<8x32xf32, #tpu.memory_space<vmem>>, vector<8x8xf32>,
      %c0_113 = arith.constant 0 : index
      %c0_114 = arith.constant 0 : index
      %176 = vector.load %arg9[%c0_113, %c0_114] : memref<8x32xf32, #tpu.memory_space<vmem>>, vector<8x32xf32>
      %177 = arith.truncf %176 : vector<8x32xf32> to vector<8x32xbf16>
      %c0_115 = arith.constant 0 : index
      %c0_116 = arith.constant 0 : index
      %c0_117 = arith.constant 0 : index
      %178 = vector.load %arg6[%c0_115, %c0_116, %c0_117] : memref<1x8x32xbf16, #tpu.memory_space<vmem>>, vector<1x8x32xbf16>
      %179 = vector.shape_cast %178 : vector<1x8x32xbf16> to vector<8x32xbf16>
      %180 = vector.shape_cast %177 : vector<8x32xbf16> to vector<1x8x32xbf16>
      tpu.vector_store %arg6[%c0_115, %c0_116, %c0_117], %180 {strides = array<i32>} : memref<1x8x32xbf16, #tpu.memory_space<vmem>>, vector<1x8x32xbf16>,
    } else {
    }
    return
  }
  func.func @transform_0(%arg0: i32, %arg1: i32, %arg2: i32) -> (i32, i32, i32) {
    %c0_i32 = arith.constant 0 : i32
    %c0_i32_0 = arith.constant 0 : i32
    return %arg0, %arg1, %c0_i32 : i32, i32, i32
  }
  func.func @transform_1(%arg0: i32, %arg1: i32, %arg2: i32) -> (i32, i32, i32) {
    %c0_i32 = arith.constant 0 : i32
    %c0_i32_0 = arith.constant 0 : i32
    return %arg0, %arg2, %c0_i32 : i32, i32, i32
  }
  func.func @transform_2(%arg0: i32, %arg1: i32, %arg2: i32) -> (i32, i32, i32) {
    %c0_i32 = arith.constant 0 : i32
    %c0_i32_0 = arith.constant 0 : i32
    return %arg0, %arg2, %c0_i32 : i32, i32, i32
  }
  func.func @transform_3(%arg0: i32, %arg1: i32, %arg2: i32) -> (i32, i32, i32) {
    %c0_i32 = arith.constant 0 : i32
    %c0_i32_0 = arith.constant 0 : i32
    return %arg0, %arg1, %c0_i32 : i32, i32, i32
  }
}

module attributes {stable_mosaic.version = 11 : i64} {
  func.func @_matmul_res_ln_kernel(%arg0: i32, %arg1: i32, %arg2: memref<16x32xbf16, #tpu.memory_space<vmem>>, %arg3: memref<32x32xbf16, #tpu.memory_space<vmem>>, %arg4: memref<1x32xf32, #tpu.memory_space<vmem>>, %arg5: memref<16x32xbf16, #tpu.memory_space<vmem>>, %arg6: memref<1x32xf32, #tpu.memory_space<vmem>>, %arg7: memref<1x32xf32, #tpu.memory_space<vmem>>, %arg8: memref<16x32xbf16, #tpu.memory_space<vmem>>, %arg9: memref<16x32xf32, #tpu.memory_space<vmem>>) attributes {dimension_semantics = [#tpu.dimension_semantics<parallel>, #tpu.dimension_semantics<arbitrary>], iteration_bounds = array<i64: 1, 1>, scalar_prefetch = 0 : i64, scratch_operands = 1 : i64, tpu.core_type = #tpu.core_type<tc>, window_params = [{transform_indices = @transform_0, window_bounds = array<i64: 16, 32>}, {transform_indices = @transform_1, window_bounds = array<i64: 32, 32>}, {pipeline_mode = #tpu.pipeline_mode<synchronous>, transform_indices = @transform_2, window_bounds = array<i64: 1, 32>}, {transform_indices = @transform_3, window_bounds = array<i64: 16, 32>}, {pipeline_mode = #tpu.pipeline_mode<synchronous>, transform_indices = @transform_4, window_bounds = array<i64: 1, 32>}, {pipeline_mode = #tpu.pipeline_mode<synchronous>, transform_indices = @transform_5, window_bounds = array<i64: 1, 32>}, {transform_indices = @transform_6, window_bounds = array<i64: 16, 32>}]} {
    %c0_i32 = arith.constant 0 : i32
    %0 = arith.cmpi eq, %arg1, %c0_i32 : i32
    %1 = arith.extui %0 : i1 to i32
    %c0_i32_0 = arith.constant 0 : i32
    %2 = arith.cmpi ne, %1, %c0_i32_0 : i32
    scf.if %2 {
      %cst_10 = arith.constant 0.000000e+00 : f32
      %12 = vector.broadcast %cst_10 : f32 to vector<16x32xf32>
      %c0_11 = arith.constant 0 : index
      %c0_12 = arith.constant 0 : index
      %13 = vector.load %arg9[%c0_11, %c0_12] : memref<16x32xf32, #tpu.memory_space<vmem>>, vector<16x32xf32>
      tpu.vector_store %arg9[%c0_11, %c0_12], %12 {strides = array<i32>} : memref<16x32xf32, #tpu.memory_space<vmem>>, vector<16x32xf32>,
    } else {
    }
    %c0 = arith.constant 0 : index
    %c0_1 = arith.constant 0 : index
    %3 = vector.load %arg9[%c0, %c0_1] : memref<16x32xf32, #tpu.memory_space<vmem>>, vector<16x32xf32>
    %c0_2 = arith.constant 0 : index
    %c0_3 = arith.constant 0 : index
    %4 = vector.load %arg2[%c0_2, %c0_3] : memref<16x32xbf16, #tpu.memory_space<vmem>>, vector<16x32xbf16>
    %c0_4 = arith.constant 0 : index
    %c0_5 = arith.constant 0 : index
    %5 = vector.load %arg3[%c0_4, %c0_5] : memref<32x32xbf16, #tpu.memory_space<vmem>>, vector<32x32xbf16>
    %cst = arith.constant dense<0.000000e+00> : vector<16x32xf32>
    %6 = tpu.matmul %4, %5, %cst {dimension_numbers = #tpu.dot_dimension_numbers<[1], [0], [0], [1], [0, 0, 1, 1], [], []>} : vector<16x32xbf16>, vector<32x32xbf16>, vector<16x32xf32> -> vector<16x32xf32>
    %7 = arith.addf %3, %6 : vector<16x32xf32>
    %c0_6 = arith.constant 0 : index
    %c0_7 = arith.constant 0 : index
    %8 = vector.load %arg9[%c0_6, %c0_7] : memref<16x32xf32, #tpu.memory_space<vmem>>, vector<16x32xf32>
    tpu.vector_store %arg9[%c0_6, %c0_7], %7 {strides = array<i32>} : memref<16x32xf32, #tpu.memory_space<vmem>>, vector<16x32xf32>,
    %c0_i32_8 = arith.constant 0 : i32
    %9 = arith.cmpi eq, %arg1, %c0_i32_8 : i32
    %10 = arith.extui %9 : i1 to i32
    %c0_i32_9 = arith.constant 0 : i32
    %11 = arith.cmpi ne, %10, %c0_i32_9 : i32
    scf.if %11 {
      %c0_10 = arith.constant 0 : index
      %c0_11 = arith.constant 0 : index
      %12 = vector.load %arg9[%c0_10, %c0_11] : memref<16x32xf32, #tpu.memory_space<vmem>>, vector<16x32xf32>
      %c0_12 = arith.constant 0 : index
      %c0_13 = arith.constant 0 : index
      %13 = vector.load %arg4[%c0_12, %c0_13] : memref<1x32xf32, #tpu.memory_space<vmem>>, vector<1x32xf32>
      %14 = vector.broadcast %13 : vector<1x32xf32> to vector<16x32xf32>
      %15 = arith.addf %12, %14 : vector<16x32xf32>
      %c0_14 = arith.constant 0 : index
      %c0_15 = arith.constant 0 : index
      %16 = vector.load %arg5[%c0_14, %c0_15] : memref<16x32xbf16, #tpu.memory_space<vmem>>, vector<16x32xbf16>
      %17 = arith.extf %16 : vector<16x32xbf16> to vector<16x32xf32>
      %18 = arith.addf %15, %17 : vector<16x32xf32>
      %cst_16 = arith.constant dense<0.000000e+00> : vector<16xf32>
      %19 = vector.multi_reduction <add>, %18, %cst_16 [1] : vector<16x32xf32> to vector<16xf32>
      %20 = vector.shape_cast %19 : vector<16xf32> to vector<16x1xf32>
      %cst_17 = arith.constant 3.200000e+01 : f32
      %21 = vector.broadcast %cst_17 : f32 to vector<16x1xf32>
      %22 = arith.divf %20, %21 : vector<16x1xf32>
      %23 = vector.broadcast %22 : vector<16x1xf32> to vector<16x32xf32>
      %24 = arith.subf %18, %23 : vector<16x32xf32>
      %25 = arith.mulf %24, %24 : vector<16x32xf32>
      %cst_18 = arith.constant dense<0.000000e+00> : vector<16xf32>
      %26 = vector.multi_reduction <add>, %25, %cst_18 [1] : vector<16x32xf32> to vector<16xf32>
      %27 = vector.shape_cast %26 : vector<16xf32> to vector<16x1xf32>
      %cst_19 = arith.constant 3.200000e+01 : f32
      %28 = vector.broadcast %cst_19 : f32 to vector<16x1xf32>
      %29 = arith.divf %27, %28 : vector<16x1xf32>
      %30 = vector.broadcast %22 : vector<16x1xf32> to vector<16x32xf32>
      %31 = arith.subf %18, %30 : vector<16x32xf32>
      %cst_20 = arith.constant 9.99999974E-6 : f32
      %32 = vector.broadcast %cst_20 : f32 to vector<16x1xf32>
      %33 = arith.addf %29, %32 : vector<16x1xf32>
      %34 = math.rsqrt %33 : vector<16x1xf32>
      %35 = vector.broadcast %34 : vector<16x1xf32> to vector<16x32xf32>
      %36 = arith.mulf %31, %35 : vector<16x32xf32>
      %c0_21 = arith.constant 0 : index
      %c0_22 = arith.constant 0 : index
      %37 = vector.load %arg6[%c0_21, %c0_22] : memref<1x32xf32, #tpu.memory_space<vmem>>, vector<1x32xf32>
      %38 = vector.broadcast %37 : vector<1x32xf32> to vector<16x32xf32>
      %39 = arith.mulf %36, %38 : vector<16x32xf32>
      %c0_23 = arith.constant 0 : index
      %c0_24 = arith.constant 0 : index
      %40 = vector.load %arg7[%c0_23, %c0_24] : memref<1x32xf32, #tpu.memory_space<vmem>>, vector<1x32xf32>
      %41 = vector.broadcast %40 : vector<1x32xf32> to vector<16x32xf32>
      %42 = arith.addf %39, %41 : vector<16x32xf32>
      %43 = arith.truncf %42 : vector<16x32xf32> to vector<16x32xbf16>
      %c0_25 = arith.constant 0 : index
      %c0_26 = arith.constant 0 : index
      %44 = vector.load %arg8[%c0_25, %c0_26] : memref<16x32xbf16, #tpu.memory_space<vmem>>, vector<16x32xbf16>
      tpu.vector_store %arg8[%c0_25, %c0_26], %43 {strides = array<i32>} : memref<16x32xbf16, #tpu.memory_space<vmem>>, vector<16x32xbf16>,
    } else {
    }
    return
  }
  func.func @transform_0(%arg0: i32, %arg1: i32) -> (i32, i32) {
    %c0_i32 = arith.constant 0 : i32
    return %arg0, %arg1 : i32, i32
  }
  func.func @transform_1(%arg0: i32, %arg1: i32) -> (i32, i32) {
    %c0_i32 = arith.constant 0 : i32
    %c0_i32_0 = arith.constant 0 : i32
    return %arg1, %c0_i32 : i32, i32
  }
  func.func @transform_2(%arg0: i32, %arg1: i32) -> (i32, i32) {
    %c0_i32 = arith.constant 0 : i32
    %c0_i32_0 = arith.constant 0 : i32
    %c0_i32_1 = arith.constant 0 : i32
    return %c0_i32, %c0_i32_0 : i32, i32
  }
  func.func @transform_3(%arg0: i32, %arg1: i32) -> (i32, i32) {
    %c0_i32 = arith.constant 0 : i32
    %c0_i32_0 = arith.constant 0 : i32
    return %arg0, %c0_i32 : i32, i32
  }
  func.func @transform_4(%arg0: i32, %arg1: i32) -> (i32, i32) {
    %c0_i32 = arith.constant 0 : i32
    %c0_i32_0 = arith.constant 0 : i32
    %c0_i32_1 = arith.constant 0 : i32
    return %c0_i32, %c0_i32_0 : i32, i32
  }
  func.func @transform_5(%arg0: i32, %arg1: i32) -> (i32, i32) {
    %c0_i32 = arith.constant 0 : i32
    %c0_i32_0 = arith.constant 0 : i32
    %c0_i32_1 = arith.constant 0 : i32
    return %c0_i32, %c0_i32_0 : i32, i32
  }
  func.func @transform_6(%arg0: i32, %arg1: i32) -> (i32, i32) {
    %c0_i32 = arith.constant 0 : i32
    %c0_i32_0 = arith.constant 0 : i32
    return %arg0, %c0_i32 : i32, i32
  }
}

module attributes {stable_mosaic.version = 11 : i64} {
  func.func @_matmul_res_ln_kernel(%arg0: i32, %arg1: i32, %arg2: memref<16x64xbf16, #tpu.memory_space<vmem>>, %arg3: memref<64x32xbf16, #tpu.memory_space<vmem>>, %arg4: memref<1x32xf32, #tpu.memory_space<vmem>>, %arg5: memref<16x32xbf16, #tpu.memory_space<vmem>>, %arg6: memref<1x32xf32, #tpu.memory_space<vmem>>, %arg7: memref<1x32xf32, #tpu.memory_space<vmem>>, %arg8: memref<16x32xbf16, #tpu.memory_space<vmem>>, %arg9: memref<16x32xf32, #tpu.memory_space<vmem>>) attributes {dimension_semantics = [#tpu.dimension_semantics<parallel>, #tpu.dimension_semantics<arbitrary>], iteration_bounds = array<i64: 1, 1>, scalar_prefetch = 0 : i64, scratch_operands = 1 : i64, tpu.core_type = #tpu.core_type<tc>, window_params = [{transform_indices = @transform_0, window_bounds = array<i64: 16, 64>}, {transform_indices = @transform_1, window_bounds = array<i64: 64, 32>}, {pipeline_mode = #tpu.pipeline_mode<synchronous>, transform_indices = @transform_2, window_bounds = array<i64: 1, 32>}, {transform_indices = @transform_3, window_bounds = array<i64: 16, 32>}, {pipeline_mode = #tpu.pipeline_mode<synchronous>, transform_indices = @transform_4, window_bounds = array<i64: 1, 32>}, {pipeline_mode = #tpu.pipeline_mode<synchronous>, transform_indices = @transform_5, window_bounds = array<i64: 1, 32>}, {transform_indices = @transform_6, window_bounds = array<i64: 16, 32>}]} {
    %c0_i32 = arith.constant 0 : i32
    %0 = arith.cmpi eq, %arg1, %c0_i32 : i32
    %1 = arith.extui %0 : i1 to i32
    %c0_i32_0 = arith.constant 0 : i32
    %2 = arith.cmpi ne, %1, %c0_i32_0 : i32
    scf.if %2 {
      %cst_10 = arith.constant 0.000000e+00 : f32
      %12 = vector.broadcast %cst_10 : f32 to vector<16x32xf32>
      %c0_11 = arith.constant 0 : index
      %c0_12 = arith.constant 0 : index
      %13 = vector.load %arg9[%c0_11, %c0_12] : memref<16x32xf32, #tpu.memory_space<vmem>>, vector<16x32xf32>
      tpu.vector_store %arg9[%c0_11, %c0_12], %12 {strides = array<i32>} : memref<16x32xf32, #tpu.memory_space<vmem>>, vector<16x32xf32>,
    } else {
    }
    %c0 = arith.constant 0 : index
    %c0_1 = arith.constant 0 : index
    %3 = vector.load %arg9[%c0, %c0_1] : memref<16x32xf32, #tpu.memory_space<vmem>>, vector<16x32xf32>
    %c0_2 = arith.constant 0 : index
    %c0_3 = arith.constant 0 : index
    %4 = vector.load %arg2[%c0_2, %c0_3] : memref<16x64xbf16, #tpu.memory_space<vmem>>, vector<16x64xbf16>
    %c0_4 = arith.constant 0 : index
    %c0_5 = arith.constant 0 : index
    %5 = vector.load %arg3[%c0_4, %c0_5] : memref<64x32xbf16, #tpu.memory_space<vmem>>, vector<64x32xbf16>
    %cst = arith.constant dense<0.000000e+00> : vector<16x32xf32>
    %6 = tpu.matmul %4, %5, %cst {dimension_numbers = #tpu.dot_dimension_numbers<[1], [0], [0], [1], [0, 0, 1, 1], [], []>} : vector<16x64xbf16>, vector<64x32xbf16>, vector<16x32xf32> -> vector<16x32xf32>
    %7 = arith.addf %3, %6 : vector<16x32xf32>
    %c0_6 = arith.constant 0 : index
    %c0_7 = arith.constant 0 : index
    %8 = vector.load %arg9[%c0_6, %c0_7] : memref<16x32xf32, #tpu.memory_space<vmem>>, vector<16x32xf32>
    tpu.vector_store %arg9[%c0_6, %c0_7], %7 {strides = array<i32>} : memref<16x32xf32, #tpu.memory_space<vmem>>, vector<16x32xf32>,
    %c0_i32_8 = arith.constant 0 : i32
    %9 = arith.cmpi eq, %arg1, %c0_i32_8 : i32
    %10 = arith.extui %9 : i1 to i32
    %c0_i32_9 = arith.constant 0 : i32
    %11 = arith.cmpi ne, %10, %c0_i32_9 : i32
    scf.if %11 {
      %c0_10 = arith.constant 0 : index
      %c0_11 = arith.constant 0 : index
      %12 = vector.load %arg9[%c0_10, %c0_11] : memref<16x32xf32, #tpu.memory_space<vmem>>, vector<16x32xf32>
      %c0_12 = arith.constant 0 : index
      %c0_13 = arith.constant 0 : index
      %13 = vector.load %arg4[%c0_12, %c0_13] : memref<1x32xf32, #tpu.memory_space<vmem>>, vector<1x32xf32>
      %14 = vector.broadcast %13 : vector<1x32xf32> to vector<16x32xf32>
      %15 = arith.addf %12, %14 : vector<16x32xf32>
      %c0_14 = arith.constant 0 : index
      %c0_15 = arith.constant 0 : index
      %16 = vector.load %arg5[%c0_14, %c0_15] : memref<16x32xbf16, #tpu.memory_space<vmem>>, vector<16x32xbf16>
      %17 = arith.extf %16 : vector<16x32xbf16> to vector<16x32xf32>
      %18 = arith.addf %15, %17 : vector<16x32xf32>
      %cst_16 = arith.constant dense<0.000000e+00> : vector<16xf32>
      %19 = vector.multi_reduction <add>, %18, %cst_16 [1] : vector<16x32xf32> to vector<16xf32>
      %20 = vector.shape_cast %19 : vector<16xf32> to vector<16x1xf32>
      %cst_17 = arith.constant 3.200000e+01 : f32
      %21 = vector.broadcast %cst_17 : f32 to vector<16x1xf32>
      %22 = arith.divf %20, %21 : vector<16x1xf32>
      %23 = vector.broadcast %22 : vector<16x1xf32> to vector<16x32xf32>
      %24 = arith.subf %18, %23 : vector<16x32xf32>
      %25 = arith.mulf %24, %24 : vector<16x32xf32>
      %cst_18 = arith.constant dense<0.000000e+00> : vector<16xf32>
      %26 = vector.multi_reduction <add>, %25, %cst_18 [1] : vector<16x32xf32> to vector<16xf32>
      %27 = vector.shape_cast %26 : vector<16xf32> to vector<16x1xf32>
      %cst_19 = arith.constant 3.200000e+01 : f32
      %28 = vector.broadcast %cst_19 : f32 to vector<16x1xf32>
      %29 = arith.divf %27, %28 : vector<16x1xf32>
      %30 = vector.broadcast %22 : vector<16x1xf32> to vector<16x32xf32>
      %31 = arith.subf %18, %30 : vector<16x32xf32>
      %cst_20 = arith.constant 9.99999974E-6 : f32
      %32 = vector.broadcast %cst_20 : f32 to vector<16x1xf32>
      %33 = arith.addf %29, %32 : vector<16x1xf32>
      %34 = math.rsqrt %33 : vector<16x1xf32>
      %35 = vector.broadcast %34 : vector<16x1xf32> to vector<16x32xf32>
      %36 = arith.mulf %31, %35 : vector<16x32xf32>
      %c0_21 = arith.constant 0 : index
      %c0_22 = arith.constant 0 : index
      %37 = vector.load %arg6[%c0_21, %c0_22] : memref<1x32xf32, #tpu.memory_space<vmem>>, vector<1x32xf32>
      %38 = vector.broadcast %37 : vector<1x32xf32> to vector<16x32xf32>
      %39 = arith.mulf %36, %38 : vector<16x32xf32>
      %c0_23 = arith.constant 0 : index
      %c0_24 = arith.constant 0 : index
      %40 = vector.load %arg7[%c0_23, %c0_24] : memref<1x32xf32, #tpu.memory_space<vmem>>, vector<1x32xf32>
      %41 = vector.broadcast %40 : vector<1x32xf32> to vector<16x32xf32>
      %42 = arith.addf %39, %41 : vector<16x32xf32>
      %43 = arith.truncf %42 : vector<16x32xf32> to vector<16x32xbf16>
      %c0_25 = arith.constant 0 : index
      %c0_26 = arith.constant 0 : index
      %44 = vector.load %arg8[%c0_25, %c0_26] : memref<16x32xbf16, #tpu.memory_space<vmem>>, vector<16x32xbf16>
      tpu.vector_store %arg8[%c0_25, %c0_26], %43 {strides = array<i32>} : memref<16x32xbf16, #tpu.memory_space<vmem>>, vector<16x32xbf16>,
    } else {
    }
    return
  }
  func.func @transform_0(%arg0: i32, %arg1: i32) -> (i32, i32) {
    %c0_i32 = arith.constant 0 : i32
    return %arg0, %arg1 : i32, i32
  }
  func.func @transform_1(%arg0: i32, %arg1: i32) -> (i32, i32) {
    %c0_i32 = arith.constant 0 : i32
    %c0_i32_0 = arith.constant 0 : i32
    return %arg1, %c0_i32 : i32, i32
  }
  func.func @transform_2(%arg0: i32, %arg1: i32) -> (i32, i32) {
    %c0_i32 = arith.constant 0 : i32
    %c0_i32_0 = arith.constant 0 : i32
    %c0_i32_1 = arith.constant 0 : i32
    return %c0_i32, %c0_i32_0 : i32, i32
  }
  func.func @transform_3(%arg0: i32, %arg1: i32) -> (i32, i32) {
    %c0_i32 = arith.constant 0 : i32
    %c0_i32_0 = arith.constant 0 : i32
    return %arg0, %c0_i32 : i32, i32
  }
  func.func @transform_4(%arg0: i32, %arg1: i32) -> (i32, i32) {
    %c0_i32 = arith.constant 0 : i32
    %c0_i32_0 = arith.constant 0 : i32
    %c0_i32_1 = arith.constant 0 : i32
    return %c0_i32, %c0_i32_0 : i32, i32
  }
  func.func @transform_5(%arg0: i32, %arg1: i32) -> (i32, i32) {
    %c0_i32 = arith.constant 0 : i32
    %c0_i32_0 = arith.constant 0 : i32
    %c0_i32_1 = arith.constant 0 : i32
    return %c0_i32, %c0_i32_0 : i32, i32
  }
  func.func @transform_6(%arg0: i32, %arg1: i32) -> (i32, i32) {
    %c0_i32 = arith.constant 0 : i32
    %c0_i32_0 = arith.constant 0 : i32
    return %arg0, %c0_i32 : i32, i32
  }
}

module attributes {stable_mosaic.version = 11 : i64} {
  func.func @_matmul_kernel(%arg0: i32, %arg1: i32, %arg2: i32, %arg3: memref<16x32xbf16, #tpu.memory_space<vmem>>, %arg4: memref<32x64xbf16, #tpu.memory_space<vmem>>, %arg5: memref<1x64xf32, #tpu.memory_space<vmem>>, %arg6: memref<16x64xbf16, #tpu.memory_space<vmem>>, %arg7: memref<16x64xf32, #tpu.memory_space<vmem>>) attributes {dimension_semantics = [#tpu.dimension_semantics<parallel>, #tpu.dimension_semantics<parallel>, #tpu.dimension_semantics<arbitrary>], iteration_bounds = array<i64: 1, 1, 1>, scalar_prefetch = 0 : i64, scratch_operands = 1 : i64, tpu.core_type = #tpu.core_type<tc>, window_params = [{transform_indices = @transform_0, window_bounds = array<i64: 16, 32>}, {transform_indices = @transform_1, window_bounds = array<i64: 32, 64>}, {transform_indices = @transform_2, window_bounds = array<i64: 1, 64>}, {transform_indices = @transform_3, window_bounds = array<i64: 16, 64>}]} {
    %c0_i32 = arith.constant 0 : i32
    %0 = arith.cmpi eq, %arg2, %c0_i32 : i32
    %1 = arith.extui %0 : i1 to i32
    %c0_i32_0 = arith.constant 0 : i32
    %2 = arith.cmpi ne, %1, %c0_i32_0 : i32
    scf.if %2 {
      %cst_10 = arith.constant 0.000000e+00 : f32
      %12 = vector.broadcast %cst_10 : f32 to vector<16x64xf32>
      %c0_11 = arith.constant 0 : index
      %c0_12 = arith.constant 0 : index
      %13 = vector.load %arg7[%c0_11, %c0_12] : memref<16x64xf32, #tpu.memory_space<vmem>>, vector<16x64xf32>
      tpu.vector_store %arg7[%c0_11, %c0_12], %12 {strides = array<i32>} : memref<16x64xf32, #tpu.memory_space<vmem>>, vector<16x64xf32>,
    } else {
    }
    %c0 = arith.constant 0 : index
    %c0_1 = arith.constant 0 : index
    %3 = vector.load %arg7[%c0, %c0_1] : memref<16x64xf32, #tpu.memory_space<vmem>>, vector<16x64xf32>
    %c0_2 = arith.constant 0 : index
    %c0_3 = arith.constant 0 : index
    %4 = vector.load %arg3[%c0_2, %c0_3] : memref<16x32xbf16, #tpu.memory_space<vmem>>, vector<16x32xbf16>
    %c0_4 = arith.constant 0 : index
    %c0_5 = arith.constant 0 : index
    %5 = vector.load %arg4[%c0_4, %c0_5] : memref<32x64xbf16, #tpu.memory_space<vmem>>, vector<32x64xbf16>
    %cst = arith.constant dense<0.000000e+00> : vector<16x64xf32>
    %6 = tpu.matmul %4, %5, %cst {dimension_numbers = #tpu.dot_dimension_numbers<[1], [0], [0], [1], [0, 0, 1, 1], [], []>} : vector<16x32xbf16>, vector<32x64xbf16>, vector<16x64xf32> -> vector<16x64xf32>
    %7 = arith.addf %3, %6 : vector<16x64xf32>
    %c0_6 = arith.constant 0 : index
    %c0_7 = arith.constant 0 : index
    %8 = vector.load %arg7[%c0_6, %c0_7] : memref<16x64xf32, #tpu.memory_space<vmem>>, vector<16x64xf32>
    tpu.vector_store %arg7[%c0_6, %c0_7], %7 {strides = array<i32>} : memref<16x64xf32, #tpu.memory_space<vmem>>, vector<16x64xf32>,
    %c0_i32_8 = arith.constant 0 : i32
    %9 = arith.cmpi eq, %arg2, %c0_i32_8 : i32
    %10 = arith.extui %9 : i1 to i32
    %c0_i32_9 = arith.constant 0 : i32
    %11 = arith.cmpi ne, %10, %c0_i32_9 : i32
    scf.if %11 {
      %c0_10 = arith.constant 0 : index
      %c0_11 = arith.constant 0 : index
      %12 = vector.load %arg7[%c0_10, %c0_11] : memref<16x64xf32, #tpu.memory_space<vmem>>, vector<16x64xf32>
      %c0_12 = arith.constant 0 : index
      %c0_13 = arith.constant 0 : index
      %13 = vector.load %arg5[%c0_12, %c0_13] : memref<1x64xf32, #tpu.memory_space<vmem>>, vector<1x64xf32>
      %14 = vector.broadcast %13 : vector<1x64xf32> to vector<16x64xf32>
      %15 = arith.addf %12, %14 : vector<16x64xf32>
      %16 = arith.truncf %15 : vector<16x64xf32> to vector<16x64xbf16>
      %c0_14 = arith.constant 0 : index
      %c0_15 = arith.constant 0 : index
      %17 = vector.load %arg6[%c0_14, %c0_15] : memref<16x64xbf16, #tpu.memory_space<vmem>>, vector<16x64xbf16>
      tpu.vector_store %arg6[%c0_14, %c0_15], %16 {strides = array<i32>} : memref<16x64xbf16, #tpu.memory_space<vmem>>, vector<16x64xbf16>,
    } else {
    }
    return
  }
  func.func @transform_0(%arg0: i32, %arg1: i32, %arg2: i32) -> (i32, i32) {
    %c0_i32 = arith.constant 0 : i32
    return %arg0, %arg2 : i32, i32
  }
  func.func @transform_1(%arg0: i32, %arg1: i32, %arg2: i32) -> (i32, i32) {
    %c0_i32 = arith.constant 0 : i32
    return %arg2, %arg1 : i32, i32
  }
  func.func @transform_2(%arg0: i32, %arg1: i32, %arg2: i32) -> (i32, i32) {
    %c0_i32 = arith.constant 0 : i32
    %c0_i32_0 = arith.constant 0 : i32
    return %c0_i32, %arg1 : i32, i32
  }
  func.func @transform_3(%arg0: i32, %arg1: i32, %arg2: i32) -> (i32, i32) {
    %c0_i32 = arith.constant 0 : i32
    return %arg0, %arg1 : i32, i32
  }
}

module attributes {stable_mosaic.version = 11 : i64} {
  func.func @_matmul_kernel(%arg0: i32, %arg1: i32, %arg2: i32, %arg3: memref<16x32xbf16, #tpu.memory_space<vmem>>, %arg4: memref<32x32xbf16, #tpu.memory_space<vmem>>, %arg5: memref<1x32xf32, #tpu.memory_space<vmem>>, %arg6: memref<16x32xbf16, #tpu.memory_space<vmem>>, %arg7: memref<16x32xf32, #tpu.memory_space<vmem>>) attributes {dimension_semantics = [#tpu.dimension_semantics<parallel>, #tpu.dimension_semantics<parallel>, #tpu.dimension_semantics<arbitrary>], iteration_bounds = array<i64: 1, 1, 1>, scalar_prefetch = 0 : i64, scratch_operands = 1 : i64, tpu.core_type = #tpu.core_type<tc>, window_params = [{transform_indices = @transform_0, window_bounds = array<i64: 16, 32>}, {transform_indices = @transform_1, window_bounds = array<i64: 32, 32>}, {transform_indices = @transform_2, window_bounds = array<i64: 1, 32>}, {transform_indices = @transform_3, window_bounds = array<i64: 16, 32>}]} {
    %c0_i32 = arith.constant 0 : i32
    %0 = arith.cmpi eq, %arg2, %c0_i32 : i32
    %1 = arith.extui %0 : i1 to i32
    %c0_i32_0 = arith.constant 0 : i32
    %2 = arith.cmpi ne, %1, %c0_i32_0 : i32
    scf.if %2 {
      %cst_10 = arith.constant 0.000000e+00 : f32
      %12 = vector.broadcast %cst_10 : f32 to vector<16x32xf32>
      %c0_11 = arith.constant 0 : index
      %c0_12 = arith.constant 0 : index
      %13 = vector.load %arg7[%c0_11, %c0_12] : memref<16x32xf32, #tpu.memory_space<vmem>>, vector<16x32xf32>
      tpu.vector_store %arg7[%c0_11, %c0_12], %12 {strides = array<i32>} : memref<16x32xf32, #tpu.memory_space<vmem>>, vector<16x32xf32>,
    } else {
    }
    %c0 = arith.constant 0 : index
    %c0_1 = arith.constant 0 : index
    %3 = vector.load %arg7[%c0, %c0_1] : memref<16x32xf32, #tpu.memory_space<vmem>>, vector<16x32xf32>
    %c0_2 = arith.constant 0 : index
    %c0_3 = arith.constant 0 : index
    %4 = vector.load %arg3[%c0_2, %c0_3] : memref<16x32xbf16, #tpu.memory_space<vmem>>, vector<16x32xbf16>
    %c0_4 = arith.constant 0 : index
    %c0_5 = arith.constant 0 : index
    %5 = vector.load %arg4[%c0_4, %c0_5] : memref<32x32xbf16, #tpu.memory_space<vmem>>, vector<32x32xbf16>
    %cst = arith.constant dense<0.000000e+00> : vector<16x32xf32>
    %6 = tpu.matmul %4, %5, %cst {dimension_numbers = #tpu.dot_dimension_numbers<[1], [0], [0], [1], [0, 0, 1, 1], [], []>} : vector<16x32xbf16>, vector<32x32xbf16>, vector<16x32xf32> -> vector<16x32xf32>
    %7 = arith.addf %3, %6 : vector<16x32xf32>
    %c0_6 = arith.constant 0 : index
    %c0_7 = arith.constant 0 : index
    %8 = vector.load %arg7[%c0_6, %c0_7] : memref<16x32xf32, #tpu.memory_space<vmem>>, vector<16x32xf32>
    tpu.vector_store %arg7[%c0_6, %c0_7], %7 {strides = array<i32>} : memref<16x32xf32, #tpu.memory_space<vmem>>, vector<16x32xf32>,
    %c0_i32_8 = arith.constant 0 : i32
    %9 = arith.cmpi eq, %arg2, %c0_i32_8 : i32
    %10 = arith.extui %9 : i1 to i32
    %c0_i32_9 = arith.constant 0 : i32
    %11 = arith.cmpi ne, %10, %c0_i32_9 : i32
    scf.if %11 {
      %c0_10 = arith.constant 0 : index
      %c0_11 = arith.constant 0 : index
      %12 = vector.load %arg7[%c0_10, %c0_11] : memref<16x32xf32, #tpu.memory_space<vmem>>, vector<16x32xf32>
      %c0_12 = arith.constant 0 : index
      %c0_13 = arith.constant 0 : index
      %13 = vector.load %arg5[%c0_12, %c0_13] : memref<1x32xf32, #tpu.memory_space<vmem>>, vector<1x32xf32>
      %14 = vector.broadcast %13 : vector<1x32xf32> to vector<16x32xf32>
      %15 = arith.addf %12, %14 : vector<16x32xf32>
      %16 = arith.truncf %15 : vector<16x32xf32> to vector<16x32xbf16>
      %c0_14 = arith.constant 0 : index
      %c0_15 = arith.constant 0 : index
      %17 = vector.load %arg6[%c0_14, %c0_15] : memref<16x32xbf16, #tpu.memory_space<vmem>>, vector<16x32xbf16>
      tpu.vector_store %arg6[%c0_14, %c0_15], %16 {strides = array<i32>} : memref<16x32xbf16, #tpu.memory_space<vmem>>, vector<16x32xbf16>,
    } else {
    }
    return
  }
  func.func @transform_0(%arg0: i32, %arg1: i32, %arg2: i32) -> (i32, i32) {
    %c0_i32 = arith.constant 0 : i32
    return %arg0, %arg2 : i32, i32
  }
  func.func @transform_1(%arg0: i32, %arg1: i32, %arg2: i32) -> (i32, i32) {
    %c0_i32 = arith.constant 0 : i32
    return %arg2, %arg1 : i32, i32
  }
  func.func @transform_2(%arg0: i32, %arg1: i32, %arg2: i32) -> (i32, i32) {
    %c0_i32 = arith.constant 0 : i32
    %c0_i32_0 = arith.constant 0 : i32
    return %c0_i32, %arg1 : i32, i32
  }
  func.func @transform_3(%arg0: i32, %arg1: i32, %arg2: i32) -> (i32, i32) {
    %c0_i32 = arith.constant 0 : i32
    return %arg0, %arg1 : i32, i32
  }
}

module attributes {stable_mosaic.version = 11 : i64} {
  func.func @_flash_attn_kernel(%arg0: i32, %arg1: i32, %arg2: i32, %arg3: memref<1x8x32xbf16, #tpu.memory_space<vmem>>, %arg4: memref<1x8x32xbf16, #tpu.memory_space<vmem>>, %arg5: memref<1x8x32xbf16, #tpu.memory_space<vmem>>, %arg6: memref<1x8x32xbf16, #tpu.memory_space<vmem>>, %arg7: memref<4x8x1xf32, #tpu.memory_space<vmem>>, %arg8: memref<4x8x1xf32, #tpu.memory_space<vmem>>, %arg9: memref<8x32xf32, #tpu.memory_space<vmem>>) attributes {dimension_semantics = [#tpu.dimension_semantics<parallel>, #tpu.dimension_semantics<parallel>, #tpu.dimension_semantics<arbitrary>], iteration_bounds = array<i64: 2, 1, 1>, scalar_prefetch = 0 : i64, scratch_operands = 3 : i64, tpu.core_type = #tpu.core_type<tc>, window_params = [{transform_indices = @transform_0, window_bounds = array<i64: 1, 8, 32>}, {transform_indices = @transform_1, window_bounds = array<i64: 1, 8, 32>}, {transform_indices = @transform_2, window_bounds = array<i64: 1, 8, 32>}, {transform_indices = @transform_3, window_bounds = array<i64: 1, 8, 32>}]} {
    %c0_i32 = arith.constant 0 : i32
    %0 = arith.cmpi eq, %arg2, %c0_i32 : i32
    %1 = arith.extui %0 : i1 to i32
    %c0_i32_0 = arith.constant 0 : i32
    %2 = arith.cmpi ne, %1, %c0_i32_0 : i32
    scf.if %2 {
      %cst_90 = arith.constant 0xFF800000 : f32
      %165 = vector.broadcast %cst_90 : f32 to vector<4x8x1xf32>
      %c0_91 = arith.constant 0 : index
      %c0_92 = arith.constant 0 : index
      %c0_93 = arith.constant 0 : index
      %166 = vector.load %arg7[%c0_91, %c0_92, %c0_93] : memref<4x8x1xf32, #tpu.memory_space<vmem>>, vector<4x8x1xf32>
      tpu.vector_store %arg7[%c0_91, %c0_92, %c0_93], %165 {strides = array<i32>} : memref<4x8x1xf32, #tpu.memory_space<vmem>>, vector<4x8x1xf32>,
      %cst_94 = arith.constant 0.000000e+00 : f32
      %167 = vector.broadcast %cst_94 : f32 to vector<4x8x1xf32>
      %c0_95 = arith.constant 0 : index
      %c0_96 = arith.constant 0 : index
      %c0_97 = arith.constant 0 : index
      %168 = vector.load %arg8[%c0_95, %c0_96, %c0_97] : memref<4x8x1xf32, #tpu.memory_space<vmem>>, vector<4x8x1xf32>
      tpu.vector_store %arg8[%c0_95, %c0_96, %c0_97], %167 {strides = array<i32>} : memref<4x8x1xf32, #tpu.memory_space<vmem>>, vector<4x8x1xf32>,
      %cst_98 = arith.constant 0.000000e+00 : f32
      %169 = vector.broadcast %cst_98 : f32 to vector<8x32xf32>
      %c0_99 = arith.constant 0 : index
      %c0_100 = arith.constant 0 : index
      %170 = vector.load %arg9[%c0_99, %c0_100] : memref<8x32xf32, #tpu.memory_space<vmem>>, vector<8x32xf32>
      tpu.vector_store %arg9[%c0_99, %c0_100], %169 {strides = array<i32>} : memref<8x32xf32, #tpu.memory_space<vmem>>, vector<8x32xf32>,
    } else {
    }
    %c0 = arith.constant 0 : index
    %c0_1 = arith.constant 0 : index
    %c0_2 = arith.constant 0 : index
    %3 = vector.load %arg3[%c0, %c0_1, %c0_2] : memref<1x8x32xbf16, #tpu.memory_space<vmem>>, vector<1x8x32xbf16>
    %4 = vector.shape_cast %3 : vector<1x8x32xbf16> to vector<8x32xbf16>
    %5 = arith.extf %4 : vector<8x32xbf16> to vector<8x32xf32>
    %cst = arith.constant 0.353553385 : f32
    %6 = vector.broadcast %cst : f32 to vector<8x32xf32>
    %7 = arith.mulf %5, %6 : vector<8x32xf32>
    %8 = arith.truncf %7 : vector<8x32xf32> to vector<8x32xbf16>
    %c0_3 = arith.constant 0 : index
    %c0_4 = arith.constant 0 : index
    %c0_5 = arith.constant 0 : index
    %9 = vector.load %arg4[%c0_3, %c0_4, %c0_5] : memref<1x8x32xbf16, #tpu.memory_space<vmem>>, vector<1x8x32xbf16>
    %10 = vector.shape_cast %9 : vector<1x8x32xbf16> to vector<8x32xbf16>
    %c0_6 = arith.constant 0 : index
    %c0_7 = arith.constant 0 : index
    %c0_8 = arith.constant 0 : index
    %11 = vector.load %arg5[%c0_6, %c0_7, %c0_8] : memref<1x8x32xbf16, #tpu.memory_space<vmem>>, vector<1x8x32xbf16>
    %12 = vector.shape_cast %11 : vector<1x8x32xbf16> to vector<8x32xbf16>
    %c8_i32 = arith.constant 8 : i32
    %13 = arith.muli %arg1, %c8_i32 : i32
    %14 = tpu.iota {dimensions = array<i32: 0>} : vector<8x8xi32>
    %15 = vector.broadcast %13 : i32 to vector<8x8xi32>
    %16 = arith.addi %15, %14 : vector<8x8xi32>
    %c8_i32_9 = arith.constant 8 : i32
    %17 = arith.muli %arg2, %c8_i32_9 : i32
    %18 = tpu.iota {dimensions = array<i32: 1>} : vector<8x8xi32>
    %19 = vector.broadcast %17 : i32 to vector<8x8xi32>
    %20 = arith.addi %19, %18 : vector<8x8xi32>
    %21 = arith.cmpi sle, %20, %16 : vector<8x8xi32>
    %22 = vector.extract_strided_slice %8 {offsets = [0, 0], sizes = [8, 8], strides = [1, 1]} : vector<8x32xbf16> to vector<8x8xbf16>
    %23 = vector.extract_strided_slice %10 {offsets = [0, 0], sizes = [8, 8], strides = [1, 1]} : vector<8x32xbf16> to vector<8x8xbf16>
    %24 = vector.extract_strided_slice %12 {offsets = [0, 0], sizes = [8, 8], strides = [1, 1]} : vector<8x32xbf16> to vector<8x8xbf16>
    "tpu.trace_start"() <{level = 10 : i32, message = "qd,kd->qk"}> : () -> ()
    %cst_10 = arith.constant dense<0.000000e+00> : vector<8x8xf32>
    %25 = tpu.matmul %22, %23, %cst_10 {dimension_numbers = #tpu.dot_dimension_numbers<[1], [1], [0], [0], [0, 0, 1, 0], [], []>} : vector<8x8xbf16>, vector<8x8xbf16>, vector<8x8xf32> -> vector<8x8xf32>
    %cst_11 = arith.constant -1.000000e+30 : f32
    "tpu.trace_stop"() : () -> ()
    %26 = vector.broadcast %cst_11 : f32 to vector<8x8xf32>
    %27 = arith.select %21, %25, %26 : vector<8x8xi1>, vector<8x8xf32>
    %c0_12 = arith.constant 0 : index
    %c0_13 = arith.constant 0 : index
    %c0_14 = arith.constant 0 : index
    %28 = vector.load %arg7[%c0_12, %c0_13, %c0_14] : memref<4x8x1xf32, #tpu.memory_space<vmem>>, vector<1x8x1xf32>
    %29 = vector.shape_cast %28 : vector<1x8x1xf32> to vector<8x1xf32>
    %c0_15 = arith.constant 0 : index
    %c0_16 = arith.constant 0 : index
    %c0_17 = arith.constant 0 : index
    %30 = vector.load %arg8[%c0_15, %c0_16, %c0_17] : memref<4x8x1xf32, #tpu.memory_space<vmem>>, vector<1x8x1xf32>
    %31 = vector.shape_cast %30 : vector<1x8x1xf32> to vector<8x1xf32>
    %cst_18 = arith.constant dense<0xFF800000> : vector<8xf32>
    %32 = vector.multi_reduction <maximumf>, %27, %cst_18 [1] : vector<8x8xf32> to vector<8xf32>
    %33 = vector.shape_cast %32 : vector<8xf32> to vector<8x1xf32>
    %34 = arith.maximumf %29, %33 : vector<8x1xf32>
    %35 = arith.subf %29, %34 : vector<8x1xf32>
    %36 = math.exp %35 : vector<8x1xf32>
    %37 = vector.broadcast %34 : vector<8x1xf32> to vector<8x8xf32>
    %38 = arith.subf %27, %37 : vector<8x8xf32>
    %39 = math.exp %38 : vector<8x8xf32>
    %40 = arith.mulf %36, %31 : vector<8x1xf32>
    %cst_19 = arith.constant dense<0.000000e+00> : vector<8xf32>
    %41 = vector.multi_reduction <add>, %39, %cst_19 [1] : vector<8x8xf32> to vector<8xf32>
    %42 = vector.shape_cast %41 : vector<8xf32> to vector<8x1xf32>
    %43 = arith.addf %40, %42 : vector<8x1xf32>
    %c0_20 = arith.constant 0 : index
    %c0_21 = arith.constant 0 : index
    %c0_22 = arith.constant 0 : index
    %44 = vector.load %arg8[%c0_20, %c0_21, %c0_22] : memref<4x8x1xf32, #tpu.memory_space<vmem>>, vector<1x8x1xf32>
    %45 = vector.shape_cast %44 : vector<1x8x1xf32> to vector<8x1xf32>
    %46 = vector.shape_cast %43 : vector<8x1xf32> to vector<1x8x1xf32>
    tpu.vector_store %arg8[%c0_20, %c0_21, %c0_22], %46 {strides = array<i32>} : memref<4x8x1xf32, #tpu.memory_space<vmem>>, vector<1x8x1xf32>,
    %c0_23 = arith.constant 0 : index
    %c0_24 = arith.constant 0 : index
    %47 = vector.load %arg9[%c0_23, %c0_24] : memref<8x32xf32, #tpu.memory_space<vmem>>, vector<8x8xf32>
    %48 = vector.broadcast %36 : vector<8x1xf32> to vector<8x8xf32>
    %49 = arith.mulf %48, %47 : vector<8x8xf32>
    %50 = arith.truncf %39 : vector<8x8xf32> to vector<8x8xbf16>
    %cst_25 = arith.constant dense<0.000000e+00> : vector<8x8xf32>
    %51 = tpu.matmul %50, %24, %cst_25 {dimension_numbers = #tpu.dot_dimension_numbers<[1], [0], [0], [1], [0, 0, 1, 1], [], []>} : vector<8x8xbf16>, vector<8x8xbf16>, vector<8x8xf32> -> vector<8x8xf32>
    %52 = arith.addf %49, %51 : vector<8x8xf32>
    %c0_26 = arith.constant 0 : index
    %c0_27 = arith.constant 0 : index
    %53 = vector.load %arg9[%c0_26, %c0_27] : memref<8x32xf32, #tpu.memory_space<vmem>>, vector<8x8xf32>
    tpu.vector_store %arg9[%c0_26, %c0_27], %52 {strides = array<i32>} : memref<8x32xf32, #tpu.memory_space<vmem>>, vector<8x8xf32>,
    %c0_28 = arith.constant 0 : index
    %c0_29 = arith.constant 0 : index
    %c0_30 = arith.constant 0 : index
    %54 = vector.load %arg7[%c0_28, %c0_29, %c0_30] : memref<4x8x1xf32, #tpu.memory_space<vmem>>, vector<1x8x1xf32>
    %55 = vector.shape_cast %54 : vector<1x8x1xf32> to vector<8x1xf32>
    %56 = vector.shape_cast %34 : vector<8x1xf32> to vector<1x8x1xf32>
    tpu.vector_store %arg7[%c0_28, %c0_29, %c0_30], %56 {strides = array<i32>} : memref<4x8x1xf32, #tpu.memory_space<vmem>>, vector<1x8x1xf32>,
    %57 = vector.extract_strided_slice %8 {offsets = [0, 8], sizes = [8, 8], strides = [1, 1]} : vector<8x32xbf16> to vector<8x8xbf16>
    %58 = vector.extract_strided_slice %10 {offsets = [0, 8], sizes = [8, 8], strides = [1, 1]} : vector<8x32xbf16> to vector<8x8xbf16>
    %59 = vector.extract_strided_slice %12 {offsets = [0, 8], sizes = [8, 8], strides = [1, 1]} : vector<8x32xbf16> to vector<8x8xbf16>
    "tpu.trace_start"() <{level = 10 : i32, message = "qd,kd->qk"}> : () -> ()
    %cst_31 = arith.constant dense<0.000000e+00> : vector<8x8xf32>
    %60 = tpu.matmul %57, %58, %cst_31 {dimension_numbers = #tpu.dot_dimension_numbers<[1], [1], [0], [0], [0, 0, 1, 0], [], []>} : vector<8x8xbf16>, vector<8x8xbf16>, vector<8x8xf32> -> vector<8x8xf32>
    %cst_32 = arith.constant -1.000000e+30 : f32
    "tpu.trace_stop"() : () -> ()
    %61 = vector.broadcast %cst_32 : f32 to vector<8x8xf32>
    %62 = arith.select %21, %60, %61 : vector<8x8xi1>, vector<8x8xf32>
    %c1 = arith.constant 1 : index
    %c0_33 = arith.constant 0 : index
    %c0_34 = arith.constant 0 : index
    %63 = vector.load %arg7[%c1, %c0_33, %c0_34] : memref<4x8x1xf32, #tpu.memory_space<vmem>>, vector<1x8x1xf32>
    %64 = vector.shape_cast %63 : vector<1x8x1xf32> to vector<8x1xf32>
    %c1_35 = arith.constant 1 : index
    %c0_36 = arith.constant 0 : index
    %c0_37 = arith.constant 0 : index
    %65 = vector.load %arg8[%c1_35, %c0_36, %c0_37] : memref<4x8x1xf32, #tpu.memory_space<vmem>>, vector<1x8x1xf32>
    %66 = vector.shape_cast %65 : vector<1x8x1xf32> to vector<8x1xf32>
    %cst_38 = arith.constant dense<0xFF800000> : vector<8xf32>
    %67 = vector.multi_reduction <maximumf>, %62, %cst_38 [1] : vector<8x8xf32> to vector<8xf32>
    %68 = vector.shape_cast %67 : vector<8xf32> to vector<8x1xf32>
    %69 = arith.maximumf %64, %68 : vector<8x1xf32>
    %70 = arith.subf %64, %69 : vector<8x1xf32>
    %71 = math.exp %70 : vector<8x1xf32>
    %72 = vector.broadcast %69 : vector<8x1xf32> to vector<8x8xf32>
    %73 = arith.subf %62, %72 : vector<8x8xf32>
    %74 = math.exp %73 : vector<8x8xf32>
    %75 = arith.mulf %71, %66 : vector<8x1xf32>
    %cst_39 = arith.constant dense<0.000000e+00> : vector<8xf32>
    %76 = vector.multi_reduction <add>, %74, %cst_39 [1] : vector<8x8xf32> to vector<8xf32>
    %77 = vector.shape_cast %76 : vector<8xf32> to vector<8x1xf32>
    %78 = arith.addf %75, %77 : vector<8x1xf32>
    %c1_40 = arith.constant 1 : index
    %c0_41 = arith.constant 0 : index
    %c0_42 = arith.constant 0 : index
    %79 = vector.load %arg8[%c1_40, %c0_41, %c0_42] : memref<4x8x1xf32, #tpu.memory_space<vmem>>, vector<1x8x1xf32>
    %80 = vector.shape_cast %79 : vector<1x8x1xf32> to vector<8x1xf32>
    %81 = vector.shape_cast %78 : vector<8x1xf32> to vector<1x8x1xf32>
    tpu.vector_store %arg8[%c1_40, %c0_41, %c0_42], %81 {strides = array<i32>} : memref<4x8x1xf32, #tpu.memory_space<vmem>>, vector<1x8x1xf32>,
    %c0_43 = arith.constant 0 : index
    %c8 = arith.constant 8 : index
    %82 = vector.load %arg9[%c0_43, %c8] : memref<8x32xf32, #tpu.memory_space<vmem>>, vector<8x8xf32>
    %83 = vector.broadcast %71 : vector<8x1xf32> to vector<8x8xf32>
    %84 = arith.mulf %83, %82 : vector<8x8xf32>
    %85 = arith.truncf %74 : vector<8x8xf32> to vector<8x8xbf16>
    %cst_44 = arith.constant dense<0.000000e+00> : vector<8x8xf32>
    %86 = tpu.matmul %85, %59, %cst_44 {dimension_numbers = #tpu.dot_dimension_numbers<[1], [0], [0], [1], [0, 0, 1, 1], [], []>} : vector<8x8xbf16>, vector<8x8xbf16>, vector<8x8xf32> -> vector<8x8xf32>
    %87 = arith.addf %84, %86 : vector<8x8xf32>
    %c0_45 = arith.constant 0 : index
    %c8_46 = arith.constant 8 : index
    %88 = vector.load %arg9[%c0_45, %c8_46] : memref<8x32xf32, #tpu.memory_space<vmem>>, vector<8x8xf32>
    tpu.vector_store %arg9[%c0_45, %c8_46], %87 {strides = array<i32>} : memref<8x32xf32, #tpu.memory_space<vmem>>, vector<8x8xf32>,
    %c1_47 = arith.constant 1 : index
    %c0_48 = arith.constant 0 : index
    %c0_49 = arith.constant 0 : index
    %89 = vector.load %arg7[%c1_47, %c0_48, %c0_49] : memref<4x8x1xf32, #tpu.memory_space<vmem>>, vector<1x8x1xf32>
    %90 = vector.shape_cast %89 : vector<1x8x1xf32> to vector<8x1xf32>
    %91 = vector.shape_cast %69 : vector<8x1xf32> to vector<1x8x1xf32>
    tpu.vector_store %arg7[%c1_47, %c0_48, %c0_49], %91 {strides = array<i32>} : memref<4x8x1xf32, #tpu.memory_space<vmem>>, vector<1x8x1xf32>,
    %92 = vector.extract_strided_slice %8 {offsets = [0, 16], sizes = [8, 8], strides = [1, 1]} : vector<8x32xbf16> to vector<8x8xbf16>
    %93 = vector.extract_strided_slice %10 {offsets = [0, 16], sizes = [8, 8], strides = [1, 1]} : vector<8x32xbf16> to vector<8x8xbf16>
    %94 = vector.extract_strided_slice %12 {offsets = [0, 16], sizes = [8, 8], strides = [1, 1]} : vector<8x32xbf16> to vector<8x8xbf16>
    "tpu.trace_start"() <{level = 10 : i32, message = "qd,kd->qk"}> : () -> ()
    %cst_50 = arith.constant dense<0.000000e+00> : vector<8x8xf32>
    %95 = tpu.matmul %92, %93, %cst_50 {dimension_numbers = #tpu.dot_dimension_numbers<[1], [1], [0], [0], [0, 0, 1, 0], [], []>} : vector<8x8xbf16>, vector<8x8xbf16>, vector<8x8xf32> -> vector<8x8xf32>
    %cst_51 = arith.constant -1.000000e+30 : f32
    "tpu.trace_stop"() : () -> ()
    %96 = vector.broadcast %cst_51 : f32 to vector<8x8xf32>
    %97 = arith.select %21, %95, %96 : vector<8x8xi1>, vector<8x8xf32>
    %c2 = arith.constant 2 : index
    %c0_52 = arith.constant 0 : index
    %c0_53 = arith.constant 0 : index
    %98 = vector.load %arg7[%c2, %c0_52, %c0_53] : memref<4x8x1xf32, #tpu.memory_space<vmem>>, vector<1x8x1xf32>
    %99 = vector.shape_cast %98 : vector<1x8x1xf32> to vector<8x1xf32>
    %c2_54 = arith.constant 2 : index
    %c0_55 = arith.constant 0 : index
    %c0_56 = arith.constant 0 : index
    %100 = vector.load %arg8[%c2_54, %c0_55, %c0_56] : memref<4x8x1xf32, #tpu.memory_space<vmem>>, vector<1x8x1xf32>
    %101 = vector.shape_cast %100 : vector<1x8x1xf32> to vector<8x1xf32>
    %cst_57 = arith.constant dense<0xFF800000> : vector<8xf32>
    %102 = vector.multi_reduction <maximumf>, %97, %cst_57 [1] : vector<8x8xf32> to vector<8xf32>
    %103 = vector.shape_cast %102 : vector<8xf32> to vector<8x1xf32>
    %104 = arith.maximumf %99, %103 : vector<8x1xf32>
    %105 = arith.subf %99, %104 : vector<8x1xf32>
    %106 = math.exp %105 : vector<8x1xf32>
    %107 = vector.broadcast %104 : vector<8x1xf32> to vector<8x8xf32>
    %108 = arith.subf %97, %107 : vector<8x8xf32>
    %109 = math.exp %108 : vector<8x8xf32>
    %110 = arith.mulf %106, %101 : vector<8x1xf32>
    %cst_58 = arith.constant dense<0.000000e+00> : vector<8xf32>
    %111 = vector.multi_reduction <add>, %109, %cst_58 [1] : vector<8x8xf32> to vector<8xf32>
    %112 = vector.shape_cast %111 : vector<8xf32> to vector<8x1xf32>
    %113 = arith.addf %110, %112 : vector<8x1xf32>
    %c2_59 = arith.constant 2 : index
    %c0_60 = arith.constant 0 : index
    %c0_61 = arith.constant 0 : index
    %114 = vector.load %arg8[%c2_59, %c0_60, %c0_61] : memref<4x8x1xf32, #tpu.memory_space<vmem>>, vector<1x8x1xf32>
    %115 = vector.shape_cast %114 : vector<1x8x1xf32> to vector<8x1xf32>
    %116 = vector.shape_cast %113 : vector<8x1xf32> to vector<1x8x1xf32>
    tpu.vector_store %arg8[%c2_59, %c0_60, %c0_61], %116 {strides = array<i32>} : memref<4x8x1xf32, #tpu.memory_space<vmem>>, vector<1x8x1xf32>,
    %c0_62 = arith.constant 0 : index
    %c16 = arith.constant 16 : index
    %117 = vector.load %arg9[%c0_62, %c16] : memref<8x32xf32, #tpu.memory_space<vmem>>, vector<8x8xf32>
    %118 = vector.broadcast %106 : vector<8x1xf32> to vector<8x8xf32>
    %119 = arith.mulf %118, %117 : vector<8x8xf32>
    %120 = arith.truncf %109 : vector<8x8xf32> to vector<8x8xbf16>
    %cst_63 = arith.constant dense<0.000000e+00> : vector<8x8xf32>
    %121 = tpu.matmul %120, %94, %cst_63 {dimension_numbers = #tpu.dot_dimension_numbers<[1], [0], [0], [1], [0, 0, 1, 1], [], []>} : vector<8x8xbf16>, vector<8x8xbf16>, vector<8x8xf32> -> vector<8x8xf32>
    %122 = arith.addf %119, %121 : vector<8x8xf32>
    %c0_64 = arith.constant 0 : index
    %c16_65 = arith.constant 16 : index
    %123 = vector.load %arg9[%c0_64, %c16_65] : memref<8x32xf32, #tpu.memory_space<vmem>>, vector<8x8xf32>
    tpu.vector_store %arg9[%c0_64, %c16_65], %122 {strides = array<i32>} : memref<8x32xf32, #tpu.memory_space<vmem>>, vector<8x8xf32>,
    %c2_66 = arith.constant 2 : index
    %c0_67 = arith.constant 0 : index
    %c0_68 = arith.constant 0 : index
    %124 = vector.load %arg7[%c2_66, %c0_67, %c0_68] : memref<4x8x1xf32, #tpu.memory_space<vmem>>, vector<1x8x1xf32>
    %125 = vector.shape_cast %124 : vector<1x8x1xf32> to vector<8x1xf32>
    %126 = vector.shape_cast %104 : vector<8x1xf32> to vector<1x8x1xf32>
    tpu.vector_store %arg7[%c2_66, %c0_67, %c0_68], %126 {strides = array<i32>} : memref<4x8x1xf32, #tpu.memory_space<vmem>>, vector<1x8x1xf32>,
    %127 = vector.extract_strided_slice %8 {offsets = [0, 24], sizes = [8, 8], strides = [1, 1]} : vector<8x32xbf16> to vector<8x8xbf16>
    %128 = vector.extract_strided_slice %10 {offsets = [0, 24], sizes = [8, 8], strides = [1, 1]} : vector<8x32xbf16> to vector<8x8xbf16>
    %129 = vector.extract_strided_slice %12 {offsets = [0, 24], sizes = [8, 8], strides = [1, 1]} : vector<8x32xbf16> to vector<8x8xbf16>
    "tpu.trace_start"() <{level = 10 : i32, message = "qd,kd->qk"}> : () -> ()
    %cst_69 = arith.constant dense<0.000000e+00> : vector<8x8xf32>
    %130 = tpu.matmul %127, %128, %cst_69 {dimension_numbers = #tpu.dot_dimension_numbers<[1], [1], [0], [0], [0, 0, 1, 0], [], []>} : vector<8x8xbf16>, vector<8x8xbf16>, vector<8x8xf32> -> vector<8x8xf32>
    %cst_70 = arith.constant -1.000000e+30 : f32
    "tpu.trace_stop"() : () -> ()
    %131 = vector.broadcast %cst_70 : f32 to vector<8x8xf32>
    %132 = arith.select %21, %130, %131 : vector<8x8xi1>, vector<8x8xf32>
    %c3 = arith.constant 3 : index
    %c0_71 = arith.constant 0 : index
    %c0_72 = arith.constant 0 : index
    %133 = vector.load %arg7[%c3, %c0_71, %c0_72] : memref<4x8x1xf32, #tpu.memory_space<vmem>>, vector<1x8x1xf32>
    %134 = vector.shape_cast %133 : vector<1x8x1xf32> to vector<8x1xf32>
    %c3_73 = arith.constant 3 : index
    %c0_74 = arith.constant 0 : index
    %c0_75 = arith.constant 0 : index
    %135 = vector.load %arg8[%c3_73, %c0_74, %c0_75] : memref<4x8x1xf32, #tpu.memory_space<vmem>>, vector<1x8x1xf32>
    %136 = vector.shape_cast %135 : vector<1x8x1xf32> to vector<8x1xf32>
    %cst_76 = arith.constant dense<0xFF800000> : vector<8xf32>
    %137 = vector.multi_reduction <maximumf>, %132, %cst_76 [1] : vector<8x8xf32> to vector<8xf32>
    %138 = vector.shape_cast %137 : vector<8xf32> to vector<8x1xf32>
    %139 = arith.maximumf %134, %138 : vector<8x1xf32>
    %140 = arith.subf %134, %139 : vector<8x1xf32>
    %141 = math.exp %140 : vector<8x1xf32>
    %142 = vector.broadcast %139 : vector<8x1xf32> to vector<8x8xf32>
    %143 = arith.subf %132, %142 : vector<8x8xf32>
    %144 = math.exp %143 : vector<8x8xf32>
    %145 = arith.mulf %141, %136 : vector<8x1xf32>
    %cst_77 = arith.constant dense<0.000000e+00> : vector<8xf32>
    %146 = vector.multi_reduction <add>, %144, %cst_77 [1] : vector<8x8xf32> to vector<8xf32>
    %147 = vector.shape_cast %146 : vector<8xf32> to vector<8x1xf32>
    %148 = arith.addf %145, %147 : vector<8x1xf32>
    %c3_78 = arith.constant 3 : index
    %c0_79 = arith.constant 0 : index
    %c0_80 = arith.constant 0 : index
    %149 = vector.load %arg8[%c3_78, %c0_79, %c0_80] : memref<4x8x1xf32, #tpu.memory_space<vmem>>, vector<1x8x1xf32>
    %150 = vector.shape_cast %149 : vector<1x8x1xf32> to vector<8x1xf32>
    %151 = vector.shape_cast %148 : vector<8x1xf32> to vector<1x8x1xf32>
    tpu.vector_store %arg8[%c3_78, %c0_79, %c0_80], %151 {strides = array<i32>} : memref<4x8x1xf32, #tpu.memory_space<vmem>>, vector<1x8x1xf32>,
    %c0_81 = arith.constant 0 : index
    %c24 = arith.constant 24 : index
    %152 = vector.load %arg9[%c0_81, %c24] : memref<8x32xf32, #tpu.memory_space<vmem>>, vector<8x8xf32>
    %153 = vector.broadcast %141 : vector<8x1xf32> to vector<8x8xf32>
    %154 = arith.mulf %153, %152 : vector<8x8xf32>
    %155 = arith.truncf %144 : vector<8x8xf32> to vector<8x8xbf16>
    %cst_82 = arith.constant dense<0.000000e+00> : vector<8x8xf32>
    %156 = tpu.matmul %155, %129, %cst_82 {dimension_numbers = #tpu.dot_dimension_numbers<[1], [0], [0], [1], [0, 0, 1, 1], [], []>} : vector<8x8xbf16>, vector<8x8xbf16>, vector<8x8xf32> -> vector<8x8xf32>
    %157 = arith.addf %154, %156 : vector<8x8xf32>
    %c0_83 = arith.constant 0 : index
    %c24_84 = arith.constant 24 : index
    %158 = vector.load %arg9[%c0_83, %c24_84] : memref<8x32xf32, #tpu.memory_space<vmem>>, vector<8x8xf32>
    tpu.vector_store %arg9[%c0_83, %c24_84], %157 {strides = array<i32>} : memref<8x32xf32, #tpu.memory_space<vmem>>, vector<8x8xf32>,
    %c3_85 = arith.constant 3 : index
    %c0_86 = arith.constant 0 : index
    %c0_87 = arith.constant 0 : index
    %159 = vector.load %arg7[%c3_85, %c0_86, %c0_87] : memref<4x8x1xf32, #tpu.memory_space<vmem>>, vector<1x8x1xf32>
    %160 = vector.shape_cast %159 : vector<1x8x1xf32> to vector<8x1xf32>
    %161 = vector.shape_cast %139 : vector<8x1xf32> to vector<1x8x1xf32>
    tpu.vector_store %arg7[%c3_85, %c0_86, %c0_87], %161 {strides = array<i32>} : memref<4x8x1xf32, #tpu.memory_space<vmem>>, vector<1x8x1xf32>,
    %c0_i32_88 = arith.constant 0 : i32
    %162 = arith.cmpi eq, %arg2, %c0_i32_88 : i32
    %163 = arith.extui %162 : i1 to i32
    %c0_i32_89 = arith.constant 0 : i32
    %164 = arith.cmpi ne, %163, %c0_i32_89 : i32
    scf.if %164 {
      %c0_90 = arith.constant 0 : index
      %c0_91 = arith.constant 0 : index
      %165 = vector.load %arg9[%c0_90, %c0_91] : memref<8x32xf32, #tpu.memory_space<vmem>>, vector<8x8xf32>
      %c0_92 = arith.constant 0 : index
      %c0_93 = arith.constant 0 : index
      %c0_94 = arith.constant 0 : index
      %166 = vector.load %arg8[%c0_92, %c0_93, %c0_94] : memref<4x8x1xf32, #tpu.memory_space<vmem>>, vector<1x8x1xf32>
      %167 = vector.shape_cast %166 : vector<1x8x1xf32> to vector<8x1xf32>
      %168 = tpu.reciprocal %167 {approx = true} : vector<8x1xf32> -> vector<8x1xf32>
      %169 = vector.broadcast %168 : vector<8x1xf32> to vector<8x8xf32>
      %170 = arith.mulf %165, %169 : vector<8x8xf32>
      %c0_95 = arith.constant 0 : index
      %c0_96 = arith.constant 0 : index
      %171 = vector.load %arg9[%c0_95, %c0_96] : memref<8x32xf32, #tpu.memory_space<vmem>>, vector<8x8xf32>
      tpu.vector_store %arg9[%c0_95, %c0_96], %170 {strides = array<i32>} : memref<8x32xf32, #tpu.memory_space<vmem>>, vector<8x8xf32>,
      %c0_97 = arith.constant 0 : index
      %c8_98 = arith.constant 8 : index
      %172 = vector.load %arg9[%c0_97, %c8_98] : memref<8x32xf32, #tpu.memory_space<vmem>>, vector<8x8xf32>
      %c1_99 = arith.constant 1 : index
      %c0_100 = arith.constant 0 : index
      %c0_101 = arith.constant 0 : index
      %173 = vector.load %arg8[%c1_99, %c0_100, %c0_101] : memref<4x8x1xf32, #tpu.memory_space<vmem>>, vector<1x8x1xf32>
      %174 = vector.shape_cast %173 : vector<1x8x1xf32> to vector<8x1xf32>
      %175 = tpu.reciprocal %174 {approx = true} : vector<8x1xf32> -> vector<8x1xf32>
      %176 = vector.broadcast %175 : vector<8x1xf32> to vector<8x8xf32>
      %177 = arith.mulf %172, %176 : vector<8x8xf32>
      %c0_102 = arith.constant 0 : index
      %c8_103 = arith.constant 8 : index
      %178 = vector.load %arg9[%c0_102, %c8_103] : memref<8x32xf32, #tpu.memory_space<vmem>>, vector<8x8xf32>
      tpu.vector_store %arg9[%c0_102, %c8_103], %177 {strides = array<i32>} : memref<8x32xf32, #tpu.memory_space<vmem>>, vector<8x8xf32>,
      %c0_104 = arith.constant 0 : index
      %c16_105 = arith.constant 16 : index
      %179 = vector.load %arg9[%c0_104, %c16_105] : memref<8x32xf32, #tpu.memory_space<vmem>>, vector<8x8xf32>
      %c2_106 = arith.constant 2 : index
      %c0_107 = arith.constant 0 : index
      %c0_108 = arith.constant 0 : index
      %180 = vector.load %arg8[%c2_106, %c0_107, %c0_108] : memref<4x8x1xf32, #tpu.memory_space<vmem>>, vector<1x8x1xf32>
      %181 = vector.shape_cast %180 : vector<1x8x1xf32> to vector<8x1xf32>
      %182 = tpu.reciprocal %181 {approx = true} : vector<8x1xf32> -> vector<8x1xf32>
      %183 = vector.broadcast %182 : vector<8x1xf32> to vector<8x8xf32>
      %184 = arith.mulf %179, %183 : vector<8x8xf32>
      %c0_109 = arith.constant 0 : index
      %c16_110 = arith.constant 16 : index
      %185 = vector.load %arg9[%c0_109, %c16_110] : memref<8x32xf32, #tpu.memory_space<vmem>>, vector<8x8xf32>
      tpu.vector_store %arg9[%c0_109, %c16_110], %184 {strides = array<i32>} : memref<8x32xf32, #tpu.memory_space<vmem>>, vector<8x8xf32>,
      %c0_111 = arith.constant 0 : index
      %c24_112 = arith.constant 24 : index
      %186 = vector.load %arg9[%c0_111, %c24_112] : memref<8x32xf32, #tpu.memory_space<vmem>>, vector<8x8xf32>
      %c3_113 = arith.constant 3 : index
      %c0_114 = arith.constant 0 : index
      %c0_115 = arith.constant 0 : index
      %187 = vector.load %arg8[%c3_113, %c0_114, %c0_115] : memref<4x8x1xf32, #tpu.memory_space<vmem>>, vector<1x8x1xf32>
      %188 = vector.shape_cast %187 : vector<1x8x1xf32> to vector<8x1xf32>
      %189 = tpu.reciprocal %188 {approx = true} : vector<8x1xf32> -> vector<8x1xf32>
      %190 = vector.broadcast %189 : vector<8x1xf32> to vector<8x8xf32>
      %191 = arith.mulf %186, %190 : vector<8x8xf32>
      %c0_116 = arith.constant 0 : index
      %c24_117 = arith.constant 24 : index
      %192 = vector.load %arg9[%c0_116, %c24_117] : memref<8x32xf32, #tpu.memory_space<vmem>>, vector<8x8xf32>
      tpu.vector_store %arg9[%c0_116, %c24_117], %191 {strides = array<i32>} : memref<8x32xf32, #tpu.memory_space<vmem>>, vector<8x8xf32>,
      %c0_118 = arith.constant 0 : index
      %c0_119 = arith.constant 0 : index
      %193 = vector.load %arg9[%c0_118, %c0_119] : memref<8x32xf32, #tpu.memory_space<vmem>>, vector<8x32xf32>
      %194 = arith.truncf %193 : vector<8x32xf32> to vector<8x32xbf16>
      %c0_120 = arith.constant 0 : index
      %c0_121 = arith.constant 0 : index
      %c0_122 = arith.constant 0 : index
      %195 = vector.load %arg6[%c0_120, %c0_121, %c0_122] : memref<1x8x32xbf16, #tpu.memory_space<vmem>>, vector<1x8x32xbf16>
      %196 = vector.shape_cast %195 : vector<1x8x32xbf16> to vector<8x32xbf16>
      %197 = vector.shape_cast %194 : vector<8x32xbf16> to vector<1x8x32xbf16>
      tpu.vector_store %arg6[%c0_120, %c0_121, %c0_122], %197 {strides = array<i32>} : memref<1x8x32xbf16, #tpu.memory_space<vmem>>, vector<1x8x32xbf16>,
    } else {
    }
    return
  }
  func.func @transform_0(%arg0: i32, %arg1: i32, %arg2: i32) -> (i32, i32, i32) {
    %c0_i32 = arith.constant 0 : i32
    %c0_i32_0 = arith.constant 0 : i32
    return %arg0, %arg1, %c0_i32 : i32, i32, i32
  }
  func.func @transform_1(%arg0: i32, %arg1: i32, %arg2: i32) -> (i32, i32, i32) {
    %c0_i32 = arith.constant 0 : i32
    %c0_i32_0 = arith.constant 0 : i32
    return %arg0, %arg2, %c0_i32 : i32, i32, i32
  }
  func.func @transform_2(%arg0: i32, %arg1: i32, %arg2: i32) -> (i32, i32, i32) {
    %c0_i32 = arith.constant 0 : i32
    %c0_i32_0 = arith.constant 0 : i32
    return %arg0, %arg2, %c0_i32 : i32, i32, i32
  }
  func.func @transform_3(%arg0: i32, %arg1: i32, %arg2: i32) -> (i32, i32, i32) {
    %c0_i32 = arith.constant 0 : i32
    %c0_i32_0 = arith.constant 0 : i32
    return %arg0, %arg1, %c0_i32 : i32, i32, i32
  }
}

module attributes {stable_mosaic.version = 11 : i64} {
  func.func @_matmul_kernel(%arg0: i32, %arg1: i32, %arg2: i32, %arg3: memref<16x32xbf16, #tpu.memory_space<vmem>>, %arg4: memref<32x64xbf16, #tpu.memory_space<vmem>>, %arg5: memref<1x64xf32, #tpu.memory_space<vmem>>, %arg6: memref<16x64xf32, #tpu.memory_space<vmem>>, %arg7: memref<16x64xf32, #tpu.memory_space<vmem>>) attributes {dimension_semantics = [#tpu.dimension_semantics<parallel>, #tpu.dimension_semantics<parallel>, #tpu.dimension_semantics<arbitrary>], iteration_bounds = array<i64: 1, 1, 1>, scalar_prefetch = 0 : i64, scratch_operands = 1 : i64, tpu.core_type = #tpu.core_type<tc>, window_params = [{transform_indices = @transform_0, window_bounds = array<i64: 16, 32>}, {transform_indices = @transform_1, window_bounds = array<i64: 32, 64>}, {transform_indices = @transform_2, window_bounds = array<i64: 1, 64>}, {transform_indices = @transform_3, window_bounds = array<i64: 16, 64>}]} {
    %c0_i32 = arith.constant 0 : i32
    %0 = arith.cmpi eq, %arg2, %c0_i32 : i32
    %1 = arith.extui %0 : i1 to i32
    %c0_i32_0 = arith.constant 0 : i32
    %2 = arith.cmpi ne, %1, %c0_i32_0 : i32
    scf.if %2 {
      %cst_10 = arith.constant 0.000000e+00 : f32
      %12 = vector.broadcast %cst_10 : f32 to vector<16x64xf32>
      %c0_11 = arith.constant 0 : index
      %c0_12 = arith.constant 0 : index
      %13 = vector.load %arg7[%c0_11, %c0_12] : memref<16x64xf32, #tpu.memory_space<vmem>>, vector<16x64xf32>
      tpu.vector_store %arg7[%c0_11, %c0_12], %12 {strides = array<i32>} : memref<16x64xf32, #tpu.memory_space<vmem>>, vector<16x64xf32>,
    } else {
    }
    %c0 = arith.constant 0 : index
    %c0_1 = arith.constant 0 : index
    %3 = vector.load %arg7[%c0, %c0_1] : memref<16x64xf32, #tpu.memory_space<vmem>>, vector<16x64xf32>
    %c0_2 = arith.constant 0 : index
    %c0_3 = arith.constant 0 : index
    %4 = vector.load %arg3[%c0_2, %c0_3] : memref<16x32xbf16, #tpu.memory_space<vmem>>, vector<16x32xbf16>
    %c0_4 = arith.constant 0 : index
    %c0_5 = arith.constant 0 : index
    %5 = vector.load %arg4[%c0_4, %c0_5] : memref<32x64xbf16, #tpu.memory_space<vmem>>, vector<32x64xbf16>
    %cst = arith.constant dense<0.000000e+00> : vector<16x64xf32>
    %6 = tpu.matmul %4, %5, %cst {dimension_numbers = #tpu.dot_dimension_numbers<[1], [0], [0], [1], [0, 0, 1, 1], [], []>} : vector<16x32xbf16>, vector<32x64xbf16>, vector<16x64xf32> -> vector<16x64xf32>
    %7 = arith.addf %3, %6 : vector<16x64xf32>
    %c0_6 = arith.constant 0 : index
    %c0_7 = arith.constant 0 : index
    %8 = vector.load %arg7[%c0_6, %c0_7] : memref<16x64xf32, #tpu.memory_space<vmem>>, vector<16x64xf32>
    tpu.vector_store %arg7[%c0_6, %c0_7], %7 {strides = array<i32>} : memref<16x64xf32, #tpu.memory_space<vmem>>, vector<16x64xf32>,
    %c0_i32_8 = arith.constant 0 : i32
    %9 = arith.cmpi eq, %arg2, %c0_i32_8 : i32
    %10 = arith.extui %9 : i1 to i32
    %c0_i32_9 = arith.constant 0 : i32
    %11 = arith.cmpi ne, %10, %c0_i32_9 : i32
    scf.if %11 {
      %c0_10 = arith.constant 0 : index
      %c0_11 = arith.constant 0 : index
      %12 = vector.load %arg7[%c0_10, %c0_11] : memref<16x64xf32, #tpu.memory_space<vmem>>, vector<16x64xf32>
      %c0_12 = arith.constant 0 : index
      %c0_13 = arith.constant 0 : index
      %13 = vector.load %arg5[%c0_12, %c0_13] : memref<1x64xf32, #tpu.memory_space<vmem>>, vector<1x64xf32>
      %14 = vector.broadcast %13 : vector<1x64xf32> to vector<16x64xf32>
      %15 = arith.addf %12, %14 : vector<16x64xf32>
      %c0_14 = arith.constant 0 : index
      %c0_15 = arith.constant 0 : index
      %16 = vector.load %arg6[%c0_14, %c0_15] : memref<16x64xf32, #tpu.memory_space<vmem>>, vector<16x64xf32>
      tpu.vector_store %arg6[%c0_14, %c0_15], %15 {strides = array<i32>} : memref<16x64xf32, #tpu.memory_space<vmem>>, vector<16x64xf32>,
    } else {
    }
    return
  }
  func.func @transform_0(%arg0: i32, %arg1: i32, %arg2: i32) -> (i32, i32) {
    %c0_i32 = arith.constant 0 : i32
    return %arg0, %arg2 : i32, i32
  }
  func.func @transform_1(%arg0: i32, %arg1: i32, %arg2: i32) -> (i32, i32) {
    %c0_i32 = arith.constant 0 : i32
    return %arg2, %arg1 : i32, i32
  }
  func.func @transform_2(%arg0: i32, %arg1: i32, %arg2: i32) -> (i32, i32) {
    %c0_i32 = arith.constant 0 : i32
    %c0_i32_0 = arith.constant 0 : i32
    return %c0_i32, %arg1 : i32, i32
  }
  func.func @transform_3(%arg0: i32, %arg1: i32, %arg2: i32) -> (i32, i32) {
    %c0_i32 = arith.constant 0 : i32
    return %arg0, %arg1 : i32, i32
  }
}

</mosaic_0001>

<bundles_post_ra>
// kernel: transformer_fwd.15
= control target key start
LH: loop header
LB: loop body
LE: loop exit
PB: predicated region body
PF: predicated region fallthrough
CT: control target
= control target key end

     0   :  { %8 = vsyncpa [#allocation4], 0  ;;  %s401_s0 = inlined_call_operand.hbm [shape: bf16[16,32], index: 0, kind: input, shape index: {}]   ;;  %s402_s1 = inlined_call_operand.hbm [shape: bf16[32,96], index: 1, kind: input, shape index: {}]   ;;  %s403_s2 = inlined_call_operand.hbm [shape: f32[1,96], index: 2, kind: input, shape index: {}]   ;;  %s404_s3 = inlined_call_operand.hbm [shape: bf16[16,96], index: 3, kind: output, shape index: {}]  }
   0x1   :  { %9 = vsyncpa [#allocation7], 0 }
   0x2   :  { %10 = vsyncpa [#allocation5], 0  ;;  %s305_s12 = smov [#allocation6]   ;;  %s306_s14 = smov [#allocation3]  }
   0x3   :  { %s28_s13 = sshll.u32 %s305_s12, 4  ;;  %s16_s15 = sshll.u32 %s306_s14, 4  ;;  %s29_s13 = int_to_ptr.vmem [resolvable:$true] %s28_s13  ;;  %s333_s15 = int_to_ptr.vmem [resolvable:$true] %s16_s15 }
   0x4   :  { %s211_s18 = scalar_lea.hbm %s402_s1, 256 }
   0x5   :  { %p212_p0 = scmp.ne.s32.totalorder %s402_s1, %s211_s18  ;;  %p215_p1 = scmp.lt.u32.totalorder %s211_s18, %s402_s1 }
   0x7   :  { %p217_p2 = pnand %p215_p1, %p212_p0 }
   0x9   :  { %220 = shalt.err (!%p217_p2)
}
   0xa   :  { %s221_s23 = scalar_lea.vmem %s29_s13, 256  ;;  %p226_p4 = scmp.lt.s32.totalorder %s29_s13, %s29_s13 }
   0xb   :  { %p222_p3 = scmp.ne.s32.totalorder %s29_s13, %s221_s23  ;;  %p227_p5 = scmp.lt.s32.totalorder %s221_s23, %s221_s23 }
   0xd   :  { %p228_p6 = por %p227_p5, %p226_p4 }
   0xf   :  { %p229_p7 = pnand %p228_p6, %p222_p3 }
  0x11   :  { %232 = shalt.err (!%p229_p7)
}
  0x12   :  { %s307_s24 = smov 64   ;;  %s308_s25 = smov 4  }
  0x13   :  { %34 = dma.hbm_to_vmem [thread:$0]  %s402_s1, 256, %s29_s13, [#allocation7], %s307_s24, %s307_s24, %s308_s25  }
  0x14   :  { %s233_s30 = scalar_lea.hbm %s401_s0, 128 }
  0x15   :  { %p234_p8 = scmp.ne.s32.totalorder %s401_s0, %s233_s30  ;;  %p237_p9 = scmp.lt.u32.totalorder %s233_s30, %s401_s0 }
  0x17   :  { %p239_p10 = pnand %p237_p9, %p234_p8 }
  0x19   :  { %242 = shalt.err (!%p239_p10)
}
  0x1a   :  { %s243_s8 = scalar_lea.vmem %s333_s15, 128  ;;  %p248_p12 = scmp.lt.s32.totalorder %s333_s15, %s333_s15 }
  0x1b   :  { %p244_p11 = scmp.ne.s32.totalorder %s333_s15, %s243_s8  ;;  %p249_p13 = scmp.lt.s32.totalorder %s243_s8, %s243_s8 }
  0x1d   :  { %p250_p0 = por %p249_p13, %p248_p12 }
  0x1f   :  { %p251_p1 = pnand %p250_p0, %p244_p11 }
  0x21   :  { %254 = shalt.err (!%p251_p1)
}
  0x22   :  { %22 = dma.hbm_to_vmem [thread:$0]  %s401_s0, 128, %s333_s15, [#allocation4], %s307_s24, %s307_s24, %s308_s25  }
  0x23   :  { %s309_s10 = smov [#allocation8]   ;;  %s255_s14 = scalar_lea.hbm %s403_s2, 16 }
  0x24   :  { %s41_s11 = sshll.u32 %s309_s10, 4  ;;  %p256_p2 = scmp.ne.s32.totalorder %s403_s2, %s255_s14  ;;  %s42_s11 = int_to_ptr.vmem [resolvable:$true] %s41_s11 }
  0x25   :  { %p259_p3 = scmp.lt.u32.totalorder %s255_s14, %s403_s2 }
  0x27   :  { %p261_p4 = pnand %p259_p3, %p256_p2 }
  0x29   :  { %264 = shalt.err (!%p261_p4)
}
  0x2a   :  { %s265_s20 = scalar_lea.vmem %s42_s11, 16  ;;  %s269_s0 = scalar_lea.vmem %s42_s11, 32 }
  0x2b   :  { %p266_p5 = scmp.ne.s32.totalorder %s42_s11, %s265_s20  ;;  %p270_p6 = scmp.lt.s32.totalorder %s42_s11, %s42_s11 }
  0x2c   :  { %p271_p7 = scmp.lt.s32.totalorder %s269_s0, %s265_s20 }
  0x2e   :  { %p272_p8 = por %p271_p7, %p270_p6 }
  0x30   :  { %p273_p9 = pnand %p272_p8, %p266_p5 }
  0x32   :  { %276 = shalt.err (!%p273_p9)
}
  0x33   :  { %44 = dma.hbm_to_vmem [thread:$0]  %s403_s2, 16, %s42_s11, [#allocation7]  }
  0x34   :  { %299 = dma.done.wait [#allocation4], 128  }
  0x35   :  { %300 = vsyncadd [#allocation4], 4294967168 }
  0x36   :  { %301 = dma.done.wait [#allocation7], 272  }
  0x37   :  { %302 = vsyncadd [#allocation7], 4294967024  ;;  %vm59_vm0 = vcmask 785408   ;;  %v310_v0 = vmov 0.0   ;;  %vm311_vm1 = vmmov 0   ;;  %v208_v1 = vld [vmem:[#allocation6] sm:$0xff]  }
  0x38   :  { %60 = vst.msk [vmem:[#allocation2] sm:$0xff] %vm59_vm0, %v310_v0  ;;  %61 = vst.msk [vmem:[#allocation2 + $0x8] sm:$0xff] %vm59_vm0, %v310_v0  ;;  %192 = vmatprep.subr.bf16.mxu0 %v310_v0  ;;  %196 = vmatprep.mubr.msk.bf16.mxu0 %vm311_vm1, %v310_v0  ;;  %v209_v2 = vld [vmem:[#allocation6 + $0x8] sm:$0xff]   ;;  %v210_v3 = vld [vmem:[#allocation3] sm:$0xff]   ;;  %vm87_vm2 = vcmask 261120   ;;  %vm159_vm3 = vcmask 781312  }
  0x39   :  { %193 = vmatpush3.bf16.msra.mxu0 %v208_v1  ;;  %v184_v12 = vld [vmem:[#allocation8] ss:$0 sm:$0xff]  ;;  %s312_s2 = smov [#allocation9]  }
  0x3a   :  { %194 = vmatprep.subr.bf16.mxu0 %v310_v0  ;;  %s167_s22 = sshll.u32 %s312_s2, 4  ;;  %s168_s22 = int_to_ptr.vmem [resolvable:$true] %s167_s22 }
  0x3b   :  { %s277_s23 = scalar_lea.vmem %s168_s22, 128  ;;  %p282_p11 = scmp.lt.s32.totalorder %s168_s22, %s168_s22 }
  0x3c   :  { %p278_p10 = scmp.ne.s32.totalorder %s168_s22, %s277_s23  ;;  %p283_p12 = scmp.lt.s32.totalorder %s277_s23, %s277_s23 }
  0x3d   :  { %195 = vmatpush3.bf16.msra.mxu0 %v209_v2 }
  0x3e   :  { %p284_p13 = por %p283_p12, %p282_p11 }
  0x3f   :  { %v62_v4 = vld [vmem:[#allocation2] sm:$0xff]  ;;  %v63_v6 = vld [vmem:[#allocation2 + $0x8] sm:$0xff] }
  0x40   :  { %197 = vmatmul.mubr.msk.bf16.vlgmr.msra.gmra.mrb[0].mxu0 %vm87_vm2, %v210_v3  ;;  %p285_p0 = pnand %p284_p13, %p278_p10 }
 0x113   :  { %v125_v5 = vpop.f32.mrb[0].mxu0 }
 0x114   :  { %v132_v7 = vadd.f32 %v125_v5, %v62_v4  ;;  %v198_v8 = vpop.f32.mrb[1].mxu0 }
 0x115   :  { %v128_v9 = vpop.f32.mrb[2].mxu0 }
 0x116   :  { %135 = vst.msk [vmem:[#allocation2] sm:$0xff] %vm59_vm0, %v132_v7  ;;  %v133_v10 = vadd.f32 %v128_v9, %v63_v6  ;;  %v199_v11 = vpop.f32.mrb[3].mxu0 }
 0x118   :  { %136 = vst.msk [vmem:[#allocation2 + $0x8] sm:$0xff] %vm59_vm0, %v133_v10 }
 0x11d   :  { %v140_v13 = vld [vmem:[#allocation2] sm:$0xff] }
 0x11e   :  { %v149_v14 = vadd.f32 %v184_v12, %v140_v13 }
 0x11f   :  { %v141_v15 = vld [vmem:[#allocation2 + $0x8] sm:$0xff] }
 0x120   :  { %v150_v16 = vadd.f32 %v184_v12, %v141_v15  ;;  %v187_v17 = vpack.c.bf16 %v149_v14, %v149_v14 }
 0x122   :  { %v188_v18 = vpack.c.bf16 %v150_v16, %v150_v16  ;;  %160 = vst.msk [vmem:[#allocation9] sm:$0xf] %vm159_vm3, %v187_v17 }
 0x124   :  { %161 = vst.msk [vmem:[#allocation9 + $0x4] sm:$0xf] %vm159_vm3, %v188_v18 }
 0x125   :  { %288 = shalt.err (!%p285_p0)
}
 0x126   :  { %s289_s28 = scalar_lea.hbm %s404_s3, 128 }
 0x127   :  { %p290_p1 = scmp.ne.s32.totalorder %s404_s3, %s289_s28  ;;  %p293_p2 = scmp.lt.u32.totalorder %s289_s28, %s404_s3 }
 0x129   :  { %p295_p3 = pnand %p293_p2, %p290_p1 }
 0x12b   :  { %298 = shalt.err (!%p295_p3)
}
 0x12c   :  { %173 = dma.vmem_to_hbm [thread:$0]  %s168_s22, 128, %s404_s3, [#allocation5], %s307_s24, %s307_s24, %s308_s25  }
 0x12d   :  { %303 = dma.done.wait [#allocation5], 128  }
 0x12e   :  { %304 = vsyncadd [#allocation5], 4294967168 }
 0x12f   :  { %177 = vsyncpa [#allocation4], 1 }
 0x130   :  { %178 = vsyncpa [#allocation7], 1 }
 0x131   :  { %179 = vsyncpa [#allocation5], 1 }

// kernel: transformer_fwd.18
= control target key start
LH: loop header
LB: loop body
LE: loop exit
PB: predicated region body
PF: predicated region fallthrough
CT: control target
= control target key end

     0   :  { %8 = vsyncpa [#allocation4], 0  ;;  %s403_s0 = inlined_call_operand.hbm [shape: bf16[16,32], index: 0, kind: input, shape index: {}]   ;;  %s404_s1 = inlined_call_operand.hbm [shape: bf16[32,64], index: 1, kind: input, shape index: {}]   ;;  %s405_s2 = inlined_call_operand.hbm [shape: f32[1,64], index: 2, kind: input, shape index: {}]   ;;  %s406_s3 = inlined_call_operand.hbm [shape: bf16[16,64], index: 3, kind: output, shape index: {}]  }
   0x1   :  { %9 = vsyncpa [#allocation7], 0 }
   0x2   :  { %10 = vsyncpa [#allocation5], 0  ;;  %s307_s12 = smov [#allocation6]   ;;  %s308_s14 = smov [#allocation3]  }
   0x3   :  { %s28_s13 = sshll.u32 %s307_s12, 4  ;;  %s16_s15 = sshll.u32 %s308_s14, 4  ;;  %s29_s13 = int_to_ptr.vmem [resolvable:$true] %s28_s13  ;;  %s335_s15 = int_to_ptr.vmem [resolvable:$true] %s16_s15 }
   0x4   :  { %s213_s18 = scalar_lea.hbm %s404_s1, 256 }
   0x5   :  { %p214_p0 = scmp.ne.s32.totalorder %s404_s1, %s213_s18  ;;  %p217_p1 = scmp.lt.u32.totalorder %s213_s18, %s404_s1 }
   0x7   :  { %p219_p2 = pnand %p217_p1, %p214_p0 }
   0x9   :  { %222 = shalt.err (!%p219_p2)
}
   0xa   :  { %s223_s23 = scalar_lea.vmem %s29_s13, 256  ;;  %p228_p4 = scmp.lt.s32.totalorder %s29_s13, %s29_s13 }
   0xb   :  { %p224_p3 = scmp.ne.s32.totalorder %s29_s13, %s223_s23  ;;  %p229_p5 = scmp.lt.s32.totalorder %s223_s23, %s223_s23 }
   0xd   :  { %p230_p6 = por %p229_p5, %p228_p4 }
   0xf   :  { %p231_p7 = pnand %p230_p6, %p224_p3 }
  0x11   :  { %234 = shalt.err (!%p231_p7)
}
  0x12   :  { %s309_s24 = smov 64   ;;  %s310_s25 = smov 4  }
  0x13   :  { %34 = dma.hbm_to_vmem [thread:$0]  %s404_s1, 256, %s29_s13, [#allocation7], %s309_s24, %s309_s24, %s310_s25  }
  0x14   :  { %s235_s30 = scalar_lea.hbm %s403_s0, 128 }
  0x15   :  { %p236_p8 = scmp.ne.s32.totalorder %s403_s0, %s235_s30  ;;  %p239_p9 = scmp.lt.u32.totalorder %s235_s30, %s403_s0 }
  0x17   :  { %p241_p10 = pnand %p239_p9, %p236_p8 }
  0x19   :  { %244 = shalt.err (!%p241_p10)
}
  0x1a   :  { %s245_s8 = scalar_lea.vmem %s335_s15, 128  ;;  %p250_p12 = scmp.lt.s32.totalorder %s335_s15, %s335_s15 }
  0x1b   :  { %p246_p11 = scmp.ne.s32.totalorder %s335_s15, %s245_s8  ;;  %p251_p13 = scmp.lt.s32.totalorder %s245_s8, %s245_s8 }
  0x1d   :  { %p252_p0 = por %p251_p13, %p250_p12 }
  0x1f   :  { %p253_p1 = pnand %p252_p0, %p246_p11 }
  0x21   :  { %256 = shalt.err (!%p253_p1)
}
  0x22   :  { %22 = dma.hbm_to_vmem [thread:$0]  %s403_s0, 128, %s335_s15, [#allocation4], %s309_s24, %s309_s24, %s310_s25  }
  0x23   :  { %s311_s10 = smov [#allocation8]   ;;  %s257_s14 = scalar_lea.hbm %s405_s2, 16 }
  0x24   :  { %s41_s11 = sshll.u32 %s311_s10, 4  ;;  %p258_p2 = scmp.ne.s32.totalorder %s405_s2, %s257_s14  ;;  %s42_s11 = int_to_ptr.vmem [resolvable:$true] %s41_s11 }
  0x25   :  { %p261_p3 = scmp.lt.u32.totalorder %s257_s14, %s405_s2 }
  0x27   :  { %p263_p4 = pnand %p261_p3, %p258_p2 }
  0x29   :  { %266 = shalt.err (!%p263_p4)
}
  0x2a   :  { %s267_s20 = scalar_lea.vmem %s42_s11, 16  ;;  %s271_s0 = scalar_lea.vmem %s42_s11, 32 }
  0x2b   :  { %p268_p5 = scmp.ne.s32.totalorder %s42_s11, %s267_s20  ;;  %p272_p6 = scmp.lt.s32.totalorder %s42_s11, %s42_s11 }
  0x2c   :  { %p273_p7 = scmp.lt.s32.totalorder %s271_s0, %s267_s20 }
  0x2e   :  { %p274_p8 = por %p273_p7, %p272_p6 }
  0x30   :  { %p275_p9 = pnand %p274_p8, %p268_p5 }
  0x32   :  { %278 = shalt.err (!%p275_p9)
}
  0x33   :  { %44 = dma.hbm_to_vmem [thread:$0]  %s405_s2, 16, %s42_s11, [#allocation7]  }
  0x34   :  { %301 = dma.done.wait [#allocation4], 128  }
  0x35   :  { %302 = vsyncadd [#allocation4], 4294967168 }
  0x36   :  { %303 = dma.done.wait [#allocation7], 272  }
  0x37   :  { %304 = vsyncadd [#allocation7], 4294967024  ;;  %vm59_vm0 = vcmask 523264   ;;  %v312_v0 = vmov 0.0   ;;  %vm313_vm1 = vmmov 0   ;;  %v210_v1 = vld [vmem:[#allocation6] sm:$0xff]  }
  0x38   :  { %60 = vst.msk [vmem:[#allocation2] sm:$0xff] %vm59_vm0, %v312_v0  ;;  %61 = vst.msk [vmem:[#allocation2 + $0x8] sm:$0xff] %vm59_vm0, %v312_v0  ;;  %194 = vmatprep.subr.bf16.mxu0 %v312_v0  ;;  %198 = vmatprep.mubr.msk.bf16.mxu0 %vm313_vm1, %v312_v0  ;;  %v211_v2 = vld [vmem:[#allocation6 + $0x8] sm:$0xff]   ;;  %v212_v3 = vld [vmem:[#allocation3] sm:$0xff]   ;;  %vm87_vm2 = vcmask 261120   ;;  %vm161_vm3 = vcmask 519168  }
  0x39   :  { %195 = vmatpush3.bf16.msra.mxu0 %v210_v1  ;;  %v186_v12 = vld [vmem:[#allocation8] ss:$0 sm:$0xff]  ;;  %s314_s2 = smov [#allocation9]  }
  0x3a   :  { %196 = vmatprep.subr.bf16.mxu0 %v312_v0  ;;  %s169_s22 = sshll.u32 %s314_s2, 4  ;;  %s170_s22 = int_to_ptr.vmem [resolvable:$true] %s169_s22 }
  0x3b   :  { %s279_s23 = scalar_lea.vmem %s170_s22, 128  ;;  %p284_p11 = scmp.lt.s32.totalorder %s170_s22, %s170_s22 }
  0x3c   :  { %p280_p10 = scmp.ne.s32.totalorder %s170_s22, %s279_s23  ;;  %p285_p12 = scmp.lt.s32.totalorder %s279_s23, %s279_s23 }
  0x3d   :  { %197 = vmatpush3.bf16.msra.mxu0 %v211_v2 }
  0x3e   :  { %p286_p13 = por %p285_p12, %p284_p11 }
  0x3f   :  { %v62_v4 = vld [vmem:[#allocation2] sm:$0xff]  ;;  %v63_v6 = vld [vmem:[#allocation2 + $0x8] sm:$0xff] }
  0x40   :  { %199 = vmatmul.mubr.msk.bf16.vlgmr.msra.gmra.mrb[0].mxu0 %vm87_vm2, %v212_v3  ;;  %p287_p0 = pnand %p286_p13, %p280_p10 }
 0x113   :  { %v125_v5 = vpop.f32.mrb[0].mxu0 }
 0x114   :  { %v132_v7 = vadd.f32 %v125_v5, %v62_v4  ;;  %v200_v8 = vpop.f32.mrb[1].mxu0 }
 0x115   :  { %v128_v9 = vpop.f32.mrb[2].mxu0 }
 0x116   :  { %135 = vst.msk [vmem:[#allocation2] sm:$0xff] %vm59_vm0, %v132_v7  ;;  %v133_v10 = vadd.f32 %v128_v9, %v63_v6  ;;  %v201_v11 = vpop.f32.mrb[3].mxu0 }
 0x118   :  { %136 = vst.msk [vmem:[#allocation2 + $0x8] sm:$0xff] %vm59_vm0, %v133_v10 }
 0x11d   :  { %v140_v13 = vld [vmem:[#allocation2] sm:$0xff] }
 0x11e   :  { %v149_v14 = vadd.f32 %v186_v12, %v140_v13 }
 0x11f   :  { %v141_v15 = vld [vmem:[#allocation2 + $0x8] sm:$0xff] }
 0x120   :  { %v150_v16 = vadd.f32 %v186_v12, %v141_v15  ;;  %v151_v17 = vmax.f32 %v149_v14, 0.0 }
 0x122   :  { %v152_v18 = vmax.f32 %v150_v16, 0.0  ;;  %v189_v19 = vpack.c.bf16 %v151_v17, %v151_v17 }
 0x124   :  { %v190_v20 = vpack.c.bf16 %v152_v18, %v152_v18  ;;  %162 = vst.msk [vmem:[#allocation9] sm:$0xf] %vm161_vm3, %v189_v19 }
 0x126   :  { %163 = vst.msk [vmem:[#allocation9 + $0x4] sm:$0xf] %vm161_vm3, %v190_v20 }
 0x127   :  { %290 = shalt.err (!%p287_p0)
}
 0x128   :  { %s291_s28 = scalar_lea.hbm %s406_s3, 128 }
 0x129   :  { %p292_p1 = scmp.ne.s32.totalorder %s406_s3, %s291_s28  ;;  %p295_p2 = scmp.lt.u32.totalorder %s291_s28, %s406_s3 }
 0x12b   :  { %p297_p3 = pnand %p295_p2, %p292_p1 }
 0x12d   :  { %300 = shalt.err (!%p297_p3)
}
 0x12e   :  { %175 = dma.vmem_to_hbm [thread:$0]  %s170_s22, 128, %s406_s3, [#allocation5], %s309_s24, %s309_s24, %s310_s25  }
 0x12f   :  { %305 = dma.done.wait [#allocation5], 128  }
 0x130   :  { %306 = vsyncadd [#allocation5], 4294967168 }
 0x131   :  { %179 = vsyncpa [#allocation4], 1 }
 0x132   :  { %180 = vsyncpa [#allocation7], 1 }
 0x133   :  { %181 = vsyncpa [#allocation5], 1 }

// kernel: transformer_fwd.17
= control target key start
LH: loop header
LB: loop body
LE: loop exit
PB: predicated region body
PF: predicated region fallthrough
CT: control target
= control target key end

     0   :  { %11 = vsyncpa [#allocation4], 0  ;;  %s644_s0 = inlined_call_operand.hbm [shape: bf16[16,32], index: 0, kind: input, shape index: {}]   ;;  %s645_s1 = inlined_call_operand.hbm [shape: bf16[32,32], index: 1, kind: input, shape index: {}]   ;;  %s646_s2 = inlined_call_operand.hbm [shape: f32[1,32], index: 2, kind: input, shape index: {}]   ;;  %s647_s3 = inlined_call_operand.hbm [shape: bf16[16,32], index: 3, kind: input, shape index: {}]   ;;  %s648_s4 = inlined_call_operand.hbm [shape: f32[1,32], index: 4, kind: input, shape index: {}]   ;;  %s649_s5 = inlined_call_operand.hbm [shape: f32[1,32], index: 5, kind: input, shape index: {}]   ;;  %s650_s6 = inlined_call_operand.hbm [shape: bf16[16,32], index: 6, kind: output, shape index: {}]  }
   0x1   :  { %12 = vsyncpa [#allocation7], 0 }
   0x2   :  { %13 = vsyncpa [#allocation10], 0 }
   0x3   :  { %14 = vsyncpa [#allocation13], 0 }
   0x4   :  { %15 = vsyncpa [#allocation5], 0  ;;  %s486_s21 = smov [#allocation6]   ;;  %s487_s23 = smov [#allocation9]  }
   0x5   :  { %s33_s22 = sshll.u32 %s486_s21, 4  ;;  %s55_s24 = sshll.u32 %s487_s23, 4  ;;  %s34_s22 = int_to_ptr.vmem [resolvable:$true] %s33_s22  ;;  %s532_s24 = int_to_ptr.vmem [resolvable:$true] %s55_s24 }
   0x6   :  { %s322_s27 = scalar_lea.hbm %s645_s1, 256 }
   0x7   :  { %p323_p0 = scmp.ne.s32.totalorder %s645_s1, %s322_s27  ;;  %p326_p1 = scmp.lt.u32.totalorder %s322_s27, %s645_s1 }
   0x9   :  { %p328_p2 = pnand %p326_p1, %p323_p0 }
   0xb   :  { %331 = shalt.err (!%p328_p2)
}
   0xc   :  { %s332_s8 = scalar_lea.vmem %s34_s22, 256  ;;  %p337_p4 = scmp.lt.s32.totalorder %s34_s22, %s34_s22 }
   0xd   :  { %p333_p3 = scmp.ne.s32.totalorder %s34_s22, %s332_s8  ;;  %p338_p5 = scmp.lt.s32.totalorder %s332_s8, %s332_s8 }
   0xf   :  { %p339_p6 = por %p338_p5, %p337_p4 }
  0x11   :  { %p340_p7 = pnand %p339_p6, %p333_p3 }
  0x13   :  { %343 = shalt.err (!%p340_p7)
}
  0x14   :  { %s488_s9 = smov 64   ;;  %s489_s10 = smov 4  }
  0x15   :  { %39 = dma.hbm_to_vmem [thread:$0]  %s645_s1, 256, %s34_s22, [#allocation7], %s488_s9, %s488_s9, %s489_s10  }
  0x16   :  { %s344_s15 = scalar_lea.hbm %s647_s3, 128 }
  0x17   :  { %p345_p8 = scmp.ne.s32.totalorder %s647_s3, %s344_s15  ;;  %p348_p9 = scmp.lt.u32.totalorder %s344_s15, %s647_s3 }
  0x19   :  { %p350_p10 = pnand %p348_p9, %p345_p8 }
  0x1b   :  { %353 = shalt.err (!%p350_p10)
}
  0x1c   :  { %s354_s20 = scalar_lea.vmem %s532_s24, 128  ;;  %p359_p12 = scmp.lt.s32.totalorder %s532_s24, %s532_s24 }
  0x1d   :  { %p355_p11 = scmp.ne.s32.totalorder %s532_s24, %s354_s20  ;;  %p360_p13 = scmp.lt.s32.totalorder %s354_s20, %s354_s20 }
  0x1f   :  { %p361_p0 = por %p360_p13, %p359_p12 }
  0x21   :  { %p362_p1 = pnand %p361_p0, %p355_p11 }
  0x23   :  { %365 = shalt.err (!%p362_p1)
}
  0x24   :  { %61 = dma.hbm_to_vmem [thread:$0]  %s647_s3, 128, %s532_s24, [#allocation10], %s488_s9, %s488_s9, %s489_s10  }
  0x25   :  { %s490_s22 = smov [#allocation3]   ;;  %s491_s25 = smov [#allocation8]  }
  0x26   :  { %s21_s23 = sshll.u32 %s490_s22, 4  ;;  %s46_s26 = sshll.u32 %s491_s25, 4  ;;  %s22_s23 = int_to_ptr.vmem [resolvable:$true] %s21_s23  ;;  %s47_s26 = int_to_ptr.vmem [resolvable:$true] %s46_s26 }
  0x27   :  { %s366_s29 = scalar_lea.hbm %s644_s0, 128 }
  0x28   :  { %p367_p2 = scmp.ne.s32.totalorder %s644_s0, %s366_s29  ;;  %p370_p3 = scmp.lt.u32.totalorder %s366_s29, %s644_s0 }
  0x2a   :  { %p372_p4 = pnand %p370_p3, %p367_p2 }
  0x2c   :  { %375 = shalt.err (!%p372_p4)
}
  0x2d   :  { %s376_s3 = scalar_lea.vmem %s22_s23, 128  ;;  %p381_p6 = scmp.lt.s32.totalorder %s22_s23, %s22_s23 }
  0x2e   :  { %p377_p5 = scmp.ne.s32.totalorder %s22_s23, %s376_s3  ;;  %p382_p7 = scmp.lt.s32.totalorder %s376_s3, %s376_s3 }
  0x30   :  { %p383_p8 = por %p382_p7, %p381_p6 }
  0x32   :  { %p384_p9 = pnand %p383_p8, %p377_p5 }
  0x34   :  { %387 = shalt.err (!%p384_p9)
}
  0x35   :  { %27 = dma.hbm_to_vmem [thread:$0]  %s644_s0, 128, %s22_s23, [#allocation4], %s488_s9, %s488_s9, %s489_s10  }
  0x36   :  { %s388_s15 = scalar_lea.hbm %s646_s2, 16 }
  0x37   :  { %p389_p10 = scmp.ne.s32.totalorder %s646_s2, %s388_s15  ;;  %p392_p11 = scmp.lt.u32.totalorder %s388_s15, %s646_s2 }
  0x39   :  { %p394_p12 = pnand %p392_p11, %p389_p10 }
  0x3b   :  { %397 = shalt.err (!%p394_p12)
}
  0x3c   :  { %s398_s20 = scalar_lea.vmem %s47_s26, 16  ;;  %s402_s1 = scalar_lea.vmem %s47_s26, 32 }
  0x3d   :  { %p399_p13 = scmp.ne.s32.totalorder %s47_s26, %s398_s20  ;;  %p403_p0 = scmp.lt.s32.totalorder %s47_s26, %s47_s26 }
  0x3e   :  { %p404_p1 = scmp.lt.s32.totalorder %s402_s1, %s398_s20 }
  0x40   :  { %p405_p2 = por %p404_p1, %p403_p0 }
  0x42   :  { %p406_p3 = pnand %p405_p2, %p399_p13 }
  0x44   :  { %409 = shalt.err (!%p406_p3)
}
  0x45   :  { %49 = dma.hbm_to_vmem [thread:$0]  %s646_s2, 16, %s47_s26, [#allocation7]  }
  0x46   :  { %s492_s22 = smov [#allocation11]   ;;  %s493_s25 = smov [#allocation12]  }
  0x47   :  { %s68_s23 = sshll.u32 %s492_s22, 4  ;;  %s78_s27 = sshll.u32 %s493_s25, 4  ;;  %s69_s23 = int_to_ptr.vmem [resolvable:$true] %s68_s23  ;;  %s79_s27 = int_to_ptr.vmem [resolvable:$true] %s78_s27 }
  0x48   :  { %s410_s30 = scalar_lea.hbm %s648_s4, 16 }
  0x49   :  { %p411_p4 = scmp.ne.s32.totalorder %s648_s4, %s410_s30  ;;  %p414_p5 = scmp.lt.u32.totalorder %s410_s30, %s648_s4 }
  0x4b   :  { %p416_p6 = pnand %p414_p5, %p411_p4 }
  0x4d   :  { %419 = shalt.err (!%p416_p6)
}
  0x4e   :  { %s420_s2 = scalar_lea.vmem %s69_s23, 16  ;;  %s424_s26 = scalar_lea.vmem %s69_s23, 32 }
  0x4f   :  { %p421_p7 = scmp.ne.s32.totalorder %s69_s23, %s420_s2  ;;  %p425_p8 = scmp.lt.s32.totalorder %s69_s23, %s69_s23 }
  0x50   :  { %p426_p9 = scmp.lt.s32.totalorder %s424_s26, %s420_s2 }
  0x52   :  { %p427_p10 = por %p426_p9, %p425_p8 }
  0x54   :  { %p428_p11 = pnand %p427_p10, %p421_p7 }
  0x56   :  { %431 = shalt.err (!%p428_p11)
}
  0x57   :  { %71 = dma.hbm_to_vmem [thread:$0]  %s648_s4, 16, %s69_s23, [#allocation10]  }
  0x58   :  { %s432_s15 = scalar_lea.hbm %s649_s5, 16 }
  0x59   :  { %p433_p12 = scmp.ne.s32.totalorder %s649_s5, %s432_s15  ;;  %p436_p13 = scmp.lt.u32.totalorder %s432_s15, %s649_s5 }
  0x5b   :  { %p438_p0 = pnand %p436_p13, %p433_p12 }
  0x5d   :  { %441 = shalt.err (!%p438_p0)
}
  0x5e   :  { %s442_s20 = scalar_lea.vmem %s79_s27, 16  ;;  %s446_s1 = scalar_lea.vmem %s79_s27, 32 }
  0x5f   :  { %p443_p1 = scmp.ne.s32.totalorder %s79_s27, %s442_s20  ;;  %p447_p2 = scmp.lt.s32.totalorder %s79_s27, %s79_s27 }
  0x60   :  { %p448_p3 = scmp.lt.s32.totalorder %s446_s1, %s442_s20 }
  0x62   :  { %p449_p4 = por %p448_p3, %p447_p2 }
  0x64   :  { %p450_p5 = pnand %p449_p4, %p443_p1 }
  0x66   :  { %453 = shalt.err (!%p450_p5)
}
  0x67   :  { %81 = dma.hbm_to_vmem [thread:$0]  %s649_s5, 16, %s79_s27, [#allocation13]  }
  0x68   :  { %476 = dma.done.wait [#allocation4], 128  }
  0x69   :  { %477 = vsyncadd [#allocation4], 4294967168 }
  0x6a   :  { %478 = dma.done.wait [#allocation7], 272  }
  0x6b   :  { %479 = vsyncadd [#allocation7], 4294967024 }
  0x6c   :  { %480 = dma.done.wait [#allocation10], 144  }
  0x6d   :  { %481 = vsyncadd [#allocation10], 4294967152 }
  0x6e   :  { %482 = dma.done.wait [#allocation13], 16  }
  0x6f   :  { %483 = vsyncadd [#allocation13], 4294967280  ;;  %vm105_vm0 = vcmask 261120   ;;  %v494_v0 = vmov 0.0   ;;  %vm495_vm1 = vmmov 0   ;;  %v315_v1 = vld [vmem:[#allocation6] sm:$0xff]  }
  0x70   :  { %106 = vst.msk [vmem:[#allocation2] sm:$0xff] %vm105_vm0, %v494_v0  ;;  %107 = vst.msk [vmem:[#allocation2 + $0x8] sm:$0xff] %vm105_vm0, %v494_v0  ;;  %296 = vmatprep.subr.bf16.mxu0 %v494_v0  ;;  %300 = vmatprep.mubr.msk.bf16.mxu0 %vm495_vm1, %v494_v0  ;;  %v316_v2 = vld [vmem:[#allocation6 + $0x8] sm:$0xff]   ;;  %v317_v3 = vld [vmem:[#allocation3] sm:$0xff]   ;;  %vm255_vm2 = vcmask 257024   ;;  %s496_s5 = smov [#allocation14]  }
  0x71   :  { %297 = vmatpush3.bf16.msra.mxu0 %v315_v1  ;;  %v290_v12 = vld [vmem:[#allocation9] sm:$0xff]   ;;  %v282_v13 = vld [vmem:[#allocation8] ss:$0 sm:$0xff]  ;;  %v283_v41 = vld [vmem:[#allocation11] ss:$0 sm:$0xff]  ;;  %s263_s21 = sshll.u32 %s496_s5, 4  ;;  %s264_s21 = int_to_ptr.vmem [resolvable:$true] %s263_s21 }
  0x72   :  { %298 = vmatprep.subr.bf16.mxu0 %v494_v0  ;;  %v291_v14 = vunpack.c.l.bf16 %v290_v12  ;;  %v292_v17 = vunpack.c.h.bf16 %v290_v12  ;;  %v284_v43 = vld [vmem:[#allocation12] ss:$0 sm:$0xff]  ;;  %s454_s22 = scalar_lea.vmem %s264_s21, 128  ;;  %p459_p7 = scmp.lt.s32.totalorder %s264_s21, %s264_s21 }
  0x73   :  { %p455_p6 = scmp.ne.s32.totalorder %s264_s21, %s454_s22  ;;  %p460_p8 = scmp.lt.s32.totalorder %s454_s22, %s454_s22 }
  0x75   :  { %299 = vmatpush3.bf16.msra.mxu0 %v316_v2  ;;  %p461_p9 = por %p460_p8, %p459_p7 }
  0x77   :  { %v108_v4 = vld [vmem:[#allocation2] sm:$0xff]  ;;  %v109_v6 = vld [vmem:[#allocation2 + $0x8] sm:$0xff]  ;;  %p462_p10 = pnand %p461_p9, %p455_p6 }
  0x78   :  { %301 = vmatmul.mubr.msk.bf16.vlgmr.msra.gmra.mrb[0].mxu0 %vm105_vm0, %v317_v3 }
 0x14b   :  { %v171_v5 = vpop.f32.mrb[0].mxu0 }
 0x14c   :  { %v178_v7 = vadd.f32 %v171_v5, %v108_v4  ;;  %v302_v8 = vpop.f32.mrb[1].mxu0 }
 0x14d   :  { %v174_v9 = vpop.f32.mrb[2].mxu0 }
 0x14e   :  { %180 = vst.msk [vmem:[#allocation2] sm:$0xff] %vm105_vm0, %v178_v7  ;;  %v179_v10 = vadd.f32 %v174_v9, %v109_v6  ;;  %v303_v11 = vpop.f32.mrb[3].mxu0 }
 0x150   :  { %181 = vst.msk [vmem:[#allocation2 + $0x8] sm:$0xff] %vm105_vm0, %v179_v10 }
 0x155   :  { %v185_v15 = vld [vmem:[#allocation2] sm:$0xff] }
 0x156   :  { %v194_v16 = vadd.f32 %v282_v13, %v185_v15 }
 0x157   :  { %v186_v18 = vld [vmem:[#allocation2 + $0x8] sm:$0xff] }
 0x158   :  { %v200_v19 = vadd.f32 %v291_v14, %v194_v16  ;;  %v195_v20 = vadd.f32 %v282_v13, %v186_v18 }
 0x15a   :  { %v202_v21 = vsel %vm105_vm0, %v200_v19, 0.0  ;;  %v201_v22 = vadd.f32 %v292_v17, %v195_v20 }
 0x15b   :  { %203 = vadd.xlane.f32.xlu0 %v202_v21 }
 0x15c   :  { %v205_v23 = vsel %vm105_vm0, %v201_v22, 0.0 }
 0x15f   :  { %206 = vadd.xlane.f32.xlu0 %v205_v23 }
 0x1e8   :  { %v204_v24 = vpop.xlane.xlu0 %203 }
 0x1e9   :  { %v209_v25 = vmul.f32 0.03125, %v204_v24 }
 0x1eb   :  { %v211_v26 = vsub.f32 %v200_v19, %v209_v25 }
 0x1ec   :  { %v207_v27 = vpop.xlane.xlu0 %206 }
 0x1ed   :  { %v210_v28 = vmul.f32 0.03125, %v207_v27  ;;  %v213_v29 = vmul.f32 %v211_v26, %v211_v26 }
 0x1ef   :  { %v212_v30 = vsub.f32 %v201_v22, %v210_v28  ;;  %v215_v31 = vsel %vm105_vm0, %v213_v29, 0.0 }
 0x1f0   :  { %216 = vadd.xlane.f32.xlu1 %v215_v31 }
 0x1f1   :  { %v214_v32 = vmul.f32 %v212_v30, %v212_v30 }
 0x1f3   :  { %v218_v33 = vsel %vm105_vm0, %v214_v32, 0.0 }
 0x1f4   :  { %219 = vadd.xlane.f32.xlu1 %v218_v33 }
 0x27d   :  { %v217_v34 = vpop.xlane.xlu1 %216 }
 0x27e   :  { %v221_v35 = vmul.f32 0.03125, %v217_v34 }
 0x280   :  { %v223_v36 = vadd.f32 1e-05, %v221_v35 }
 0x281   :  { %v220_v37 = vpop.xlane.xlu1 %219 }
 0x282   :  { %318 = vrsqrt.f32 %v223_v36  ;;  %v222_v38 = vmul.f32 0.03125, %v220_v37 }
 0x284   :  { %v224_v39 = vadd.f32 1e-05, %v222_v38 }
 0x286   :  { %320 = vrsqrt.f32 %v224_v39 }
 0x28c   :  { %v319_v40 = vpop.eup %318 }
 0x28d   :  { %v227_v42 = vmul.f32 %v319_v40, %v211_v26 }
 0x28f   :  { %v236_v44 = vmul.f32 %v283_v41, %v227_v42 }
 0x290   :  { %v321_v45 = vpop.eup %320 }
 0x291   :  { %v228_v46 = vmul.f32 %v321_v45, %v212_v30  ;;  %v245_v47 = vadd.f32 %v284_v43, %v236_v44 }
 0x293   :  { %v237_v48 = vmul.f32 %v283_v41, %v228_v46  ;;  %v287_v49 = vpack.c.bf16 %v245_v47, %v245_v47 }
 0x295   :  { %v246_v50 = vadd.f32 %v284_v43, %v237_v48  ;;  %256 = vst.msk [vmem:[#allocation14] sm:$0xf] %vm255_vm2, %v287_v49 }
 0x297   :  { %v288_v51 = vpack.c.bf16 %v246_v50, %v246_v50 }
 0x299   :  { %257 = vst.msk [vmem:[#allocation14 + $0x4] sm:$0xf] %vm255_vm2, %v288_v51 }
 0x29a   :  { %465 = shalt.err (!%p462_p10)
}
 0x29b   :  { %s466_s27 = scalar_lea.hbm %s650_s6, 128 }
 0x29c   :  { %p467_p11 = scmp.ne.s32.totalorder %s650_s6, %s466_s27  ;;  %p470_p12 = scmp.lt.u32.totalorder %s466_s27, %s650_s6 }
 0x29e   :  { %p472_p13 = pnand %p470_p12, %p467_p11 }
 0x2a0   :  { %475 = shalt.err (!%p472_p13)
}
 0x2a1   :  { %269 = dma.vmem_to_hbm [thread:$0]  %s264_s21, 128, %s650_s6, [#allocation5], %s488_s9, %s488_s9, %s489_s10  }
 0x2a2   :  { %484 = dma.done.wait [#allocation5], 128  }
 0x2a3   :  { %485 = vsyncadd [#allocation5], 4294967168 }
 0x2a4   :  { %273 = vsyncpa [#allocation4], 1 }
 0x2a5   :  { %274 = vsyncpa [#allocation7], 1 }
 0x2a6   :  { %275 = vsyncpa [#allocation10], 1 }
 0x2a7   :  { %276 = vsyncpa [#allocation13], 1 }
 0x2a8   :  { %277 = vsyncpa [#allocation5], 1 }

// kernel: transformer_fwd.16
= control target key start
LH: loop header
LB: loop body
LE: loop exit
PB: predicated region body
PF: predicated region fallthrough
CT: control target
= control target key end

     0   :  { %s1845_s0 = inlined_call_operand.hbm [shape: bf16[2,8,32], index: 0, kind: input, shape index: {}]   ;;  %s1846_s1 = inlined_call_operand.hbm [shape: bf16[2,8,32], index: 1, kind: input, shape index: {}]   ;;  %s1847_s2 = inlined_call_operand.hbm [shape: bf16[2,8,32], index: 2, kind: input, shape index: {}]   ;;  %s1848_s3 = inlined_call_operand.hbm [shape: bf16[2,8,32], index: 3, kind: output, shape index: {}]  }
   0x1   :  { %1854 = sst [smem:[#allocation18_spill]] %s1846_s1 }
   0x2   :  { %8 = vsyncpa [#allocation6], 0 }
   0x3   :  { %10 = vsyncpa [#allocation6 + $0x1], 0 }
   0x4   :  { %11 = vsyncpa [#allocation9], 0 }
   0x5   :  { %13 = vsyncpa [#allocation9 + $0x1], 0 }
   0x6   :  { %14 = vsyncpa [#allocation7], 0 }
   0x7   :  { %16 = vsyncpa [#allocation7 + $0x1], 0  ;;  %s1467_s12 = smov 0   ;;  %s1469_s13 = smov 0  }
   0x8   :  { %s1471_s14 = smov 0   ;;  %s1473_s15 = smov 0  }
   0x9   :  { %s1475_s16 = smov 0   ;;  %s1477_s17 = smov 0  }
   0xa LB: > { %1855 = sst [smem:[#allocation15_spill]] %s1427_s16  ;;  %s1498_s18 = sadd.s32 4294967295, %s1431_s17   ;;  %s1431_s17 = sphi %s1477_s17, %s22_s17   ;;  %s1427_s16 = sphi %s1475_s16, %s1876_s16   ;;  %s1423_s15 = sphi %s1473_s15, %s1875_s15   ;;  %s1419_s14 = sphi %s1471_s14, %s1879_s14   ;;  %s1415_s13 = sphi %s1469_s13, %s1878_s13   ;;  %s1411_s12 = sphi %s1467_s12, %s1877_s12  }
   0xb   : > { %s1053_s19 = sadd.s32 4294967294, %s1431_s17   ;;  %s41_s20 = sadd.s32 1, %s1427_s16 }
   0xc   : > { %s50_s21 = sadd.s32 1, %s1419_s14  ;;  %p43_p0 = scmp.ge.s32.totalorder %s41_s20, 2 }
   0xd   : > { %p57_p1 = scmp.ne.s32.totalorder %s1419_s14, %s1415_s13  ;;  %p58_p2 = scmp.eq.s32.totalorder %s1431_s17, 0 }
   0xe   : > { %p63_p3 = scmp.ne.s32.totalorder %s1415_s13, %s1411_s12  ;;  %s1881_s20 = smov (%p43_p0, %s41_s20), 0 }
   0xf   : > { %1856 = sst [smem:[#allocation16_spill]] %s1881_s20  ;;  %p1510_p4 = por %p58_p2, %p57_p1 }
  0x10   : > { %p64_p5 = scmp.eq.s32.totalorder %s1498_s18, 0  ;;  %s45_s23 = ssub.s32 %s1427_s16, %s1881_s20 }
  0x11   : > { %p145_p6 = scmp.eq.s32.totalorder %s1498_s18, 1  ;;  %p48_p7 = scmp.eq.s32.totalorder %s45_s23, 0 }
  0x12   : > { %p1518_p8 = por %p64_p5, %p63_p3  ;;  %p151_p10 = scmp.eq.s32.totalorder %s1053_s19, 1 }
  0x13   : > { %p1522_p9 = por %p145_p6, %p57_p1  ;;  %p1167_p13 = scmp.lt.s32.totalorder %s1431_s17, 2 }
  0x14   : > { %s1858_s24 = scalar_select %p1518_p8, 1, 0 }
  0x15   : > { %s1859_s25 = scalar_select %p1522_p9, 1, 0 }
  0x16   : > { %s1527_s26 = scalar_select %p48_p7, %s1419_s14, %s50_s21  }
  0x17   : > { %p1529_p11 = por %p151_p10, %p63_p3  ;;  %s171_s28 = sand.u32 1, %s1419_s14  }
  0x18   : > { %1860 = sst [smem:[#allocation17_spill]] %s1527_s26  ;;  %s1538_s29 = sshll.u32 %s171_s28, 2 }
  0x19   : > { %s1861_s27 = scalar_select %p1529_p11, 1, 0 }
  0x1a   : > { %s1541_s30 = sshll.u32 %s1427_s16, 6  ;;  %p1545_p0 = pnand %p1167_p13, %p1510_p4 }
  0x1b   : > { %s190_s5 = sand.u32 1, %s1431_s17   ;;  %s1863_s1 = sld [smem:[#allocation18_spill]] }
  0x1c   : > { %s1862_s4 = scalar_select %p1545_p0, 1, 0 }
  0x1d   : > { %s194_s9 = scalar_lea.vmem [#allocation8], %s1538_s29  ;;  %s1561_s11 = scalar_lea.sflag [#allocation9], %s190_s5 }
  0x1e   : > { %s202_s10 = sshll.u32 %s194_s9, 4  ;;  %p1567_p4 = pneg %p1545_p0  ;;  %s1558_s10 = int_to_ptr.vmem [resolvable:$true] %s202_s10 }
  0x21   : > { %s1554_s8 = scalar_lea.hbm %s1863_s1, %s1541_s30  ;;  %s1260_s6 = scalar_lea.hbm %s1863_s1, 128 }
  0x22   : > { %s1255_s19 = scalar_lea.hbm %s1554_s8, 64  ;;  %p1261_p7 = scmp.lt.u32.totalorder %s1554_s8, %s1863_s1 }
  0x23   : > { %p1256_p3 = scmp.ne.s32.totalorder %s1554_s8, %s1255_s19  ;;  %p1262_p10 = scmp.lt.u32.totalorder %s1260_s6, %s1255_s19 }
  0x24   : > { %p1264_p12 = scmp.lt.u32.totalorder %s1255_s19, %s1554_s8 }
  0x25   : > { %p1258_p5 = pnand %p1567_p4, %p1256_p3  ;;  %p1263_p13 = por %p1262_p10, %p1261_p7 }
  0x27   : > { %p1259_p6 = pneg %p1258_p5  ;;  %p1265_p1 = por %p1264_p12, %p1263_p13 }
  0x29   : > { %p1266_p2 = pnand %p1265_p1, %p1259_p6 }
  0x2b   : > { %1269 = shalt.err (!%p1266_p2)
}
  0x2c   : > { %s1270_s5 = scalar_lea.vmem %s1558_s10, 64  ;;  %s1433_s22 = smov [#allocation8]  }
  0x2d   : > { %p1271_p3 = scmp.ne.s32.totalorder %s1558_s10, %s1270_s5  ;;  %s1275_s23 = sshll.u32 %s1433_s22, 4  ;;  %s1276_s23 = int_to_ptr.vmem [resolvable:$false] %s1275_s23 }
  0x2e   : > { %s1277_s7 = scalar_lea.vmem %s1276_s23, 128  ;;  %p1278_p9 = scmp.lt.s32.totalorder %s1558_s10, %s1276_s23 }
  0x2f   : > { %p1273_p5 = pnand %p1271_p3, %p1567_p4  ;;  %p1279_p8 = scmp.lt.s32.totalorder %s1277_s7, %s1270_s5 }
  0x31   : > { %p1274_p11 = pneg %p1273_p5  ;;  %p1280_p7 = por %p1279_p8, %p1278_p9 }
  0x33   : > { %p1281_p10 = pnand %p1280_p7, %p1274_p11 }
  0x35   : > { %1284 = shalt.err (!%p1281_p10)
}
  0x36   : > { %1159 = dma.hbm_to_vmem [thread:$0]  (!%p1545_p0), %s1554_s8, 64, %s1558_s10, %s1561_s11  }
  0x37   : > { %p1865_p12 = scmp.lt.s32.totalorder %s1431_s17, 3  ;;  %p1866_p1 = scmp.ge.s32.totalorder %s1431_s17, 1 }
  0x38   : > { %s1603_s5 = scalar_lea.hbm %s1845_s0, %s1541_s30  ;;  %s175_s22 = scalar_lea.vmem [#allocation5], %s1538_s29 }
  0x39   : > { %p1595_p2 = pnand %p1866_p1, %p1865_p12  ;;  %s183_s23 = sshll.u32 %s175_s22, 4  ;;  %s1606_s23 = int_to_ptr.vmem [resolvable:$true] %s183_s23 }
  0x3a   : > { %s1612_s7 = scalar_lea.hbm %s1847_s2, %s1541_s30  ;;  %s172_s1 = scalar_lea.sflag [#allocation6], %s171_s28 }
  0x3b   : > { %s1867_s19 = scalar_select %p1595_p2, 1, 0 }
  0x3c   : > { %s1285_s20 = scalar_lea.hbm %s1603_s5, 64  ;;  %s1290_s16 = scalar_lea.hbm %s1845_s0, 128 }
  0x3d   : > { %p1286_p8 = scmp.ne.s32.totalorder %s1603_s5, %s1285_s20  ;;  %p1291_p6 = scmp.lt.u32.totalorder %s1603_s5, %s1845_s0 }
  0x3e   : > { %p1292_p13 = scmp.lt.u32.totalorder %s1290_s16, %s1285_s20  ;;  %p1294_p5 = scmp.lt.u32.totalorder %s1285_s20, %s1603_s5 }
  0x3f   : > { %p1288_p9 = pnand %p1286_p8, %p1567_p4 }
  0x40   : > { %p1293_p3 = por %p1292_p13, %p1291_p6 }
  0x41   : > { %p1289_p11 = pneg %p1288_p9 }
  0x42   : > { %p1295_p7 = por %p1294_p5, %p1293_p3 }
  0x44   : > { %p1296_p10 = pnand %p1295_p7, %p1289_p11 }
  0x46   : > { %1299 = shalt.err (!%p1296_p10)
}
  0x47   : > { %s1300_s28 = scalar_lea.vmem %s1606_s23, 64  ;;  %s1434_s30 = smov [#allocation5]  }
  0x48   : > { %p1301_p12 = scmp.ne.s32.totalorder %s1606_s23, %s1300_s28  ;;  %s1305_s8 = sshll.u32 %s1434_s30, 4  ;;  %s1306_s8 = int_to_ptr.vmem [resolvable:$false] %s1305_s8 }
  0x49   : > { %s1307_s26 = scalar_lea.vmem %s1306_s8, 128  ;;  %p1308_p9 = scmp.lt.s32.totalorder %s1606_s23, %s1306_s8 }
  0x4a   : > { %p1303_p1 = pnand %p1301_p12, %p1567_p4  ;;  %p1309_p2 = scmp.lt.s32.totalorder %s1307_s26, %s1300_s28 }
  0x4c   : > { %p1304_p8 = pneg %p1303_p1  ;;  %p1310_p6 = por %p1309_p2, %p1308_p9 }
  0x4e   : > { %p1311_p13 = pnand %p1310_p6, %p1304_p8 }
  0x50   : > { %1314 = shalt.err (!%p1311_p13)
}
  0x51   : > { %1156 = dma.hbm_to_vmem [thread:$0]  (!%p1545_p0), %s1603_s5, 64, %s1606_s23, %s172_s1  }
  0x52   : > { %s213_s16 = scalar_lea.vmem [#allocation10], %s1538_s29  ;;  %s1315_s10 = scalar_lea.hbm %s1612_s7, 64 }
  0x53   : > { %s221_s20 = sshll.u32 %s213_s16, 4  ;;  %p1316_p11 = scmp.ne.s32.totalorder %s1612_s7, %s1315_s10  ;;  %s222_s20 = int_to_ptr.vmem [resolvable:$true] %s221_s20 }
  0x54   : > { %s1320_s22 = scalar_lea.hbm %s1847_s2, 128  ;;  %p1321_p5 = scmp.lt.u32.totalorder %s1612_s7, %s1847_s2 }
  0x55   : > { %p1318_p2 = pnand %p1316_p11, %p1567_p4  ;;  %p1322_p7 = scmp.lt.u32.totalorder %s1320_s22, %s1315_s10 }
  0x56   : > { %p1324_p12 = scmp.lt.u32.totalorder %s1315_s10, %s1612_s7 }
  0x57   : > { %p1319_p3 = pneg %p1318_p2  ;;  %p1323_p10 = por %p1322_p7, %p1321_p5 }
  0x59   : > { %p1325_p1 = por %p1324_p12, %p1323_p10 }
  0x5b   : > { %p1326_p8 = pnand %p1325_p1, %p1319_p3 }
  0x5d   : > { %1329 = shalt.err (!%p1326_p8)
}
  0x5e   : > { %s1330_s1 = scalar_lea.vmem %s222_s20, 64  ;;  %s1435_s29 = smov [#allocation10]  }
  0x5f   : > { %p1331_p9 = scmp.ne.s32.totalorder %s222_s20, %s1330_s1  ;;  %s1335_s5 = sshll.u32 %s1435_s29, 4  ;;  %s1336_s5 = int_to_ptr.vmem [resolvable:$false] %s1335_s5 }
  0x60   : > { %s1337_s23 = scalar_lea.vmem %s1336_s5, 128  ;;  %p1338_p11 = scmp.lt.s32.totalorder %s222_s20, %s1336_s5 }
  0x61   : > { %p1333_p6 = pnand %p1331_p9, %p1567_p4  ;;  %p1339_p2 = scmp.lt.s32.totalorder %s1337_s23, %s1330_s1 }
  0x63   : > { %p1334_p13 = pneg %p1333_p6  ;;  %p1340_p0 = por %p1339_p2, %p1338_p11 }
  0x65   : > { %p1341_p5 = pnand %p1340_p0, %p1334_p13 }
  0x67   : > { %1344 = shalt.err (!%p1341_p5)
}
  0x68   : > { %p1868_p7 = scmp.ne.s32.totalorder %s1862_s4, 0  ;;  %p1869_p3 = scmp.ne.s32.totalorder %s1867_s19, 0 }
  0x69   : > { %s1659_s21 = sand.u32 (!%p1869_p3), 1, %s1415_s13   ;;  %p1870_p0 = scmp.ne.s32.totalorder (!%p1869_p3), %s1858_s24, 0 }
  0x6a   : > { %1162 = dma.hbm_to_vmem [thread:$0]  (!%p1868_p7), %s1612_s7, 64, %s222_s20, %s1561_s11  }
  0x6b   : > { %230 = sbr.rel (%p1869_p3) target bundleno = 1562 (0x61a), region = 32  ;;  %s1662_s8 = sshll.u32 (!%p1869_p3), %s1659_s21, 2 }
  0x6c   : > { %s233_s26 = scalar_lea.sflag (!%p1869_p3), [#allocation6], %s1659_s21  ;;  %s236_s16 = scalar_lea.vmem (!%p1869_p3), [#allocation5], %s1662_s8 }
  0x72   : > { %1398 = dma.done.wait (%p1870_p0), %s233_s26, 64  }
  0x73   : > { %1400 = vsyncadd (%p1870_p0), %s233_s26, 4294967232  ;;  %s241_s4 = sand.u32 1, %s1498_s18   ;;  %s245_s19 = scalar_lea.vmem [#allocation8], %s1662_s8 }
  0x74   : > { %s242_s11 = scalar_lea.sflag [#allocation9], %s241_s4 }
  0x75   : > { %1402 = dma.done.wait (%p1870_p0), %s242_s11, 128  }
  0x76   : > { %1404 = vsyncadd (%p1870_p0), %s242_s11, 4294967168  ;;  %v1436_v0 = vmov 0.0   ;;  %vm1437_vm0 = vmmov 0   ;;  %vm309_vm1 = vcmask 64512   ;;  %v307_v1 = vld [vmem:[%s245_s19] sm:$0xf] }
  0x77   : > { %1097 = vmatprep.subr.bf16.mxu0 %v1436_v0  ;;  %1099 = vmatprep.mubr.msk.bf16.mxu0 %vm1437_vm0, %v1436_v0  ;;  %v303_v2 = vld [vmem:[%s236_s16] sm:$0xf]  ;;  %v314_v3 = vsel %vm309_vm1, %v307_v1, 0  ;;  %vm292_vm2 = vcmask 7168   ;;  %v1438_v7 = vmov -inf   ;;  %v1439_v13 = vmov 0  }
  0x78   : > { %1103 = vmatprep.subr.bf16.mxu1 %v1436_v0  ;;  %1105 = vmatprep.mubr.msk.bf16.mxu1 %vm1437_vm0, %v1436_v0  ;;  %v304_v4 = vunpack.c.l.bf16 %v303_v2  ;;  %293 = vst.msk [vmem:[#allocation2] sm:$0xff] %vm292_vm2, %v1438_v7  ;;  %294 = vst.msk [vmem:[#allocation2 + $0x8] sm:$0xff] %vm292_vm2, %v1438_v7  ;;  %v1069_v14 = vcombine.low %v307_v1, %v307_v1  ;;  %s1440_s18 = smov 120   ;;  %s1441_s24 = smov 112   ;;  %vm391_vm3 = vcmask 1043456   ;;  %vm301_vm4 = vcmask 261120  }
  0x79   : > { %1098 = vmatpush3.bf16.xpose.msra.mxu0 %v314_v3  ;;  %295 = vst.msk [vmem:[#allocation2 + $0x10] sm:$0xff] %vm292_vm2, %v1438_v7  ;;  %296 = vst.msk [vmem:[#allocation2 + $0x18] sm:$0xff] %vm292_vm2, %v1438_v7  ;;  %1227 = vset.pattern.permute.xlu0 %v1439_v13  ;;  %s1442_s7 = smov 104   ;;  %s254_s20 = scalar_lea.vmem [#allocation10], %s1662_s8  ;;  %vm581_vm5 = vcmask 130112   ;;  %vm720_vm6 = vcmask 195712  }
  0x7a   : > { %v305_v5 = vmul.f32 0.35355338, %v304_v4  ;;  %1115 = vmatprep.subr.bf16.mxu0 %v1436_v0  ;;  %297 = vst.msk [vmem:[#allocation3] sm:$0xff] %vm292_vm2, %v1436_v0  ;;  %298 = vst.msk [vmem:[#allocation3 + $0x8] sm:$0xff] %vm292_vm2, %v1436_v0  ;;  %1228 = vset.pattern.permute.xlu1 %v1439_v13  ;;  %v308_v19 = vld [vmem:[%s254_s20] sm:$0xf] }
  0x7b   : > { %299 = vst.msk [vmem:[#allocation3 + $0x10] sm:$0xff] %vm292_vm2, %v1436_v0  ;;  %300 = vst.msk [vmem:[#allocation3 + $0x18] sm:$0xff] %vm292_vm2, %v1436_v0  ;;  %444 = vrot.lane.b32.xlu1 %v1069_v14, %s1440_s18  ;;  %v393_v20 = vsel %vm391_vm3, %v308_v19, 0  ;;  %v1071_v58 = vcombine.low %v308_v19, %v308_v19  ;;  %s1443_s10 = smov 8   ;;  %s1444_s6 = smov 16   ;;  %vm859_vm7 = vcmask 261312  }
  0x7c   : > { %v306_v6 = vpack.c.bf16 %v305_v5, %v305_v5  ;;  %1104 = vmatpush3.bf16.msra.mxu1 %v393_v20  ;;  %302 = vst.msk [vmem:[#allocation4] sm:$0xff] %vm301_vm4, %v1436_v0  ;;  %s1445_s9 = smov 24   ;;  %s1078_s22 = sshll.u32 %s1423_s15, 6  ;;  %vm907_vm8 = vcmask 257024  }
  0x7d   : > { %1109 = vmatprep.subr.bf16.mxu1 %v1436_v0  ;;  %s286_s28 = scalar_lea.vmem [#allocation11], %s1662_s8  ;;  %s1796_s5 = scalar_lea.hbm %s1848_s3, %s1078_s22 }
  0x7e   : > { %s924_s30 = sshll.u32 %s286_s28, 4  ;;  %s910_s23 = scalar_lea.sflag [#allocation7], %s1659_s21  ;;  %s1798_s30 = int_to_ptr.vmem [resolvable:$true] %s924_s30 }
  0x7f   : > { %439 = vrot.lane.b32.xlu1 %v306_v6, %s1440_s18  ;;  %v356_v15 = vld [vmem:[#allocation2] sm:$0xff]  ;;  %v493_v54 = vld [vmem:[#allocation2 + $0x8] sm:$0xff]  ;;  %s1345_s26 = scalar_lea.vmem %s1798_s30, 64  ;;  %p1871_p10 = scmp.ne.s32.totalorder %s1859_s25, 0 }
  0x80   : > { %1100 = vmatmul.mubr.msk.bf16.vlgmr.msra.gmra.mrb[0].mxu0 %vm309_vm1, %v306_v6  ;;  %v635_v59 = vld [vmem:[#allocation2 + $0x10] sm:$0xff]  ;;  %v1743_v63 = vld [vmem:[#allocation2 + $0x18] sm:$0xff]  ;;  %p1346_p4 = scmp.ne.s32.totalorder %s1798_s30, %s1345_s26  ;;  %s1446_s15 = smov [#allocation11]  }
  0x81   : > { %1117 = vmatprep.mubr.msk.bf16.mxu0 %vm1437_vm0, %v1436_v0  ;;  %s1349_s8 = sshll.u32 %s1446_s15, 4  ;;  %s1350_s8 = int_to_ptr.vmem [resolvable:$false] %s1349_s8 }
  0x82   : > { %p1347_p12 = pnand %p1346_p4, %p1871_p10  ;;  %s1351_s16 = scalar_lea.vmem %s1350_s8, 128 }
  0x83   : > { %586 = vrot.lane.b32.xlu1 %v1069_v14, %s1441_s24  ;;  %p1352_p8 = scmp.lt.s32.totalorder %s1798_s30, %s1350_s8  ;;  %p1353_p9 = scmp.lt.s32.totalorder %s1351_s16, %s1345_s26 }
  0x84   : > { %p1348_p1 = pneg %p1347_p12 }
  0x85   : > { %p1354_p6 = por %p1353_p9, %p1352_p8 }
  0x87   : > { %584 = vrot.lane.b32.xlu1 %v306_v6, %s1441_s24  ;;  %p1355_p13 = pnand %p1354_p6, %p1348_p1 }
  0x8b   : > { %725 = vrot.lane.b32.xlu1 %v1069_v14, %s1442_s7 }
  0x8f   : > { %723 = vrot.lane.b32.xlu1 %v306_v6, %s1442_s7 }
  0xed   : > { %v445_v24 = vpop.permute.xlu1 %444 }
  0xee   : > { %v450_v27 = vsel %vm309_vm1, %v445_v24, 0 }
  0xf1   : > { %v440_v25 = vpop.permute.xlu1 %439 }
  0xf5   : > { %v587_v29 = vpop.permute.xlu1 %586 }
  0xf6   : > { %v592_v31 = vsel %vm309_vm1, %v587_v29, 0 }
  0xf9   : > { %v585_v30 = vpop.permute.xlu1 %584 }
  0xfd   : > { %v726_v32 = vpop.permute.xlu1 %725 }
  0xfe   : > { %v731_v33 = vsel %vm309_vm1, %v726_v32, 0 }
 0x101   : > { %v724_v34 = vpop.permute.xlu1 %723 }
 0x153   : > { %v350_v8 = vpop.f32.mrb[0].mxu0 }
 0x154   : > { %v1101_v9 = vpop.f32.mrb[1].mxu0  ;;  %v358_v10 = vsel %vm309_vm1, %v350_v8, -inf }
 0x155   : > { %359 = vmax.xlane.f32.xlu0 %v358_v10  ;;  %v353_v11 = vpop.f32.mrb[2].mxu0 }
 0x156   : > { %v1102_v12 = vpop.f32.mrb[3].mxu0 }
 0x1e2   : > { %v360_v16 = vpop.xlane.xlu0 %359 }
 0x1e3   : > { %v361_v17 = vmax.f32 %v356_v15, %v360_v16 }
 0x1e5   : > { %v362_v18 = vsub.f32 %v356_v15, %v361_v17  ;;  %437 = vst.msk [vmem:[#allocation2] sm:$0xff] %vm292_vm2, %v361_v17  ;;  %367 = vperm.xlu0 %1227, %v361_v17  }
 0x1e7   : > { %v363_v55 = vmul.f32 1.442695, %v362_v18  ;;  %v380_v18 = vld [vmem:[#allocation4] sm:$0xff] }
 0x264   : > { %v368_v21 = vpop.permute.xlu0 %367 }
 0x265   : > { %v370_v22 = vsub.f32 %v350_v8, %v368_v21 }
 0x267   : > { %v371_v23 = vmul.f32 1.442695, %v370_v22 }
 0x269   : > { %1231 = vpow2.f32 %v371_v23 }
 0x26a   : > { %1233 = vpow2.f32 %v363_v55 }
 0x273   : > { %v1710_v26 = vpop.eup %1231 }
 0x274   : > { %v387_v28 = vpack.c.bf16 %v1710_v26, %v1710_v26  ;;  %v1741_v62 = vpop.eup %1233  ;;  %v374_v5 = vsel %vm309_vm1, %v1710_v26, 0.0 }
 0x276   : > { %1106 = vmatmul.mubr.msk.bf16.vlgmr.msra.gmra.mrb[0].mxu1 %vm309_vm1, %v387_v28 }
 0x277   : > { %1110 = vmatpush3.bf16.xpose.msra.mxu1 %v450_v27  ;;  %1111 = vmatprep.mubr.msk.bf16.mxu1 %vm1437_vm0, %v1436_v0 }
 0x278   : > { %1121 = vmatprep.subr.bf16.mxu1 %v1436_v0 }
 0x27e   : > { %1112 = vmatmul.mubr.msk.bf16.vlgmr.msra.gmra.mrb[4].mxu1 %vm309_vm1, %v440_v25 }
 0x27f   : > { %1122 = vmatpush3.bf16.xpose.msra.mxu1 %v592_v31  ;;  %1123 = vmatprep.mubr.msk.bf16.mxu1 %vm1437_vm0, %v1436_v0 }
 0x280   : > { %1133 = vmatprep.subr.bf16.mxu1 %v1436_v0 }
 0x286   : > { %1124 = vmatmul.mubr.msk.bf16.vlgmr.msra.gmra.mrb[8].mxu1 %vm309_vm1, %v585_v30 }
 0x287   : > { %1134 = vmatpush3.bf16.xpose.msra.mxu1 %v731_v33  ;;  %1135 = vmatprep.mubr.msk.bf16.mxu1 %vm1437_vm0, %v1436_v0 }
 0x28e   : > { %1136 = vmatmul.mubr.msk.bf16.vlgmr.msra.gmra.mrb[12].mxu1 %vm309_vm1, %v724_v34 }
 0x349   : > { %v1729_v35 = vpop.f32.mrb[0].mxu1 }
 0x34a   : > { %v1107_v36 = vpop.f32.mrb[1].mxu1 }
 0x34b   : > { %v432_v37 = vpop.f32.mrb[2].mxu1 }
 0x34c   : > { %v1108_v38 = vpop.f32.mrb[3].mxu1 }
 0x351   : > { %v486_v39 = vpop.f32.mrb[4].mxu1 }
 0x352   : > { %v1113_v40 = vpop.f32.mrb[5].mxu1  ;;  %v496_v41 = vsel %vm309_vm1, %v486_v39, -inf }
 0x353   : > { %497 = vmax.xlane.f32.xlu1 %v496_v41  ;;  %v489_v42 = vpop.f32.mrb[6].mxu1 }
 0x354   : > { %v1114_v43 = vpop.f32.mrb[7].mxu1 }
 0x355   : > { %v495_v43 = vld [vmem:[#allocation3 + $0x8] sm:$0xff] }
 0x359   : > { %v628_v44 = vpop.f32.mrb[8].mxu1 }
 0x35a   : > { %v1125_v45 = vpop.f32.mrb[9].mxu1  ;;  %v638_v46 = vsel %vm309_vm1, %v628_v44, -inf }
 0x35b   : > { %639 = vmax.xlane.f32.xlu0 %v638_v46  ;;  %v631_v47 = vpop.f32.mrb[10].mxu1 }
 0x35c   : > { %v1126_v48 = vpop.f32.mrb[11].mxu1  ;;  %v637_v47 = vld [vmem:[#allocation3 + $0x10] sm:$0xff] }
 0x361   : > { %v1733_v49 = vpop.f32.mrb[12].mxu1 }
 0x362   : > { %v1137_v50 = vpop.f32.mrb[13].mxu1  ;;  %v777_v51 = vsel %vm309_vm1, %v1733_v49, -inf }
 0x363   : > { %778 = vmax.xlane.f32.xlu1 %v777_v51  ;;  %v770_v52 = vpop.f32.mrb[14].mxu1 }
 0x364   : > { %v1138_v53 = vpop.f32.mrb[15].mxu1  ;;  %v776_v52 = vld [vmem:[#allocation3 + $0x18] sm:$0xff] }
 0x3e0   : > { %v498_v56 = vpop.xlane.xlu1 %497 }
 0x3e1   : > { %v499_v57 = vmax.f32 %v493_v54, %v498_v56 }
 0x3e3   : > { %583 = vst.msk [vmem:[#allocation2 + $0x8] sm:$0xff] %vm292_vm2, %v499_v57  ;;  %505 = vperm.xlu1 %1228, %v499_v57   ;;  %v500_v4 = vsub.f32 %v493_v54, %v499_v57 }
 0x3e5   : > { %v501_v6 = vmul.f32 1.442695, %v500_v4 }
 0x3e7   : > { %528 = vrot.lane.b32.xlu1 %v1071_v58, %s1440_s18  ;;  %1235 = vpow2.f32 %v501_v6 }
 0x3e8   : > { %v640_v60 = vpop.xlane.xlu0 %639 }
 0x3e9   : > { %v641_v61 = vmax.f32 %v635_v59, %v640_v60 }
 0x3eb   : > { %722 = vst.msk [vmem:[#allocation2 + $0x10] sm:$0xff] %vm292_vm2, %v641_v61  ;;  %647 = vperm.xlu0 %1227, %v641_v61   ;;  %v642_v7 = vsub.f32 %v635_v59, %v641_v61 }
 0x3ed   : > { %v643_v8 = vmul.f32 1.442695, %v642_v7 }
 0x3ef   : > { %383 = vperm.xlu0 %1227, %v1741_v62   ;;  %1237 = vpow2.f32 %v643_v8 }
 0x3f0   : > { %v779_v1 = vpop.xlane.xlu1 %778 }
 0x3f1   : > { %v1747_v2 = vmax.f32 %v1743_v63, %v779_v1  ;;  %v1236_v9 = vpop.eup %1235 }
 0x3f3   : > { %v781_v3 = vsub.f32 %v1743_v63, %v1747_v2  ;;  %861 = vst.msk [vmem:[#allocation2 + $0x18] sm:$0xff] %vm292_vm2, %v1747_v2  ;;  %786 = vperm.xlu1 %1228, %v1747_v2  }
 0x3f7   : > { %667 = vrot.lane.b32.xlu1 %v1071_v58, %s1441_s24 }
 0x3f9   : > { %v1238_v10 = vpop.eup %1237 }
 0x3fa   : > { %v653_v48 = vmul.f32 %v1238_v10, %v637_v47 }
 0x3fb   : > { %806 = vrot.lane.b32.xlu1 %v1071_v58, %s1442_s7 }
 0x41f   : > { %375 = vadd.xlane.f32.xlu1 %v374_v5 }
 0x430   : > { %520 = vperm.xlu1 %1228, %v1236_v9  }
 0x434   : > { %662 = vperm.xlu1 %1228, %v1238_v10  }
 0x462   : > { %v506_v11 = vpop.permute.xlu1 %505 }
 0x463   : > { %v508_v12 = vsub.f32 %v486_v39, %v506_v11  ;;  %v357_v39 = vld [vmem:[#allocation3] sm:$0xff] }
 0x464   : > { %v373_v40 = vmul.f32 %v1741_v62, %v357_v39 }
 0x465   : > { %v509_v13 = vmul.f32 1.442695, %v508_v12 }
 0x466   : > { %v529_v14 = vpop.permute.xlu1 %528 }
 0x467   : > { %1239 = vpow2.f32 %v509_v13  ;;  %v534_v15 = vsel %vm391_vm3, %v529_v14, 0 }
 0x468   : > { %1116 = vmatpush3.bf16.msra.mxu0 %v534_v15 }
 0x469   : > { %1127 = vmatprep.subr.bf16.mxu0 %v1436_v0 }
 0x46a   : > { %v648_v16 = vpop.permute.xlu0 %647 }
 0x46b   : > { %v650_v17 = vsub.f32 %v628_v44, %v648_v16  ;;  %v782_v44 = vmul.f32 1.442695, %v781_v3 }
 0x46d   : > { %v651_v19 = vmul.f32 1.442695, %v650_v17 }
 0x46e   : > { %v384_v20 = vpop.permute.xlu0 %383 }
 0x46f   : > { %1241 = vpow2.f32 %v651_v19  ;;  %v386_v21 = vmul.f32 %v384_v20, %v380_v18 }
 0x471   : > { %v1240_v22 = vpop.eup %1239  ;;  %v435_v23 = vadd.f32 %v1729_v35, %v386_v21 }
 0x472   : > { %v787_v24 = vpop.permute.xlu1 %786  ;;  %v512_v25 = vsel %vm309_vm1, %v1240_v22, 0.0  ;;  %v524_v26 = vpack.c.bf16 %v1240_v22, %v1240_v22 }
 0x473   : > { %436 = vst.msk [vmem:[#allocation4] sm:$0xff] %vm309_vm1, %v435_v23  ;;  %v789_v27 = vsub.f32 %v1733_v49, %v787_v24  ;;  %513 = vadd.xlane.f32.xlu0 %v512_v25 }
 0x474   : > { %1118 = vmatmul.mubr.msk.bf16.vlgmr.msra.gmra.mrb[4].mxu0 %vm309_vm1, %v524_v26 }
 0x475   : > { %v790_v28 = vmul.f32 1.442695, %v789_v27  ;;  %1129 = vmatprep.mubr.msk.bf16.mxu0 %vm1437_vm0, %v1436_v0 }
 0x476   : > { %v668_v29 = vpop.permute.xlu1 %667 }
 0x477   : > { %1243 = vpow2.f32 %v790_v28  ;;  %v673_v30 = vsel %vm391_vm3, %v668_v29, 0 }
 0x478   : > { %1128 = vmatpush3.bf16.msra.mxu0 %v673_v30  ;;  %1245 = vpow2.f32 %v782_v44 }
 0x479   : > { %v1242_v31 = vpop.eup %1241  ;;  %1139 = vmatprep.subr.bf16.mxu0 %v1436_v0 }
 0x47a   : > { %v654_v32 = vsel %vm309_vm1, %v1242_v31, 0.0  ;;  %v666_v33 = vpack.c.bf16 %v1242_v31, %v1242_v31  ;;  %v807_v34 = vpop.permute.xlu1 %806  ;;  %v517_v14 = vld [vmem:[#allocation4] sm:$0xff] }
 0x47b   : > { %655 = vadd.xlane.f32.xlu0 %v654_v32  ;;  %v812_v35 = vsel %vm391_vm3, %v807_v34, 0 }
 0x47c   : > { %1130 = vmatmul.mubr.msk.bf16.vlgmr.msra.gmra.mrb[8].mxu0 %vm309_vm1, %v666_v33 }
 0x47d   : > { %1140 = vmatpush3.bf16.msra.mxu0 %v812_v35  ;;  %1141 = vmatprep.mubr.msk.bf16.mxu0 %vm1437_vm0, %v1436_v0  ;;  %v511_v0 = vmul.f32 %v1236_v9, %v495_v43 }
 0x481   : > { %v1244_v36 = vpop.eup %1243 }
 0x482   : > { %v793_v37 = vsel %vm309_vm1, %v1244_v36, 0.0  ;;  %v805_v38 = vpack.c.bf16 %v1244_v36, %v1244_v36  ;;  %v1246_v51 = vpop.eup %1245 }
 0x483   : > { %794 = vadd.xlane.f32.xlu0 %v793_v37  ;;  %v792_v53 = vmul.f32 %v1246_v51, %v776_v52 }
 0x484   : > { %1142 = vmatmul.mubr.msk.bf16.vlgmr.msra.gmra.mrb[12].mxu0 %vm309_vm1, %v805_v38 }
 0x4ac   : > { %v376_v41 = vpop.xlane.xlu1 %375 }
 0x4ad   : > { %v377_v42 = vadd.f32 %v376_v41, %v373_v40 }
 0x4af   : > { %379 = vst.msk [vmem:[#allocation3] sm:$0xff] %vm292_vm2, %v377_v42 }
 0x4b0   : > { %v521_v13 = vpop.permute.xlu1 %520 }
 0x4b1   : > { %v523_v15 = vmul.f32 %v521_v13, %v517_v14 }
 0x4b4   : > { %v663_v18 = vpop.permute.xlu1 %662 }
 0x4b6   : > { %v866_v56 = vld [vmem:[#allocation3] sm:$0xff] }
 0x4b7   : > { %1247 = vrcp.f32 %v866_v56 }
 0x4c1   : > { %v1248_v62 = vpop.eup %1247 }
 0x500   : > { %v514_v45 = vpop.xlane.xlu0 %513 }
 0x501   : > { %v515_v46 = vadd.f32 %v514_v45, %v511_v0 }
 0x503   : > { %516 = vst.msk [vmem:[#allocation3 + $0x8] sm:$0xff] %vm292_vm2, %v515_v46 }
 0x508   : > { %v656_v49 = vpop.xlane.xlu0 %655 }
 0x509   : > { %v657_v50 = vadd.f32 %v656_v49, %v653_v48 }
 0x50a   : > { %v876_v63 = vld [vmem:[#allocation3 + $0x8] sm:$0xff] }
 0x50b   : > { %658 = vst.msk [vmem:[#allocation3 + $0x10] sm:$0xff] %vm292_vm2, %v657_v50 }
 0x510   : > { %v795_v54 = vpop.xlane.xlu0 %794 }
 0x511   : > { %v796_v55 = vadd.f32 %v795_v54, %v792_v53 }
 0x512   : > { %v886_v57 = vld [vmem:[#allocation3 + $0x10] sm:$0xff] }
 0x513   : > { %797 = vst.msk [vmem:[#allocation3 + $0x18] sm:$0xff] %vm292_vm2, %v796_v55  ;;  %1249 = vrcp.f32 %v886_v57 }
 0x514   : > { %1251 = vrcp.f32 %v876_v63 }
 0x51a   : > { %v896_v6 = vld [vmem:[#allocation3 + $0x18] sm:$0xff] }
 0x51b   : > { %1253 = vrcp.f32 %v896_v6 }
 0x51d   : > { %v1250_v1 = vpop.eup %1249 }
 0x51e   : > { %v1252_v11 = vpop.eup %1251 }
 0x525   : > { %v1254_v12 = vpop.eup %1253 }
 0x547   : > { %v570_v58 = vpop.f32.mrb[4].mxu0 }
 0x548   : > { %v1119_v59 = vpop.f32.mrb[5].mxu0  ;;  %577 = vrot.lane.b32.xlu0 %v570_v58, %s1443_s10 }
 0x549   : > { %v573_v60 = vpop.f32.mrb[6].mxu0 }
 0x54a   : > { %v1120_v61 = vpop.f32.mrb[7].mxu0 }
 0x54c   : > { %870 = vperm.xlu0 %1227, %v1248_v62  }
 0x54f   : > { %v709_v2 = vpop.f32.mrb[8].mxu0 }
 0x550   : > { %v1131_v3 = vpop.f32.mrb[9].mxu0  ;;  %716 = vrot.lane.b32.xlu1 %v709_v2, %s1444_s6  ;;  %890 = vperm.xlu0 %1227, %v1250_v1  }
 0x551   : > { %v712_v4 = vpop.f32.mrb[10].mxu0 }
 0x552   : > { %v1132_v5 = vpop.f32.mrb[11].mxu0 }
 0x554   : > { %801 = vperm.xlu1 %1228, %v1246_v51  }
 0x557   : > { %v848_v7 = vpop.f32.mrb[12].mxu0 }
 0x558   : > { %v1143_v8 = vpop.f32.mrb[13].mxu0  ;;  %855 = vrot.lane.b32.xlu1 %v848_v7, %s1445_s9 }
 0x559   : > { %v851_v9 = vpop.f32.mrb[14].mxu0 }
 0x55a   : > { %v1144_v10 = vpop.f32.mrb[15].mxu0 }
 0x55c   : > { %880 = vperm.xlu1 %1228, %v1252_v11  }
 0x560   : > { %900 = vperm.xlu1 %1228, %v1254_v12  }
 0x5ba   : > { %v578_v16 = vpop.permute.xlu0 %577 }
 0x5bb   : > { %v580_v17 = vadd.f32 %v578_v16, %v523_v15 }
 0x5bd   : > { %582 = vst.msk [vmem:[#allocation4] sm:$0xff] %vm581_vm5, %v580_v17 }
 0x5c2   : > { %v717_v21 = vpop.permute.xlu1 %716 }
 0x5c4   : > { %v659_v19 = vld [vmem:[#allocation4] sm:$0xff] }
 0x5c5   : > { %v665_v20 = vmul.f32 %v663_v18, %v659_v19 }
 0x5c7   : > { %v719_v22 = vadd.f32 %v717_v21, %v665_v20 }
 0x5c9   : > { %721 = vst.msk [vmem:[#allocation4] sm:$0xff] %vm720_vm6, %v719_v22 }
 0x5cb   : > { %v871_v28 = vpop.permute.xlu0 %870 }
 0x5cf   : > { %v891_v34 = vpop.permute.xlu0 %890 }
 0x5d0   : > { %v798_v24 = vld [vmem:[#allocation4] sm:$0xff] }
 0x5d3   : > { %v802_v23 = vpop.permute.xlu1 %801 }
 0x5d4   : > { %v804_v25 = vmul.f32 %v802_v23, %v798_v24 }
 0x5d7   : > { %v856_v26 = vpop.permute.xlu1 %855 }
 0x5d8   : > { %v858_v27 = vadd.f32 %v856_v26, %v804_v25 }
 0x5da   : > { %860 = vst.msk [vmem:[#allocation4] sm:$0xff] %vm859_vm7, %v858_v27 }
 0x5db   : > { %v881_v31 = vpop.permute.xlu1 %880 }
 0x5df   : > { %v901_v37 = vpop.permute.xlu1 %900 }
 0x5e1   : > { %v865_v29 = vld [vmem:[#allocation4] sm:$0xff] }
 0x5e2   : > { %v873_v30 = vmul.f32 %v871_v28, %v865_v29 }
 0x5e4   : > { %874 = vst.msk [vmem:[#allocation4] sm:$0xff] %vm309_vm1, %v873_v30 }
 0x5eb   : > { %v875_v32 = vld [vmem:[#allocation4] sm:$0xff] }
 0x5ec   : > { %v883_v33 = vmul.f32 %v881_v31, %v875_v32 }
 0x5ee   : > { %884 = vst.msk [vmem:[#allocation4] sm:$0xff] %vm581_vm5, %v883_v33 }
 0x5f5   : > { %v885_v35 = vld [vmem:[#allocation4] sm:$0xff] }
 0x5f6   : > { %v893_v36 = vmul.f32 %v891_v34, %v885_v35 }
 0x5f8   : > { %894 = vst.msk [vmem:[#allocation4] sm:$0xff] %vm720_vm6, %v893_v36 }
 0x5ff   : > { %v895_v38 = vld [vmem:[#allocation4] sm:$0xff] }
 0x600   : > { %v903_v39 = vmul.f32 %v901_v37, %v895_v38 }
 0x602   : > { %904 = vst.msk [vmem:[#allocation4] sm:$0xff] %vm859_vm7, %v903_v39 }
 0x609   : > { %v905_v40 = vld [vmem:[#allocation4] sm:$0xff] }
 0x60a   : > { %v906_v41 = vpack.c.bf16 %v905_v40, %v905_v40 }
 0x60c   : > { %908 = vst.msk [vmem:[%s286_s28] sm:$0xf] %vm907_vm8, %v906_v41 }
 0x60d   : > { %1358 = shalt.err (!%p1355_p13)
}
 0x60e   : > { %s1359_s21 = scalar_lea.hbm %s1796_s5, 64  ;;  %s1363_s19 = scalar_lea.hbm %s1848_s3, 128 }
 0x60f   : > { %p1360_p11 = scmp.ne.s32.totalorder %s1796_s5, %s1359_s21  ;;  %p1364_p7 = scmp.lt.u32.totalorder %s1796_s5, %s1848_s3 }
 0x610   : > { %p1365_p3 = scmp.lt.u32.totalorder %s1363_s19, %s1359_s21  ;;  %p1367_p4 = scmp.lt.u32.totalorder %s1359_s21, %s1796_s5 }
 0x611   : > { %p1361_p2 = pnand %p1360_p11, %p1871_p10 }
 0x612   : > { %p1366_p0 = por %p1365_p3, %p1364_p7 }
 0x613   : > { %p1362_p5 = pneg %p1361_p2 }
 0x614   : > { %p1368_p12 = por %p1367_p4, %p1366_p0 }
 0x616   : > { %p1369_p1 = pnand %p1368_p12, %p1362_p5 }
 0x618   : > { %1372 = shalt.err (!%p1369_p1)
}
 0x619   : > { %1151 = dma.vmem_to_hbm [thread:$0]  (%p1871_p10), %s1798_s30, 64, %s1796_s5, %s910_s23  }
 0x61a PF: > { %s936_s7 = sand.u32 1, %s1411_s12   ;;  %p1872_p8 = scmp.ne.s32.totalorder %s1861_s27, 0 }
 0x61b   : > { %p1873_p9 = scmp.ge.s32.totalorder %s1431_s17, 2  ;;  %s937_s20 = scalar_lea.sflag [#allocation7], %s936_s7 }
 0x61d   : > { %p1164_p6 = pnand %p1873_p9, %p1872_p8 }
 0x61f   : > { %1406 = dma.done.wait (!%p1164_p6), %s937_s20, 64  }
 0x620   : > { %1408 = vsyncadd (!%p1164_p6), %s937_s20, 4294967232  ;;  %s22_s17 = sadd.s32 1, %s1431_s17   ;;  %s1874_s25 = sld [smem:[#allocation17_spill]] }
 0x621   : > { %p19_p13 = scmp.ge.s32.totalorder %s22_s17, 4   ;;  %s1875_s15 = sld [smem:[#allocation15_spill]] }
 0x622   : > { %s1876_s16 = sld [smem:[#allocation16_spill]]  ;;  %s1877_s12 = smov %s1415_s13 }
 0x623   : > { %s1878_s13 = smov %s1419_s14  ;;  %21 = sbr.rel (!%p19_p13) target bundleno = 10 (0xa), region = 115 }
 0x626   : > { %s1879_s14 = smov %s1874_s25 }
 0x62a   :  { %942 = vsyncpa [#allocation6], 1 }
 0x62b   :  { %944 = vsyncpa [#allocation6 + $0x1], 1 }
 0x62c   :  { %945 = vsyncpa [#allocation9], 1 }
 0x62d   :  { %947 = vsyncpa [#allocation9 + $0x1], 1 }
 0x62e   :  { %948 = vsyncpa [#allocation7], 1 }
 0x62f   :  { %950 = vsyncpa [#allocation7 + $0x1], 1 }

// kernel: transformer_fwd.19
= control target key start
LH: loop header
LB: loop body
LE: loop exit
PB: predicated region body
PF: predicated region fallthrough
CT: control target
= control target key end

     0   :  { %11 = vsyncpa [#allocation4], 0  ;;  %s670_s0 = inlined_call_operand.hbm [shape: bf16[16,64], index: 0, kind: input, shape index: {}]   ;;  %s671_s1 = inlined_call_operand.hbm [shape: bf16[64,32], index: 1, kind: input, shape index: {}]   ;;  %s672_s2 = inlined_call_operand.hbm [shape: f32[1,32], index: 2, kind: input, shape index: {}]   ;;  %s673_s3 = inlined_call_operand.hbm [shape: bf16[16,32], index: 3, kind: input, shape index: {}]   ;;  %s674_s4 = inlined_call_operand.hbm [shape: f32[1,32], index: 4, kind: input, shape index: {}]   ;;  %s675_s5 = inlined_call_operand.hbm [shape: f32[1,32], index: 5, kind: input, shape index: {}]   ;;  %s676_s6 = inlined_call_operand.hbm [shape: bf16[16,32], index: 6, kind: output, shape index: {}]  }
   0x1   :  { %12 = vsyncpa [#allocation7], 0 }
   0x2   :  { %13 = vsyncpa [#allocation10], 0 }
   0x3   :  { %14 = vsyncpa [#allocation13], 0 }
   0x4   :  { %15 = vsyncpa [#allocation5], 0  ;;  %s513_s21 = smov [#allocation6]   ;;  %s514_s23 = smov [#allocation9]  }
   0x5   :  { %s33_s22 = sshll.u32 %s513_s21, 4  ;;  %s55_s24 = sshll.u32 %s514_s23, 4  ;;  %s34_s22 = int_to_ptr.vmem [resolvable:$true] %s33_s22  ;;  %s559_s24 = int_to_ptr.vmem [resolvable:$true] %s55_s24 }
   0x6   :  { %s349_s27 = scalar_lea.hbm %s671_s1, 512 }
   0x7   :  { %p350_p0 = scmp.ne.s32.totalorder %s671_s1, %s349_s27  ;;  %p353_p1 = scmp.lt.u32.totalorder %s349_s27, %s671_s1 }
   0x9   :  { %p355_p2 = pnand %p353_p1, %p350_p0 }
   0xb   :  { %358 = shalt.err (!%p355_p2)
}
   0xc   :  { %s359_s8 = scalar_lea.vmem %s34_s22, 512  ;;  %p364_p4 = scmp.lt.s32.totalorder %s34_s22, %s34_s22 }
   0xd   :  { %p360_p3 = scmp.ne.s32.totalorder %s34_s22, %s359_s8  ;;  %p365_p5 = scmp.lt.s32.totalorder %s359_s8, %s359_s8 }
   0xf   :  { %p366_p6 = por %p365_p5, %p364_p4 }
  0x11   :  { %p367_p7 = pnand %p366_p6, %p360_p3 }
  0x13   :  { %370 = shalt.err (!%p367_p7)
}
  0x14   :  { %s515_s9 = smov 64   ;;  %s516_s10 = smov 4  }
  0x15   :  { %39 = dma.hbm_to_vmem [thread:$0]  %s671_s1, 512, %s34_s22, [#allocation7], %s515_s9, %s515_s9, %s516_s10  }
  0x16   :  { %s371_s15 = scalar_lea.hbm %s673_s3, 128 }
  0x17   :  { %p372_p8 = scmp.ne.s32.totalorder %s673_s3, %s371_s15  ;;  %p375_p9 = scmp.lt.u32.totalorder %s371_s15, %s673_s3 }
  0x19   :  { %p377_p10 = pnand %p375_p9, %p372_p8 }
  0x1b   :  { %380 = shalt.err (!%p377_p10)
}
  0x1c   :  { %s381_s20 = scalar_lea.vmem %s559_s24, 128  ;;  %p386_p12 = scmp.lt.s32.totalorder %s559_s24, %s559_s24 }
  0x1d   :  { %p382_p11 = scmp.ne.s32.totalorder %s559_s24, %s381_s20  ;;  %p387_p13 = scmp.lt.s32.totalorder %s381_s20, %s381_s20 }
  0x1f   :  { %p388_p0 = por %p387_p13, %p386_p12 }
  0x21   :  { %p389_p1 = pnand %p388_p0, %p382_p11 }
  0x23   :  { %392 = shalt.err (!%p389_p1)
}
  0x24   :  { %61 = dma.hbm_to_vmem [thread:$0]  %s673_s3, 128, %s559_s24, [#allocation10], %s515_s9, %s515_s9, %s516_s10  }
  0x25   :  { %s517_s22 = smov [#allocation3]   ;;  %s518_s25 = smov [#allocation8]  }
  0x26   :  { %s21_s23 = sshll.u32 %s517_s22, 4  ;;  %s46_s26 = sshll.u32 %s518_s25, 4  ;;  %s22_s23 = int_to_ptr.vmem [resolvable:$true] %s21_s23  ;;  %s47_s26 = int_to_ptr.vmem [resolvable:$true] %s46_s26 }
  0x27   :  { %s393_s29 = scalar_lea.hbm %s670_s0, 128 }
  0x28   :  { %p394_p2 = scmp.ne.s32.totalorder %s670_s0, %s393_s29  ;;  %p397_p3 = scmp.lt.u32.totalorder %s393_s29, %s670_s0 }
  0x2a   :  { %p399_p4 = pnand %p397_p3, %p394_p2 }
  0x2c   :  { %402 = shalt.err (!%p399_p4)
}
  0x2d   :  { %s403_s3 = scalar_lea.vmem %s22_s23, 128  ;;  %p408_p6 = scmp.lt.s32.totalorder %s22_s23, %s22_s23 }
  0x2e   :  { %p404_p5 = scmp.ne.s32.totalorder %s22_s23, %s403_s3  ;;  %p409_p7 = scmp.lt.s32.totalorder %s403_s3, %s403_s3 }
  0x30   :  { %p410_p8 = por %p409_p7, %p408_p6 }
  0x32   :  { %p411_p9 = pnand %p410_p8, %p404_p5 }
  0x34   :  { %414 = shalt.err (!%p411_p9)
}
  0x35   :  { %27 = dma.hbm_to_vmem [thread:$0]  %s670_s0, 128, %s22_s23, [#allocation4], %s515_s9, %s515_s9, %s516_s10  }
  0x36   :  { %s415_s15 = scalar_lea.hbm %s672_s2, 16 }
  0x37   :  { %p416_p10 = scmp.ne.s32.totalorder %s672_s2, %s415_s15  ;;  %p419_p11 = scmp.lt.u32.totalorder %s415_s15, %s672_s2 }
  0x39   :  { %p421_p12 = pnand %p419_p11, %p416_p10 }
  0x3b   :  { %424 = shalt.err (!%p421_p12)
}
  0x3c   :  { %s425_s20 = scalar_lea.vmem %s47_s26, 16  ;;  %s429_s1 = scalar_lea.vmem %s47_s26, 32 }
  0x3d   :  { %p426_p13 = scmp.ne.s32.totalorder %s47_s26, %s425_s20  ;;  %p430_p0 = scmp.lt.s32.totalorder %s47_s26, %s47_s26 }
  0x3e   :  { %p431_p1 = scmp.lt.s32.totalorder %s429_s1, %s425_s20 }
  0x40   :  { %p432_p2 = por %p431_p1, %p430_p0 }
  0x42   :  { %p433_p3 = pnand %p432_p2, %p426_p13 }
  0x44   :  { %436 = shalt.err (!%p433_p3)
}
  0x45   :  { %49 = dma.hbm_to_vmem [thread:$0]  %s672_s2, 16, %s47_s26, [#allocation7]  }
  0x46   :  { %s519_s22 = smov [#allocation11]   ;;  %s520_s25 = smov [#allocation12]  }
  0x47   :  { %s68_s23 = sshll.u32 %s519_s22, 4  ;;  %s78_s27 = sshll.u32 %s520_s25, 4  ;;  %s69_s23 = int_to_ptr.vmem [resolvable:$true] %s68_s23  ;;  %s79_s27 = int_to_ptr.vmem [resolvable:$true] %s78_s27 }
  0x48   :  { %s437_s30 = scalar_lea.hbm %s674_s4, 16 }
  0x49   :  { %p438_p4 = scmp.ne.s32.totalorder %s674_s4, %s437_s30  ;;  %p441_p5 = scmp.lt.u32.totalorder %s437_s30, %s674_s4 }
  0x4b   :  { %p443_p6 = pnand %p441_p5, %p438_p4 }
  0x4d   :  { %446 = shalt.err (!%p443_p6)
}
  0x4e   :  { %s447_s2 = scalar_lea.vmem %s69_s23, 16  ;;  %s451_s26 = scalar_lea.vmem %s69_s23, 32 }
  0x4f   :  { %p448_p7 = scmp.ne.s32.totalorder %s69_s23, %s447_s2  ;;  %p452_p8 = scmp.lt.s32.totalorder %s69_s23, %s69_s23 }
  0x50   :  { %p453_p9 = scmp.lt.s32.totalorder %s451_s26, %s447_s2 }
  0x52   :  { %p454_p10 = por %p453_p9, %p452_p8 }
  0x54   :  { %p455_p11 = pnand %p454_p10, %p448_p7 }
  0x56   :  { %458 = shalt.err (!%p455_p11)
}
  0x57   :  { %71 = dma.hbm_to_vmem [thread:$0]  %s674_s4, 16, %s69_s23, [#allocation10]  }
  0x58   :  { %s459_s15 = scalar_lea.hbm %s675_s5, 16 }
  0x59   :  { %p460_p12 = scmp.ne.s32.totalorder %s675_s5, %s459_s15  ;;  %p463_p13 = scmp.lt.u32.totalorder %s459_s15, %s675_s5 }
  0x5b   :  { %p465_p0 = pnand %p463_p13, %p460_p12 }
  0x5d   :  { %468 = shalt.err (!%p465_p0)
}
  0x5e   :  { %s469_s20 = scalar_lea.vmem %s79_s27, 16  ;;  %s473_s1 = scalar_lea.vmem %s79_s27, 32 }
  0x5f   :  { %p470_p1 = scmp.ne.s32.totalorder %s79_s27, %s469_s20  ;;  %p474_p2 = scmp.lt.s32.totalorder %s79_s27, %s79_s27 }
  0x60   :  { %p475_p3 = scmp.lt.s32.totalorder %s473_s1, %s469_s20 }
  0x62   :  { %p476_p4 = por %p475_p3, %p474_p2 }
  0x64   :  { %p477_p5 = pnand %p476_p4, %p470_p1 }
  0x66   :  { %480 = shalt.err (!%p477_p5)
}
  0x67   :  { %81 = dma.hbm_to_vmem [thread:$0]  %s675_s5, 16, %s79_s27, [#allocation13]  }
  0x68   :  { %503 = dma.done.wait [#allocation4], 128  }
  0x69   :  { %504 = vsyncadd [#allocation4], 4294967168 }
  0x6a   :  { %505 = dma.done.wait [#allocation7], 528  }
  0x6b   :  { %506 = vsyncadd [#allocation7], 4294966768 }
  0x6c   :  { %507 = dma.done.wait [#allocation10], 144  }
  0x6d   :  { %508 = vsyncadd [#allocation10], 4294967152 }
  0x6e   :  { %509 = dma.done.wait [#allocation13], 16  }
  0x6f   :  { %510 = vsyncadd [#allocation13], 4294967280  ;;  %vm105_vm0 = vcmask 261120   ;;  %v521_v0 = vmov 0.0   ;;  %vm522_vm1 = vmmov 0   ;;  %v340_v1 = vld [vmem:[#allocation6] sm:$0xff]  }
  0x70   :  { %317 = vmatprep.subr.bf16.mxu0 %v521_v0  ;;  %325 = vmatprep.mubr.msk.bf16.mxu0 %vm522_vm1, %v521_v0  ;;  %106 = vst.msk [vmem:[#allocation2] sm:$0xff] %vm105_vm0, %v521_v0  ;;  %107 = vst.msk [vmem:[#allocation2 + $0x8] sm:$0xff] %vm105_vm0, %v521_v0  ;;  %v341_v2 = vld [vmem:[#allocation6 + $0x8] sm:$0xff]   ;;  %v342_v3 = vld [vmem:[#allocation6 + $0x10] sm:$0xff]   ;;  %vm149_vm2 = vcmask 523264   ;;  %vm272_vm3 = vcmask 257024  }
  0x71   :  { %318 = vmatpush3.bf16.msra.mxu0 %v340_v1  ;;  %v343_v4 = vld [vmem:[#allocation6 + $0x18] sm:$0xff]   ;;  %v309_v14 = vld [vmem:[#allocation9] sm:$0xff]   ;;  %v301_v15 = vld [vmem:[#allocation8] ss:$0 sm:$0xff]  ;;  %s523_s5 = smov [#allocation14]  }
  0x72   :  { %319 = vmatprep.subr.bf16.mxu0 %v521_v0  ;;  %v344_v5 = vld [vmem:[#allocation3] sm:$0xff]   ;;  %v310_v16 = vunpack.c.l.bf16 %v309_v14  ;;  %v311_v19 = vunpack.c.h.bf16 %v309_v14  ;;  %v302_v43 = vld [vmem:[#allocation11] ss:$0 sm:$0xff]  ;;  %v303_v45 = vld [vmem:[#allocation12] ss:$0 sm:$0xff]  ;;  %s280_s21 = sshll.u32 %s523_s5, 4  ;;  %s281_s21 = int_to_ptr.vmem [resolvable:$true] %s280_s21 }
  0x73   :  { %s481_s22 = scalar_lea.vmem %s281_s21, 128  ;;  %p486_p7 = scmp.lt.s32.totalorder %s281_s21, %s281_s21 }
  0x74   :  { %p482_p6 = scmp.ne.s32.totalorder %s281_s21, %s481_s22  ;;  %p487_p8 = scmp.lt.s32.totalorder %s481_s22, %s481_s22 }
  0x75   :  { %320 = vmatpush3.bf16.msra.mxu0 %v341_v2 }
  0x76   :  { %321 = vmatprep.subr.bf16.mxu0 %v521_v0  ;;  %p488_p9 = por %p487_p8, %p486_p7 }
  0x77   :  { %v108_v6 = vld [vmem:[#allocation2] sm:$0xff]  ;;  %v109_v8 = vld [vmem:[#allocation2 + $0x8] sm:$0xff] }
  0x78   :  { %p489_p10 = pnand %p488_p9, %p482_p6 }
  0x79   :  { %322 = vmatpush3.bf16.msra.mxu0 %v342_v3 }
  0x7a   :  { %323 = vmatprep.subr.bf16.mxu0 %v521_v0 }
  0x7d   :  { %324 = vmatpush3.bf16.msra.mxu0 %v343_v4 }
  0x80   :  { %326 = vmatmul.mubr.msk.bf16.vlgmr.msra.gmra.mrb[0].mxu0 %vm149_vm2, %v344_v5 }
 0x153   :  { %v187_v7 = vpop.f32.mrb[0].mxu0 }
 0x154   :  { %v194_v9 = vadd.f32 %v187_v7, %v108_v6  ;;  %v327_v10 = vpop.f32.mrb[1].mxu0 }
 0x155   :  { %v190_v11 = vpop.f32.mrb[2].mxu0 }
 0x156   :  { %197 = vst.msk [vmem:[#allocation2] sm:$0xff] %vm105_vm0, %v194_v9  ;;  %v195_v12 = vadd.f32 %v190_v11, %v109_v8  ;;  %v328_v13 = vpop.f32.mrb[3].mxu0 }
 0x158   :  { %198 = vst.msk [vmem:[#allocation2 + $0x8] sm:$0xff] %vm105_vm0, %v195_v12 }
 0x15d   :  { %v202_v17 = vld [vmem:[#allocation2] sm:$0xff] }
 0x15e   :  { %v211_v18 = vadd.f32 %v301_v15, %v202_v17 }
 0x15f   :  { %v203_v20 = vld [vmem:[#allocation2 + $0x8] sm:$0xff] }
 0x160   :  { %v217_v21 = vadd.f32 %v310_v16, %v211_v18  ;;  %v212_v22 = vadd.f32 %v301_v15, %v203_v20 }
 0x162   :  { %v219_v23 = vsel %vm105_vm0, %v217_v21, 0.0  ;;  %v218_v24 = vadd.f32 %v311_v19, %v212_v22 }
 0x163   :  { %220 = vadd.xlane.f32.xlu0 %v219_v23 }
 0x164   :  { %v222_v25 = vsel %vm105_vm0, %v218_v24, 0.0 }
 0x167   :  { %223 = vadd.xlane.f32.xlu0 %v222_v25 }
 0x1f0   :  { %v221_v26 = vpop.xlane.xlu0 %220 }
 0x1f1   :  { %v226_v27 = vmul.f32 0.03125, %v221_v26 }
 0x1f3   :  { %v228_v28 = vsub.f32 %v217_v21, %v226_v27 }
 0x1f4   :  { %v224_v29 = vpop.xlane.xlu0 %223 }
 0x1f5   :  { %v227_v30 = vmul.f32 0.03125, %v224_v29  ;;  %v230_v31 = vmul.f32 %v228_v28, %v228_v28 }
 0x1f7   :  { %v229_v32 = vsub.f32 %v218_v24, %v227_v30  ;;  %v232_v33 = vsel %vm105_vm0, %v230_v31, 0.0 }
 0x1f8   :  { %233 = vadd.xlane.f32.xlu1 %v232_v33 }
 0x1f9   :  { %v231_v34 = vmul.f32 %v229_v32, %v229_v32 }
 0x1fb   :  { %v235_v35 = vsel %vm105_vm0, %v231_v34, 0.0 }
 0x1fc   :  { %236 = vadd.xlane.f32.xlu1 %v235_v35 }
 0x285   :  { %v234_v36 = vpop.xlane.xlu1 %233 }
 0x286   :  { %v238_v37 = vmul.f32 0.03125, %v234_v36 }
 0x288   :  { %v240_v38 = vadd.f32 1e-05, %v238_v37 }
 0x289   :  { %v237_v39 = vpop.xlane.xlu1 %236 }
 0x28a   :  { %345 = vrsqrt.f32 %v240_v38  ;;  %v239_v40 = vmul.f32 0.03125, %v237_v39 }
 0x28c   :  { %v241_v41 = vadd.f32 1e-05, %v239_v40 }
 0x28e   :  { %347 = vrsqrt.f32 %v241_v41 }
 0x294   :  { %v346_v42 = vpop.eup %345 }
 0x295   :  { %v244_v44 = vmul.f32 %v346_v42, %v228_v28 }
 0x297   :  { %v253_v46 = vmul.f32 %v302_v43, %v244_v44 }
 0x298   :  { %v348_v47 = vpop.eup %347 }
 0x299   :  { %v245_v48 = vmul.f32 %v348_v47, %v229_v32  ;;  %v262_v49 = vadd.f32 %v303_v45, %v253_v46 }
 0x29b   :  { %v254_v50 = vmul.f32 %v302_v43, %v245_v48  ;;  %v306_v51 = vpack.c.bf16 %v262_v49, %v262_v49 }
 0x29d   :  { %v263_v52 = vadd.f32 %v303_v45, %v254_v50  ;;  %273 = vst.msk [vmem:[#allocation14] sm:$0xf] %vm272_vm3, %v306_v51 }
 0x29f   :  { %v307_v53 = vpack.c.bf16 %v263_v52, %v263_v52 }
 0x2a1   :  { %274 = vst.msk [vmem:[#allocation14 + $0x4] sm:$0xf] %vm272_vm3, %v307_v53 }
 0x2a2   :  { %492 = shalt.err (!%p489_p10)
}
 0x2a3   :  { %s493_s27 = scalar_lea.hbm %s676_s6, 128 }
 0x2a4   :  { %p494_p11 = scmp.ne.s32.totalorder %s676_s6, %s493_s27  ;;  %p497_p12 = scmp.lt.u32.totalorder %s493_s27, %s676_s6 }
 0x2a6   :  { %p499_p13 = pnand %p497_p12, %p494_p11 }
 0x2a8   :  { %502 = shalt.err (!%p499_p13)
}
 0x2a9   :  { %286 = dma.vmem_to_hbm [thread:$0]  %s281_s21, 128, %s676_s6, [#allocation5], %s515_s9, %s515_s9, %s516_s10  }
 0x2aa   :  { %511 = dma.done.wait [#allocation5], 128  }
 0x2ab   :  { %512 = vsyncadd [#allocation5], 4294967168 }
 0x2ac   :  { %290 = vsyncpa [#allocation4], 1 }
 0x2ad   :  { %291 = vsyncpa [#allocation7], 1 }
 0x2ae   :  { %292 = vsyncpa [#allocation10], 1 }
 0x2af   :  { %293 = vsyncpa [#allocation13], 1 }
 0x2b0   :  { %294 = vsyncpa [#allocation5], 1 }

// kernel: transformer_fwd.20
= control target key start
LH: loop header
LB: loop body
LE: loop exit
PB: predicated region body
PF: predicated region fallthrough
CT: control target
= control target key end

     0   :  { %8 = vsyncpa [#allocation4], 0  ;;  %s401_s0 = inlined_call_operand.hbm [shape: bf16[16,32], index: 0, kind: input, shape index: {}]   ;;  %s402_s1 = inlined_call_operand.hbm [shape: bf16[32,64], index: 1, kind: input, shape index: {}]   ;;  %s403_s2 = inlined_call_operand.hbm [shape: f32[1,64], index: 2, kind: input, shape index: {}]   ;;  %s404_s3 = inlined_call_operand.hbm [shape: bf16[16,64], index: 3, kind: output, shape index: {}]  }
   0x1   :  { %9 = vsyncpa [#allocation7], 0 }
   0x2   :  { %10 = vsyncpa [#allocation5], 0  ;;  %s305_s12 = smov [#allocation6]   ;;  %s306_s14 = smov [#allocation3]  }
   0x3   :  { %s28_s13 = sshll.u32 %s305_s12, 4  ;;  %s16_s15 = sshll.u32 %s306_s14, 4  ;;  %s29_s13 = int_to_ptr.vmem [resolvable:$true] %s28_s13  ;;  %s333_s15 = int_to_ptr.vmem [resolvable:$true] %s16_s15 }
   0x4   :  { %s211_s18 = scalar_lea.hbm %s402_s1, 256 }
   0x5   :  { %p212_p0 = scmp.ne.s32.totalorder %s402_s1, %s211_s18  ;;  %p215_p1 = scmp.lt.u32.totalorder %s211_s18, %s402_s1 }
   0x7   :  { %p217_p2 = pnand %p215_p1, %p212_p0 }
   0x9   :  { %220 = shalt.err (!%p217_p2)
}
   0xa   :  { %s221_s23 = scalar_lea.vmem %s29_s13, 256  ;;  %p226_p4 = scmp.lt.s32.totalorder %s29_s13, %s29_s13 }
   0xb   :  { %p222_p3 = scmp.ne.s32.totalorder %s29_s13, %s221_s23  ;;  %p227_p5 = scmp.lt.s32.totalorder %s221_s23, %s221_s23 }
   0xd   :  { %p228_p6 = por %p227_p5, %p226_p4 }
   0xf   :  { %p229_p7 = pnand %p228_p6, %p222_p3 }
  0x11   :  { %232 = shalt.err (!%p229_p7)
}
  0x12   :  { %s307_s24 = smov 64   ;;  %s308_s25 = smov 4  }
  0x13   :  { %34 = dma.hbm_to_vmem [thread:$0]  %s402_s1, 256, %s29_s13, [#allocation7], %s307_s24, %s307_s24, %s308_s25  }
  0x14   :  { %s233_s30 = scalar_lea.hbm %s401_s0, 128 }
  0x15   :  { %p234_p8 = scmp.ne.s32.totalorder %s401_s0, %s233_s30  ;;  %p237_p9 = scmp.lt.u32.totalorder %s233_s30, %s401_s0 }
  0x17   :  { %p239_p10 = pnand %p237_p9, %p234_p8 }
  0x19   :  { %242 = shalt.err (!%p239_p10)
}
  0x1a   :  { %s243_s8 = scalar_lea.vmem %s333_s15, 128  ;;  %p248_p12 = scmp.lt.s32.totalorder %s333_s15, %s333_s15 }
  0x1b   :  { %p244_p11 = scmp.ne.s32.totalorder %s333_s15, %s243_s8  ;;  %p249_p13 = scmp.lt.s32.totalorder %s243_s8, %s243_s8 }
  0x1d   :  { %p250_p0 = por %p249_p13, %p248_p12 }
  0x1f   :  { %p251_p1 = pnand %p250_p0, %p244_p11 }
  0x21   :  { %254 = shalt.err (!%p251_p1)
}
  0x22   :  { %22 = dma.hbm_to_vmem [thread:$0]  %s401_s0, 128, %s333_s15, [#allocation4], %s307_s24, %s307_s24, %s308_s25  }
  0x23   :  { %s309_s10 = smov [#allocation8]   ;;  %s255_s14 = scalar_lea.hbm %s403_s2, 16 }
  0x24   :  { %s41_s11 = sshll.u32 %s309_s10, 4  ;;  %p256_p2 = scmp.ne.s32.totalorder %s403_s2, %s255_s14  ;;  %s42_s11 = int_to_ptr.vmem [resolvable:$true] %s41_s11 }
  0x25   :  { %p259_p3 = scmp.lt.u32.totalorder %s255_s14, %s403_s2 }
  0x27   :  { %p261_p4 = pnand %p259_p3, %p256_p2 }
  0x29   :  { %264 = shalt.err (!%p261_p4)
}
  0x2a   :  { %s265_s20 = scalar_lea.vmem %s42_s11, 16  ;;  %s269_s0 = scalar_lea.vmem %s42_s11, 32 }
  0x2b   :  { %p266_p5 = scmp.ne.s32.totalorder %s42_s11, %s265_s20  ;;  %p270_p6 = scmp.lt.s32.totalorder %s42_s11, %s42_s11 }
  0x2c   :  { %p271_p7 = scmp.lt.s32.totalorder %s269_s0, %s265_s20 }
  0x2e   :  { %p272_p8 = por %p271_p7, %p270_p6 }
  0x30   :  { %p273_p9 = pnand %p272_p8, %p266_p5 }
  0x32   :  { %276 = shalt.err (!%p273_p9)
}
  0x33   :  { %44 = dma.hbm_to_vmem [thread:$0]  %s403_s2, 16, %s42_s11, [#allocation7]  }
  0x34   :  { %299 = dma.done.wait [#allocation4], 128  }
  0x35   :  { %300 = vsyncadd [#allocation4], 4294967168 }
  0x36   :  { %301 = dma.done.wait [#allocation7], 272  }
  0x37   :  { %302 = vsyncadd [#allocation7], 4294967024  ;;  %vm59_vm0 = vcmask 523264   ;;  %v310_v0 = vmov 0.0   ;;  %vm311_vm1 = vmmov 0   ;;  %v208_v1 = vld [vmem:[#allocation6] sm:$0xff]  }
  0x38   :  { %60 = vst.msk [vmem:[#allocation2] sm:$0xff] %vm59_vm0, %v310_v0  ;;  %61 = vst.msk [vmem:[#allocation2 + $0x8] sm:$0xff] %vm59_vm0, %v310_v0  ;;  %192 = vmatprep.subr.bf16.mxu0 %v310_v0  ;;  %196 = vmatprep.mubr.msk.bf16.mxu0 %vm311_vm1, %v310_v0  ;;  %v209_v2 = vld [vmem:[#allocation6 + $0x8] sm:$0xff]   ;;  %v210_v3 = vld [vmem:[#allocation3] sm:$0xff]   ;;  %vm87_vm2 = vcmask 261120   ;;  %vm159_vm3 = vcmask 519168  }
  0x39   :  { %193 = vmatpush3.bf16.msra.mxu0 %v208_v1  ;;  %v184_v12 = vld [vmem:[#allocation8] ss:$0 sm:$0xff]  ;;  %s312_s2 = smov [#allocation9]  }
  0x3a   :  { %194 = vmatprep.subr.bf16.mxu0 %v310_v0  ;;  %s167_s22 = sshll.u32 %s312_s2, 4  ;;  %s168_s22 = int_to_ptr.vmem [resolvable:$true] %s167_s22 }
  0x3b   :  { %s277_s23 = scalar_lea.vmem %s168_s22, 128  ;;  %p282_p11 = scmp.lt.s32.totalorder %s168_s22, %s168_s22 }
  0x3c   :  { %p278_p10 = scmp.ne.s32.totalorder %s168_s22, %s277_s23  ;;  %p283_p12 = scmp.lt.s32.totalorder %s277_s23, %s277_s23 }
  0x3d   :  { %195 = vmatpush3.bf16.msra.mxu0 %v209_v2 }
  0x3e   :  { %p284_p13 = por %p283_p12, %p282_p11 }
  0x3f   :  { %v62_v4 = vld [vmem:[#allocation2] sm:$0xff]  ;;  %v63_v6 = vld [vmem:[#allocation2 + $0x8] sm:$0xff] }
  0x40   :  { %197 = vmatmul.mubr.msk.bf16.vlgmr.msra.gmra.mrb[0].mxu0 %vm87_vm2, %v210_v3  ;;  %p285_p0 = pnand %p284_p13, %p278_p10 }
 0x113   :  { %v125_v5 = vpop.f32.mrb[0].mxu0 }
 0x114   :  { %v132_v7 = vadd.f32 %v125_v5, %v62_v4  ;;  %v198_v8 = vpop.f32.mrb[1].mxu0 }
 0x115   :  { %v128_v9 = vpop.f32.mrb[2].mxu0 }
 0x116   :  { %135 = vst.msk [vmem:[#allocation2] sm:$0xff] %vm59_vm0, %v132_v7  ;;  %v133_v10 = vadd.f32 %v128_v9, %v63_v6  ;;  %v199_v11 = vpop.f32.mrb[3].mxu0 }
 0x118   :  { %136 = vst.msk [vmem:[#allocation2 + $0x8] sm:$0xff] %vm59_vm0, %v133_v10 }
 0x11d   :  { %v140_v13 = vld [vmem:[#allocation2] sm:$0xff] }
 0x11e   :  { %v149_v14 = vadd.f32 %v184_v12, %v140_v13 }
 0x11f   :  { %v141_v15 = vld [vmem:[#allocation2 + $0x8] sm:$0xff] }
 0x120   :  { %v150_v16 = vadd.f32 %v184_v12, %v141_v15  ;;  %v187_v17 = vpack.c.bf16 %v149_v14, %v149_v14 }
 0x122   :  { %v188_v18 = vpack.c.bf16 %v150_v16, %v150_v16  ;;  %160 = vst.msk [vmem:[#allocation9] sm:$0xf] %vm159_vm3, %v187_v17 }
 0x124   :  { %161 = vst.msk [vmem:[#allocation9 + $0x4] sm:$0xf] %vm159_vm3, %v188_v18 }
 0x125   :  { %288 = shalt.err (!%p285_p0)
}
 0x126   :  { %s289_s28 = scalar_lea.hbm %s404_s3, 128 }
 0x127   :  { %p290_p1 = scmp.ne.s32.totalorder %s404_s3, %s289_s28  ;;  %p293_p2 = scmp.lt.u32.totalorder %s289_s28, %s404_s3 }
 0x129   :  { %p295_p3 = pnand %p293_p2, %p290_p1 }
 0x12b   :  { %298 = shalt.err (!%p295_p3)
}
 0x12c   :  { %173 = dma.vmem_to_hbm [thread:$0]  %s168_s22, 128, %s404_s3, [#allocation5], %s307_s24, %s307_s24, %s308_s25  }
 0x12d   :  { %303 = dma.done.wait [#allocation5], 128  }
 0x12e   :  { %304 = vsyncadd [#allocation5], 4294967168 }
 0x12f   :  { %177 = vsyncpa [#allocation4], 1 }
 0x130   :  { %178 = vsyncpa [#allocation7], 1 }
 0x131   :  { %179 = vsyncpa [#allocation5], 1 }

// kernel: transformer_fwd.24
= control target key start
LH: loop header
LB: loop body
LE: loop exit
PB: predicated region body
PF: predicated region fallthrough
CT: control target
= control target key end

     0   :  { %8 = vsyncpa [#allocation4], 0  ;;  %s401_s0 = inlined_call_operand.hbm [shape: bf16[16,32], index: 0, kind: input, shape index: {}]   ;;  %s402_s1 = inlined_call_operand.hbm [shape: bf16[32,32], index: 1, kind: input, shape index: {}]   ;;  %s403_s2 = inlined_call_operand.hbm [shape: f32[1,32], index: 2, kind: input, shape index: {}]   ;;  %s404_s3 = inlined_call_operand.hbm [shape: bf16[16,32], index: 3, kind: output, shape index: {}]  }
   0x1   :  { %9 = vsyncpa [#allocation7], 0 }
   0x2   :  { %10 = vsyncpa [#allocation5], 0  ;;  %s304_s12 = smov [#allocation6]   ;;  %s305_s14 = smov [#allocation3]  }
   0x3   :  { %s28_s13 = sshll.u32 %s304_s12, 4  ;;  %s16_s15 = sshll.u32 %s305_s14, 4  ;;  %s29_s13 = int_to_ptr.vmem [resolvable:$true] %s28_s13  ;;  %s332_s15 = int_to_ptr.vmem [resolvable:$true] %s16_s15 }
   0x4   :  { %s210_s18 = scalar_lea.hbm %s402_s1, 256 }
   0x5   :  { %p211_p0 = scmp.ne.s32.totalorder %s402_s1, %s210_s18  ;;  %p214_p1 = scmp.lt.u32.totalorder %s210_s18, %s402_s1 }
   0x7   :  { %p216_p2 = pnand %p214_p1, %p211_p0 }
   0x9   :  { %219 = shalt.err (!%p216_p2)
}
   0xa   :  { %s220_s23 = scalar_lea.vmem %s29_s13, 256  ;;  %p225_p4 = scmp.lt.s32.totalorder %s29_s13, %s29_s13 }
   0xb   :  { %p221_p3 = scmp.ne.s32.totalorder %s29_s13, %s220_s23  ;;  %p226_p5 = scmp.lt.s32.totalorder %s220_s23, %s220_s23 }
   0xd   :  { %p227_p6 = por %p226_p5, %p225_p4 }
   0xf   :  { %p228_p7 = pnand %p227_p6, %p221_p3 }
  0x11   :  { %231 = shalt.err (!%p228_p7)
}
  0x12   :  { %s306_s24 = smov 64   ;;  %s307_s25 = smov 4  }
  0x13   :  { %34 = dma.hbm_to_vmem [thread:$0]  %s402_s1, 256, %s29_s13, [#allocation7], %s306_s24, %s306_s24, %s307_s25  }
  0x14   :  { %s232_s30 = scalar_lea.hbm %s401_s0, 128 }
  0x15   :  { %p233_p8 = scmp.ne.s32.totalorder %s401_s0, %s232_s30  ;;  %p236_p9 = scmp.lt.u32.totalorder %s232_s30, %s401_s0 }
  0x17   :  { %p238_p10 = pnand %p236_p9, %p233_p8 }
  0x19   :  { %241 = shalt.err (!%p238_p10)
}
  0x1a   :  { %s242_s8 = scalar_lea.vmem %s332_s15, 128  ;;  %p247_p12 = scmp.lt.s32.totalorder %s332_s15, %s332_s15 }
  0x1b   :  { %p243_p11 = scmp.ne.s32.totalorder %s332_s15, %s242_s8  ;;  %p248_p13 = scmp.lt.s32.totalorder %s242_s8, %s242_s8 }
  0x1d   :  { %p249_p0 = por %p248_p13, %p247_p12 }
  0x1f   :  { %p250_p1 = pnand %p249_p0, %p243_p11 }
  0x21   :  { %253 = shalt.err (!%p250_p1)
}
  0x22   :  { %22 = dma.hbm_to_vmem [thread:$0]  %s401_s0, 128, %s332_s15, [#allocation4], %s306_s24, %s306_s24, %s307_s25  }
  0x23   :  { %s308_s10 = smov [#allocation8]   ;;  %s254_s14 = scalar_lea.hbm %s403_s2, 16 }
  0x24   :  { %s41_s11 = sshll.u32 %s308_s10, 4  ;;  %p255_p2 = scmp.ne.s32.totalorder %s403_s2, %s254_s14  ;;  %s42_s11 = int_to_ptr.vmem [resolvable:$true] %s41_s11 }
  0x25   :  { %p258_p3 = scmp.lt.u32.totalorder %s254_s14, %s403_s2 }
  0x27   :  { %p260_p4 = pnand %p258_p3, %p255_p2 }
  0x29   :  { %263 = shalt.err (!%p260_p4)
}
  0x2a   :  { %s264_s20 = scalar_lea.vmem %s42_s11, 16  ;;  %s268_s0 = scalar_lea.vmem %s42_s11, 32 }
  0x2b   :  { %p265_p5 = scmp.ne.s32.totalorder %s42_s11, %s264_s20  ;;  %p269_p6 = scmp.lt.s32.totalorder %s42_s11, %s42_s11 }
  0x2c   :  { %p270_p7 = scmp.lt.s32.totalorder %s268_s0, %s264_s20 }
  0x2e   :  { %p271_p8 = por %p270_p7, %p269_p6 }
  0x30   :  { %p272_p9 = pnand %p271_p8, %p265_p5 }
  0x32   :  { %275 = shalt.err (!%p272_p9)
}
  0x33   :  { %44 = dma.hbm_to_vmem [thread:$0]  %s403_s2, 16, %s42_s11, [#allocation7]  }
  0x34   :  { %298 = dma.done.wait [#allocation4], 128  }
  0x35   :  { %299 = vsyncadd [#allocation4], 4294967168 }
  0x36   :  { %300 = dma.done.wait [#allocation7], 272  }
  0x37   :  { %301 = vsyncadd [#allocation7], 4294967024  ;;  %vm59_vm0 = vcmask 261120   ;;  %v309_v0 = vmov 0.0   ;;  %vm310_vm1 = vmmov 0   ;;  %v207_v1 = vld [vmem:[#allocation6] sm:$0xff]  }
  0x38   :  { %191 = vmatprep.subr.bf16.mxu0 %v309_v0  ;;  %195 = vmatprep.mubr.msk.bf16.mxu0 %vm310_vm1, %v309_v0  ;;  %60 = vst.msk [vmem:[#allocation2] sm:$0xff] %vm59_vm0, %v309_v0  ;;  %61 = vst.msk [vmem:[#allocation2 + $0x8] sm:$0xff] %vm59_vm0, %v309_v0  ;;  %v208_v2 = vld [vmem:[#allocation6 + $0x8] sm:$0xff]   ;;  %v209_v3 = vld [vmem:[#allocation3] sm:$0xff]   ;;  %vm158_vm2 = vcmask 257024   ;;  %s311_s2 = smov [#allocation9]  }
  0x39   :  { %192 = vmatpush3.bf16.msra.mxu0 %v207_v1  ;;  %v183_v12 = vld [vmem:[#allocation8] ss:$0 sm:$0xff]  ;;  %s166_s22 = sshll.u32 %s311_s2, 4  ;;  %s167_s22 = int_to_ptr.vmem [resolvable:$true] %s166_s22 }
  0x3a   :  { %193 = vmatprep.subr.bf16.mxu0 %v309_v0  ;;  %s276_s23 = scalar_lea.vmem %s167_s22, 128  ;;  %p281_p11 = scmp.lt.s32.totalorder %s167_s22, %s167_s22 }
  0x3b   :  { %p277_p10 = scmp.ne.s32.totalorder %s167_s22, %s276_s23  ;;  %p282_p12 = scmp.lt.s32.totalorder %s276_s23, %s276_s23 }
  0x3d   :  { %194 = vmatpush3.bf16.msra.mxu0 %v208_v2  ;;  %p283_p13 = por %p282_p12, %p281_p11 }
  0x3f   :  { %v62_v4 = vld [vmem:[#allocation2] sm:$0xff]  ;;  %v63_v6 = vld [vmem:[#allocation2 + $0x8] sm:$0xff]  ;;  %p284_p0 = pnand %p283_p13, %p277_p10 }
  0x40   :  { %196 = vmatmul.mubr.msk.bf16.vlgmr.msra.gmra.mrb[0].mxu0 %vm59_vm0, %v209_v3 }
 0x113   :  { %v125_v5 = vpop.f32.mrb[0].mxu0 }
 0x114   :  { %v132_v7 = vadd.f32 %v125_v5, %v62_v4  ;;  %v197_v8 = vpop.f32.mrb[1].mxu0 }
 0x115   :  { %v128_v9 = vpop.f32.mrb[2].mxu0 }
 0x116   :  { %134 = vst.msk [vmem:[#allocation2] sm:$0xff] %vm59_vm0, %v132_v7  ;;  %v133_v10 = vadd.f32 %v128_v9, %v63_v6  ;;  %v198_v11 = vpop.f32.mrb[3].mxu0 }
 0x118   :  { %135 = vst.msk [vmem:[#allocation2 + $0x8] sm:$0xff] %vm59_vm0, %v133_v10 }
 0x11d   :  { %v139_v13 = vld [vmem:[#allocation2] sm:$0xff] }
 0x11e   :  { %v148_v14 = vadd.f32 %v183_v12, %v139_v13 }
 0x11f   :  { %v140_v15 = vld [vmem:[#allocation2 + $0x8] sm:$0xff] }
 0x120   :  { %v149_v16 = vadd.f32 %v183_v12, %v140_v15  ;;  %v186_v17 = vpack.c.bf16 %v148_v14, %v148_v14 }
 0x122   :  { %v187_v18 = vpack.c.bf16 %v149_v16, %v149_v16  ;;  %159 = vst.msk [vmem:[#allocation9] sm:$0xf] %vm158_vm2, %v186_v17 }
 0x124   :  { %160 = vst.msk [vmem:[#allocation9 + $0x4] sm:$0xf] %vm158_vm2, %v187_v18 }
 0x125   :  { %287 = shalt.err (!%p284_p0)
}
 0x126   :  { %s288_s28 = scalar_lea.hbm %s404_s3, 128 }
 0x127   :  { %p289_p1 = scmp.ne.s32.totalorder %s404_s3, %s288_s28  ;;  %p292_p2 = scmp.lt.u32.totalorder %s288_s28, %s404_s3 }
 0x129   :  { %p294_p3 = pnand %p292_p2, %p289_p1 }
 0x12b   :  { %297 = shalt.err (!%p294_p3)
}
 0x12c   :  { %172 = dma.vmem_to_hbm [thread:$0]  %s167_s22, 128, %s404_s3, [#allocation5], %s306_s24, %s306_s24, %s307_s25  }
 0x12d   :  { %302 = dma.done.wait [#allocation5], 128  }
 0x12e   :  { %303 = vsyncadd [#allocation5], 4294967168 }
 0x12f   :  { %176 = vsyncpa [#allocation4], 1 }
 0x130   :  { %177 = vsyncpa [#allocation7], 1 }
 0x131   :  { %178 = vsyncpa [#allocation5], 1 }

// kernel: transformer_fwd.29
= control target key start
LH: loop header
LB: loop body
LE: loop exit
PB: predicated region body
PF: predicated region fallthrough
CT: control target
= control target key end

     0   :  { %8 = vsyncpa [#allocation4], 0  ;;  %s385_s0 = inlined_call_operand.hbm [shape: bf16[16,32], index: 0, kind: input, shape index: {}]   ;;  %s386_s1 = inlined_call_operand.hbm [shape: bf16[32,64], index: 1, kind: input, shape index: {}]   ;;  %s387_s2 = inlined_call_operand.hbm [shape: f32[1,64], index: 2, kind: input, shape index: {}]   ;;  %s388_s3 = inlined_call_operand.hbm [shape: f32[16,64], index: 3, kind: output, shape index: {}]  }
   0x1   :  { %9 = vsyncpa [#allocation7], 0 }
   0x2   :  { %10 = vsyncpa [#allocation5], 0  ;;  %s294_s12 = smov [#allocation6]   ;;  %s295_s14 = smov [#allocation3]  }
   0x3   :  { %s28_s13 = sshll.u32 %s294_s12, 4  ;;  %s16_s15 = sshll.u32 %s295_s14, 4  ;;  %s29_s13 = int_to_ptr.vmem [resolvable:$true] %s28_s13  ;;  %s324_s15 = int_to_ptr.vmem [resolvable:$true] %s16_s15 }
   0x4   :  { %s200_s18 = scalar_lea.hbm %s386_s1, 256 }
   0x5   :  { %p201_p0 = scmp.ne.s32.totalorder %s386_s1, %s200_s18  ;;  %p204_p1 = scmp.lt.u32.totalorder %s200_s18, %s386_s1 }
   0x7   :  { %p206_p2 = pnand %p204_p1, %p201_p0 }
   0x9   :  { %209 = shalt.err (!%p206_p2)
}
   0xa   :  { %s210_s23 = scalar_lea.vmem %s29_s13, 256  ;;  %p215_p4 = scmp.lt.s32.totalorder %s29_s13, %s29_s13 }
   0xb   :  { %p211_p3 = scmp.ne.s32.totalorder %s29_s13, %s210_s23  ;;  %p216_p5 = scmp.lt.s32.totalorder %s210_s23, %s210_s23 }
   0xd   :  { %p217_p6 = por %p216_p5, %p215_p4 }
   0xf   :  { %p218_p7 = pnand %p217_p6, %p211_p3 }
  0x11   :  { %221 = shalt.err (!%p218_p7)
}
  0x12   :  { %s296_s24 = smov 64   ;;  %s297_s25 = smov 4  }
  0x13   :  { %34 = dma.hbm_to_vmem [thread:$0]  %s386_s1, 256, %s29_s13, [#allocation7], %s296_s24, %s296_s24, %s297_s25  }
  0x14   :  { %s222_s30 = scalar_lea.hbm %s385_s0, 128 }
  0x15   :  { %p223_p8 = scmp.ne.s32.totalorder %s385_s0, %s222_s30  ;;  %p226_p9 = scmp.lt.u32.totalorder %s222_s30, %s385_s0 }
  0x17   :  { %p228_p10 = pnand %p226_p9, %p223_p8 }
  0x19   :  { %231 = shalt.err (!%p228_p10)
}
  0x1a   :  { %s232_s8 = scalar_lea.vmem %s324_s15, 128  ;;  %p237_p12 = scmp.lt.s32.totalorder %s324_s15, %s324_s15 }
  0x1b   :  { %p233_p11 = scmp.ne.s32.totalorder %s324_s15, %s232_s8  ;;  %p238_p13 = scmp.lt.s32.totalorder %s232_s8, %s232_s8 }
  0x1d   :  { %p239_p0 = por %p238_p13, %p237_p12 }
  0x1f   :  { %p240_p1 = pnand %p239_p0, %p233_p11 }
  0x21   :  { %243 = shalt.err (!%p240_p1)
}
  0x22   :  { %22 = dma.hbm_to_vmem [thread:$0]  %s385_s0, 128, %s324_s15, [#allocation4], %s296_s24, %s296_s24, %s297_s25  }
  0x23   :  { %s298_s10 = smov [#allocation8]   ;;  %s244_s14 = scalar_lea.hbm %s387_s2, 16 }
  0x24   :  { %s41_s11 = sshll.u32 %s298_s10, 4  ;;  %p245_p2 = scmp.ne.s32.totalorder %s387_s2, %s244_s14  ;;  %s42_s11 = int_to_ptr.vmem [resolvable:$true] %s41_s11 }
  0x25   :  { %p248_p3 = scmp.lt.u32.totalorder %s244_s14, %s387_s2 }
  0x27   :  { %p250_p4 = pnand %p248_p3, %p245_p2 }
  0x29   :  { %253 = shalt.err (!%p250_p4)
}
  0x2a   :  { %s254_s20 = scalar_lea.vmem %s42_s11, 16  ;;  %s258_s0 = scalar_lea.vmem %s42_s11, 32 }
  0x2b   :  { %p255_p5 = scmp.ne.s32.totalorder %s42_s11, %s254_s20  ;;  %p259_p6 = scmp.lt.s32.totalorder %s42_s11, %s42_s11 }
  0x2c   :  { %p260_p7 = scmp.lt.s32.totalorder %s258_s0, %s254_s20 }
  0x2e   :  { %p261_p8 = por %p260_p7, %p259_p6 }
  0x30   :  { %p262_p9 = pnand %p261_p8, %p255_p5 }
  0x32   :  { %265 = shalt.err (!%p262_p9)
}
  0x33   :  { %44 = dma.hbm_to_vmem [thread:$0]  %s387_s2, 16, %s42_s11, [#allocation7]  }
  0x34   :  { %288 = dma.done.wait [#allocation4], 128  }
  0x35   :  { %289 = vsyncadd [#allocation4], 4294967168 }
  0x36   :  { %290 = dma.done.wait [#allocation7], 272  }
  0x37   :  { %291 = vsyncadd [#allocation7], 4294967024  ;;  %vm59_vm0 = vcmask 523264   ;;  %v299_v0 = vmov 0.0   ;;  %vm300_vm1 = vmmov 0   ;;  %v197_v1 = vld [vmem:[#allocation6] sm:$0xff]  }
  0x38   :  { %60 = vst.msk [vmem:[#allocation2] sm:$0xff] %vm59_vm0, %v299_v0  ;;  %61 = vst.msk [vmem:[#allocation2 + $0x8] sm:$0xff] %vm59_vm0, %v299_v0  ;;  %179 = vmatprep.subr.bf16.mxu0 %v299_v0  ;;  %183 = vmatprep.mubr.msk.bf16.mxu0 %vm300_vm1, %v299_v0  ;;  %v198_v2 = vld [vmem:[#allocation6 + $0x8] sm:$0xff]   ;;  %v199_v3 = vld [vmem:[#allocation3] sm:$0xff]   ;;  %vm87_vm2 = vcmask 261120   ;;  %s301_s2 = smov [#allocation9]  }
  0x39   :  { %180 = vmatpush3.bf16.msra.mxu0 %v197_v1  ;;  %v175_v12 = vld [vmem:[#allocation8] ss:$0 sm:$0xff]  ;;  %s158_s22 = sshll.u32 %s301_s2, 4  ;;  %s159_s22 = int_to_ptr.vmem [resolvable:$true] %s158_s22 }
  0x3a   :  { %181 = vmatprep.subr.bf16.mxu0 %v299_v0  ;;  %s266_s23 = scalar_lea.vmem %s159_s22, 256  ;;  %p271_p11 = scmp.lt.s32.totalorder %s159_s22, %s159_s22 }
  0x3b   :  { %p267_p10 = scmp.ne.s32.totalorder %s159_s22, %s266_s23  ;;  %p272_p12 = scmp.lt.s32.totalorder %s266_s23, %s266_s23 }
  0x3d   :  { %182 = vmatpush3.bf16.msra.mxu0 %v198_v2  ;;  %p273_p13 = por %p272_p12, %p271_p11 }
  0x3f   :  { %v62_v4 = vld [vmem:[#allocation2] sm:$0xff]  ;;  %v63_v6 = vld [vmem:[#allocation2 + $0x8] sm:$0xff]  ;;  %p274_p0 = pnand %p273_p13, %p267_p10 }
  0x40   :  { %184 = vmatmul.mubr.msk.bf16.vlgmr.msra.gmra.mrb[0].mxu0 %vm87_vm2, %v199_v3 }
 0x113   :  { %v125_v5 = vpop.f32.mrb[0].mxu0 }
 0x114   :  { %v132_v7 = vadd.f32 %v125_v5, %v62_v4  ;;  %v185_v8 = vpop.f32.mrb[1].mxu0 }
 0x115   :  { %v128_v9 = vpop.f32.mrb[2].mxu0 }
 0x116   :  { %135 = vst.msk [vmem:[#allocation2] sm:$0xff] %vm59_vm0, %v132_v7  ;;  %v133_v10 = vadd.f32 %v128_v9, %v63_v6  ;;  %v186_v11 = vpop.f32.mrb[3].mxu0 }
 0x118   :  { %136 = vst.msk [vmem:[#allocation2 + $0x8] sm:$0xff] %vm59_vm0, %v133_v10 }
 0x11d   :  { %v140_v13 = vld [vmem:[#allocation2] sm:$0xff] }
 0x11e   :  { %v149_v14 = vadd.f32 %v175_v12, %v140_v13 }
 0x11f   :  { %v141_v15 = vld [vmem:[#allocation2 + $0x8] sm:$0xff] }
 0x120   :  { %v150_v16 = vadd.f32 %v175_v12, %v141_v15  ;;  %151 = vst.msk [vmem:[#allocation9] sm:$0xff] %vm59_vm0, %v149_v14 }
 0x122   :  { %152 = vst.msk [vmem:[#allocation9 + $0x8] sm:$0xff] %vm59_vm0, %v150_v16 }
 0x123   :  { %277 = shalt.err (!%p274_p0)
}
 0x124   :  { %s278_s26 = scalar_lea.hbm %s388_s3, 256 }
 0x125   :  { %p279_p1 = scmp.ne.s32.totalorder %s388_s3, %s278_s26  ;;  %p282_p2 = scmp.lt.u32.totalorder %s278_s26, %s388_s3 }
 0x127   :  { %p284_p3 = pnand %p282_p2, %p279_p1 }
 0x129   :  { %287 = shalt.err (!%p284_p3)
}
 0x12a   :  { %s302_s4 = smov 128   ;;  %s303_s5 = smov 8  }
 0x12b   :  { %164 = dma.vmem_to_hbm [thread:$0]  %s159_s22, 256, %s388_s3, [#allocation5], %s302_s4, %s302_s4, %s303_s5  }
 0x12c   :  { %292 = dma.done.wait [#allocation5], 256  }
 0x12d   :  { %293 = vsyncadd [#allocation5], 4294967040 }
 0x12e   :  { %168 = vsyncpa [#allocation4], 1 }
 0x12f   :  { %169 = vsyncpa [#allocation7], 1 }
 0x130   :  { %170 = vsyncpa [#allocation5], 1 }

// kernel: transformer_fwd.22
= control target key start
LH: loop header
LB: loop body
LE: loop exit
PB: predicated region body
PF: predicated region fallthrough
CT: control target
= control target key end

     0   :  { %s1887_s0 = inlined_call_operand.hbm [shape: bf16[2,8,32], index: 0, kind: input, shape index: {}]   ;;  %s1888_s1 = inlined_call_operand.hbm [shape: bf16[2,8,32], index: 1, kind: input, shape index: {}]   ;;  %s1889_s2 = inlined_call_operand.hbm [shape: bf16[2,8,32], index: 2, kind: input, shape index: {}]   ;;  %s1890_s3 = inlined_call_operand.hbm [shape: bf16[2,8,32], index: 3, kind: output, shape index: {}]  }
   0x1   :  { %1896 = sst [smem:[#allocation18_spill]] %s1888_s1 }
   0x2   :  { %8 = vsyncpa [#allocation6], 0 }
   0x3   :  { %10 = vsyncpa [#allocation6 + $0x1], 0 }
   0x4   :  { %11 = vsyncpa [#allocation9], 0 }
   0x5   :  { %13 = vsyncpa [#allocation9 + $0x1], 0 }
   0x6   :  { %14 = vsyncpa [#allocation7], 0 }
   0x7   :  { %16 = vsyncpa [#allocation7 + $0x1], 0  ;;  %s1482_s12 = smov 0   ;;  %s1484_s13 = smov 0  }
   0x8   :  { %s1486_s14 = smov 0   ;;  %s1488_s15 = smov 0  }
   0x9   :  { %s1490_s16 = smov 0   ;;  %s1492_s17 = smov 0  }
   0xa LB: > { %1897 = sst [smem:[#allocation15_spill]] %s1442_s16  ;;  %s1513_s18 = sadd.s32 4294967295, %s1446_s17   ;;  %s1446_s17 = sphi %s1492_s17, %s22_s17   ;;  %s1442_s16 = sphi %s1490_s16, %s1918_s16   ;;  %s1438_s15 = sphi %s1488_s15, %s1917_s15   ;;  %s1434_s14 = sphi %s1486_s14, %s1921_s14   ;;  %s1430_s13 = sphi %s1484_s13, %s1920_s13   ;;  %s1426_s12 = sphi %s1482_s12, %s1919_s12  }
   0xb   : > { %s1068_s19 = sadd.s32 4294967294, %s1446_s17   ;;  %s41_s20 = sadd.s32 1, %s1442_s16 }
   0xc   : > { %s50_s21 = sadd.s32 1, %s1434_s14  ;;  %p43_p0 = scmp.ge.s32.totalorder %s41_s20, 2 }
   0xd   : > { %p57_p1 = scmp.ne.s32.totalorder %s1434_s14, %s1430_s13  ;;  %p58_p2 = scmp.eq.s32.totalorder %s1446_s17, 0 }
   0xe   : > { %p63_p3 = scmp.ne.s32.totalorder %s1430_s13, %s1426_s12  ;;  %s1923_s20 = smov (%p43_p0, %s41_s20), 0 }
   0xf   : > { %1898 = sst [smem:[#allocation16_spill]] %s1923_s20  ;;  %p1525_p4 = por %p58_p2, %p57_p1 }
  0x10   : > { %p64_p5 = scmp.eq.s32.totalorder %s1513_s18, 0  ;;  %s45_s23 = ssub.s32 %s1442_s16, %s1923_s20 }
  0x11   : > { %p145_p6 = scmp.eq.s32.totalorder %s1513_s18, 1  ;;  %p48_p7 = scmp.eq.s32.totalorder %s45_s23, 0 }
  0x12   : > { %p1533_p8 = por %p64_p5, %p63_p3  ;;  %p151_p10 = scmp.eq.s32.totalorder %s1068_s19, 1 }
  0x13   : > { %p1537_p9 = por %p145_p6, %p57_p1  ;;  %p1182_p13 = scmp.lt.s32.totalorder %s1446_s17, 2 }
  0x14   : > { %s1900_s24 = scalar_select %p1533_p8, 1, 0 }
  0x15   : > { %s1901_s25 = scalar_select %p1537_p9, 1, 0 }
  0x16   : > { %s1542_s26 = scalar_select %p48_p7, %s1434_s14, %s50_s21  }
  0x17   : > { %p1544_p11 = por %p151_p10, %p63_p3  ;;  %s171_s28 = sand.u32 1, %s1434_s14  }
  0x18   : > { %1902 = sst [smem:[#allocation17_spill]] %s1542_s26  ;;  %s1553_s29 = sshll.u32 %s171_s28, 2 }
  0x19   : > { %s1903_s27 = scalar_select %p1544_p11, 1, 0 }
  0x1a   : > { %s1556_s30 = sshll.u32 %s1442_s16, 6  ;;  %p1560_p0 = pnand %p1182_p13, %p1525_p4 }
  0x1b   : > { %s190_s5 = sand.u32 1, %s1446_s17   ;;  %s1905_s1 = sld [smem:[#allocation18_spill]] }
  0x1c   : > { %s1904_s4 = scalar_select %p1560_p0, 1, 0 }
  0x1d   : > { %s194_s9 = scalar_lea.vmem [#allocation8], %s1553_s29  ;;  %s1576_s11 = scalar_lea.sflag [#allocation9], %s190_s5 }
  0x1e   : > { %s202_s10 = sshll.u32 %s194_s9, 4  ;;  %p1582_p4 = pneg %p1560_p0  ;;  %s1573_s10 = int_to_ptr.vmem [resolvable:$true] %s202_s10 }
  0x21   : > { %s1569_s8 = scalar_lea.hbm %s1905_s1, %s1556_s30  ;;  %s1275_s6 = scalar_lea.hbm %s1905_s1, 128 }
  0x22   : > { %s1270_s19 = scalar_lea.hbm %s1569_s8, 64  ;;  %p1276_p7 = scmp.lt.u32.totalorder %s1569_s8, %s1905_s1 }
  0x23   : > { %p1271_p3 = scmp.ne.s32.totalorder %s1569_s8, %s1270_s19  ;;  %p1277_p10 = scmp.lt.u32.totalorder %s1275_s6, %s1270_s19 }
  0x24   : > { %p1279_p12 = scmp.lt.u32.totalorder %s1270_s19, %s1569_s8 }
  0x25   : > { %p1273_p5 = pnand %p1582_p4, %p1271_p3  ;;  %p1278_p13 = por %p1277_p10, %p1276_p7 }
  0x27   : > { %p1274_p6 = pneg %p1273_p5  ;;  %p1280_p1 = por %p1279_p12, %p1278_p13 }
  0x29   : > { %p1281_p2 = pnand %p1280_p1, %p1274_p6 }
  0x2b   : > { %1284 = shalt.err (!%p1281_p2)
}
  0x2c   : > { %s1285_s5 = scalar_lea.vmem %s1573_s10, 64  ;;  %s1448_s22 = smov [#allocation8]  }
  0x2d   : > { %p1286_p3 = scmp.ne.s32.totalorder %s1573_s10, %s1285_s5  ;;  %s1290_s23 = sshll.u32 %s1448_s22, 4  ;;  %s1291_s23 = int_to_ptr.vmem [resolvable:$false] %s1290_s23 }
  0x2e   : > { %s1292_s7 = scalar_lea.vmem %s1291_s23, 128  ;;  %p1293_p9 = scmp.lt.s32.totalorder %s1573_s10, %s1291_s23 }
  0x2f   : > { %p1288_p5 = pnand %p1286_p3, %p1582_p4  ;;  %p1294_p8 = scmp.lt.s32.totalorder %s1292_s7, %s1285_s5 }
  0x31   : > { %p1289_p11 = pneg %p1288_p5  ;;  %p1295_p7 = por %p1294_p8, %p1293_p9 }
  0x33   : > { %p1296_p10 = pnand %p1295_p7, %p1289_p11 }
  0x35   : > { %1299 = shalt.err (!%p1296_p10)
}
  0x36   : > { %1174 = dma.hbm_to_vmem [thread:$0]  (!%p1560_p0), %s1569_s8, 64, %s1573_s10, %s1576_s11  }
  0x37   : > { %p1907_p12 = scmp.lt.s32.totalorder %s1446_s17, 3  ;;  %p1908_p1 = scmp.ge.s32.totalorder %s1446_s17, 1 }
  0x38   : > { %s1618_s5 = scalar_lea.hbm %s1887_s0, %s1556_s30  ;;  %s175_s22 = scalar_lea.vmem [#allocation5], %s1553_s29 }
  0x39   : > { %p1610_p2 = pnand %p1908_p1, %p1907_p12  ;;  %s183_s23 = sshll.u32 %s175_s22, 4  ;;  %s1621_s23 = int_to_ptr.vmem [resolvable:$true] %s183_s23 }
  0x3a   : > { %s1627_s7 = scalar_lea.hbm %s1889_s2, %s1556_s30  ;;  %s172_s1 = scalar_lea.sflag [#allocation6], %s171_s28 }
  0x3b   : > { %s1909_s19 = scalar_select %p1610_p2, 1, 0 }
  0x3c   : > { %s1300_s20 = scalar_lea.hbm %s1618_s5, 64  ;;  %s1305_s16 = scalar_lea.hbm %s1887_s0, 128 }
  0x3d   : > { %p1301_p8 = scmp.ne.s32.totalorder %s1618_s5, %s1300_s20  ;;  %p1306_p6 = scmp.lt.u32.totalorder %s1618_s5, %s1887_s0 }
  0x3e   : > { %p1307_p13 = scmp.lt.u32.totalorder %s1305_s16, %s1300_s20  ;;  %p1309_p5 = scmp.lt.u32.totalorder %s1300_s20, %s1618_s5 }
  0x3f   : > { %p1303_p9 = pnand %p1301_p8, %p1582_p4 }
  0x40   : > { %p1308_p3 = por %p1307_p13, %p1306_p6 }
  0x41   : > { %p1304_p11 = pneg %p1303_p9 }
  0x42   : > { %p1310_p7 = por %p1309_p5, %p1308_p3 }
  0x44   : > { %p1311_p10 = pnand %p1310_p7, %p1304_p11 }
  0x46   : > { %1314 = shalt.err (!%p1311_p10)
}
  0x47   : > { %s1315_s28 = scalar_lea.vmem %s1621_s23, 64  ;;  %s1449_s30 = smov [#allocation5]  }
  0x48   : > { %p1316_p12 = scmp.ne.s32.totalorder %s1621_s23, %s1315_s28  ;;  %s1320_s8 = sshll.u32 %s1449_s30, 4  ;;  %s1321_s8 = int_to_ptr.vmem [resolvable:$false] %s1320_s8 }
  0x49   : > { %s1322_s26 = scalar_lea.vmem %s1321_s8, 128  ;;  %p1323_p9 = scmp.lt.s32.totalorder %s1621_s23, %s1321_s8 }
  0x4a   : > { %p1318_p1 = pnand %p1316_p12, %p1582_p4  ;;  %p1324_p2 = scmp.lt.s32.totalorder %s1322_s26, %s1315_s28 }
  0x4c   : > { %p1319_p8 = pneg %p1318_p1  ;;  %p1325_p6 = por %p1324_p2, %p1323_p9 }
  0x4e   : > { %p1326_p13 = pnand %p1325_p6, %p1319_p8 }
  0x50   : > { %1329 = shalt.err (!%p1326_p13)
}
  0x51   : > { %1171 = dma.hbm_to_vmem [thread:$0]  (!%p1560_p0), %s1618_s5, 64, %s1621_s23, %s172_s1  }
  0x52   : > { %s213_s16 = scalar_lea.vmem [#allocation10], %s1553_s29  ;;  %s1330_s10 = scalar_lea.hbm %s1627_s7, 64 }
  0x53   : > { %s221_s20 = sshll.u32 %s213_s16, 4  ;;  %p1331_p11 = scmp.ne.s32.totalorder %s1627_s7, %s1330_s10  ;;  %s222_s20 = int_to_ptr.vmem [resolvable:$true] %s221_s20 }
  0x54   : > { %s1335_s22 = scalar_lea.hbm %s1889_s2, 128  ;;  %p1336_p5 = scmp.lt.u32.totalorder %s1627_s7, %s1889_s2 }
  0x55   : > { %p1333_p2 = pnand %p1331_p11, %p1582_p4  ;;  %p1337_p7 = scmp.lt.u32.totalorder %s1335_s22, %s1330_s10 }
  0x56   : > { %p1339_p12 = scmp.lt.u32.totalorder %s1330_s10, %s1627_s7 }
  0x57   : > { %p1334_p3 = pneg %p1333_p2  ;;  %p1338_p10 = por %p1337_p7, %p1336_p5 }
  0x59   : > { %p1340_p1 = por %p1339_p12, %p1338_p10 }
  0x5b   : > { %p1341_p8 = pnand %p1340_p1, %p1334_p3 }
  0x5d   : > { %1344 = shalt.err (!%p1341_p8)
}
  0x5e   : > { %s1345_s1 = scalar_lea.vmem %s222_s20, 64  ;;  %s1450_s29 = smov [#allocation10]  }
  0x5f   : > { %p1346_p9 = scmp.ne.s32.totalorder %s222_s20, %s1345_s1  ;;  %s1350_s5 = sshll.u32 %s1450_s29, 4  ;;  %s1351_s5 = int_to_ptr.vmem [resolvable:$false] %s1350_s5 }
  0x60   : > { %s1352_s23 = scalar_lea.vmem %s1351_s5, 128  ;;  %p1353_p11 = scmp.lt.s32.totalorder %s222_s20, %s1351_s5 }
  0x61   : > { %p1348_p6 = pnand %p1346_p9, %p1582_p4  ;;  %p1354_p2 = scmp.lt.s32.totalorder %s1352_s23, %s1345_s1 }
  0x63   : > { %p1349_p13 = pneg %p1348_p6  ;;  %p1355_p0 = por %p1354_p2, %p1353_p11 }
  0x65   : > { %p1356_p5 = pnand %p1355_p0, %p1349_p13 }
  0x67   : > { %1359 = shalt.err (!%p1356_p5)
}
  0x68   : > { %p1910_p7 = scmp.ne.s32.totalorder %s1904_s4, 0  ;;  %p1911_p3 = scmp.ne.s32.totalorder %s1909_s19, 0 }
  0x69   : > { %s1674_s21 = sand.u32 (!%p1911_p3), 1, %s1430_s13   ;;  %p1912_p0 = scmp.ne.s32.totalorder (!%p1911_p3), %s1900_s24, 0 }
  0x6a   : > { %1177 = dma.hbm_to_vmem [thread:$0]  (!%p1910_p7), %s1627_s7, 64, %s222_s20, %s1576_s11  }
  0x6b   : > { %230 = sbr.rel (%p1911_p3) target bundleno = 1564 (0x61c), region = 32  ;;  %s1677_s8 = sshll.u32 (!%p1911_p3), %s1674_s21, 2 }
  0x6c   : > { %s233_s26 = scalar_lea.sflag (!%p1911_p3), [#allocation6], %s1674_s21  ;;  %s236_s16 = scalar_lea.vmem (!%p1911_p3), [#allocation5], %s1677_s8 }
  0x72   : > { %1413 = dma.done.wait (%p1912_p0), %s233_s26, 64  }
  0x73   : > { %1415 = vsyncadd (%p1912_p0), %s233_s26, 4294967232  ;;  %s241_s4 = sand.u32 1, %s1513_s18   ;;  %s245_s19 = scalar_lea.vmem [#allocation8], %s1677_s8 }
  0x74   : > { %s242_s11 = scalar_lea.sflag [#allocation9], %s241_s4 }
  0x75   : > { %1417 = dma.done.wait (%p1912_p0), %s242_s11, 128  }
  0x76   : > { %1419 = vsyncadd (%p1912_p0), %s242_s11, 4294967168  ;;  %v1451_v0 = vmov 0.0   ;;  %vm1452_vm0 = vmmov 0   ;;  %vm320_vm1 = vcmask 64512   ;;  %v307_v1 = vld [vmem:[%s245_s19] sm:$0xf]  ;;  %v310_v8 = vlaneseq }
  0x77   : > { %1112 = vmatprep.subr.bf16.mxu0 %v1451_v0  ;;  %1114 = vmatprep.mubr.msk.bf16.mxu0 %vm1452_vm0, %v1451_v0  ;;  %v303_v2 = vld [vmem:[%s236_s16] sm:$0xf]  ;;  %v325_v3 = vsel %vm320_vm1, %v307_v1, 0  ;;  %vm292_vm2 = vcmask 7168   ;;  %v1453_v7 = vmov -inf   ;;  %v1454_v17 = vmov 0  }
  0x78   : > { %1118 = vmatprep.subr.bf16.mxu1 %v1451_v0  ;;  %1120 = vmatprep.mubr.msk.bf16.mxu1 %vm1452_vm0, %v1451_v0  ;;  %v304_v4 = vunpack.c.l.bf16 %v303_v2  ;;  %293 = vst.msk [vmem:[#allocation2] sm:$0xff] %vm292_vm2, %v1453_v7  ;;  %294 = vst.msk [vmem:[#allocation2 + $0x8] sm:$0xff] %vm292_vm2, %v1453_v7  ;;  %v1714_v9 = vshrl.u32 %v310_v8, 7  ;;  %v1716_v10 = vand.u32 127, %v310_v8  ;;  %v1084_v18 = vcombine.low %v307_v1, %v307_v1  ;;  %s1455_s18 = smov 120   ;;  %s1456_s24 = smov 112  }
  0x79   : > { %1113 = vmatpush3.bf16.xpose.msra.mxu0 %v325_v3  ;;  %295 = vst.msk [vmem:[#allocation2 + $0x10] sm:$0xff] %vm292_vm2, %v1453_v7  ;;  %296 = vst.msk [vmem:[#allocation2 + $0x18] sm:$0xff] %vm292_vm2, %v1453_v7  ;;  %1242 = vset.pattern.permute.xlu0 %v1454_v17  ;;  %s1457_s7 = smov 104   ;;  %vm403_vm4 = vcmask 1043456   ;;  %s254_s20 = scalar_lea.vmem [#allocation10], %s1677_s8  ;;  %vm301_vm5 = vcmask 261120  }
  0x7a   : > { %v305_v5 = vmul.f32 0.35355338, %v304_v4  ;;  %1130 = vmatprep.subr.bf16.mxu0 %v1451_v0  ;;  %297 = vst.msk [vmem:[#allocation3] sm:$0xff] %vm292_vm2, %v1451_v0  ;;  %298 = vst.msk [vmem:[#allocation3 + $0x8] sm:$0xff] %vm292_vm2, %v1451_v0  ;;  %vm319_vm3 = vcmp.le.s32.totalorder %v1716_v10, %v1714_v9  ;;  %1243 = vset.pattern.permute.xlu1 %v1454_v17  ;;  %v308_v23 = vld [vmem:[%s254_s20] sm:$0xf] }
  0x7b   : > { %299 = vst.msk [vmem:[#allocation3 + $0x10] sm:$0xff] %vm292_vm2, %v1451_v0  ;;  %300 = vst.msk [vmem:[#allocation3 + $0x18] sm:$0xff] %vm292_vm2, %v1451_v0  ;;  %456 = vrot.lane.b32.xlu1 %v1084_v18, %s1455_s18  ;;  %v405_v24 = vsel %vm403_vm4, %v308_v23, 0  ;;  %v1086_v2 = vcombine.low %v308_v23, %v308_v23  ;;  %s1458_s10 = smov 8   ;;  %s1459_s6 = smov 16   ;;  %vm594_vm6 = vcmask 130112  }
  0x7c   : > { %v306_v6 = vpack.c.bf16 %v305_v5, %v305_v5  ;;  %1119 = vmatpush3.bf16.msra.mxu1 %v405_v24  ;;  %302 = vst.msk [vmem:[#allocation4] sm:$0xff] %vm301_vm5, %v1451_v0  ;;  %s1460_s9 = smov 24   ;;  %vm734_vm7 = vcmask 195712   ;;  %vm874_vm8 = vcmask 261312   ;;  %s1093_s22 = sshll.u32 %s1438_s15, 6  ;;  %vm922_vm9 = vcmask 257024  }
  0x7d   : > { %1124 = vmatprep.subr.bf16.mxu1 %v1451_v0  ;;  %s286_s28 = scalar_lea.vmem [#allocation11], %s1677_s8  ;;  %s1838_s5 = scalar_lea.hbm %s1890_s3, %s1093_s22 }
  0x7e   : > { %s939_s30 = sshll.u32 %s286_s28, 4  ;;  %s925_s23 = scalar_lea.sflag [#allocation7], %s1674_s21  ;;  %s1840_s30 = int_to_ptr.vmem [resolvable:$true] %s939_s30 }
  0x7f   : > { %451 = vrot.lane.b32.xlu1 %v306_v6, %s1455_s18  ;;  %v1730_v19 = vld [vmem:[#allocation2] sm:$0xff]  ;;  %v506_v61 = vld [vmem:[#allocation2 + $0x8] sm:$0xff]  ;;  %s1360_s26 = scalar_lea.vmem %s1840_s30, 64  ;;  %p1913_p10 = scmp.ne.s32.totalorder %s1901_s25, 0 }
  0x80   : > { %1115 = vmatmul.mubr.msk.bf16.vlgmr.msra.gmra.mrb[0].mxu0 %vm320_vm1, %v306_v6  ;;  %v649_v3 = vld [vmem:[#allocation2 + $0x10] sm:$0xff]  ;;  %v1785_v7 = vld [vmem:[#allocation2 + $0x18] sm:$0xff]  ;;  %p1361_p4 = scmp.ne.s32.totalorder %s1840_s30, %s1360_s26  ;;  %s1461_s15 = smov [#allocation11]  }
  0x81   : > { %1132 = vmatprep.mubr.msk.bf16.mxu0 %vm1452_vm0, %v1451_v0  ;;  %s1364_s8 = sshll.u32 %s1461_s15, 4  ;;  %s1365_s8 = int_to_ptr.vmem [resolvable:$false] %s1364_s8 }
  0x82   : > { %p1362_p12 = pnand %p1361_p4, %p1913_p10  ;;  %s1366_s16 = scalar_lea.vmem %s1365_s8, 128 }
  0x83   : > { %599 = vrot.lane.b32.xlu1 %v1084_v18, %s1456_s24  ;;  %p1367_p8 = scmp.lt.s32.totalorder %s1840_s30, %s1365_s8  ;;  %p1368_p9 = scmp.lt.s32.totalorder %s1366_s16, %s1360_s26 }
  0x84   : > { %p1363_p1 = pneg %p1362_p12 }
  0x85   : > { %p1369_p6 = por %p1368_p9, %p1367_p8 }
  0x87   : > { %597 = vrot.lane.b32.xlu1 %v306_v6, %s1456_s24  ;;  %p1370_p13 = pnand %p1369_p6, %p1363_p1 }
  0x8b   : > { %739 = vrot.lane.b32.xlu1 %v1084_v18, %s1457_s7 }
  0x8f   : > { %737 = vrot.lane.b32.xlu1 %v306_v6, %s1457_s7 }
  0xed   : > { %v457_v28 = vpop.permute.xlu1 %456 }
  0xee   : > { %v462_v31 = vsel %vm320_vm1, %v457_v28, 0 }
  0xf1   : > { %v452_v29 = vpop.permute.xlu1 %451 }
  0xf5   : > { %v600_v33 = vpop.permute.xlu1 %599 }
  0xf6   : > { %v605_v35 = vsel %vm320_vm1, %v600_v33, 0 }
  0xf9   : > { %v598_v34 = vpop.permute.xlu1 %597 }
  0xfd   : > { %v740_v36 = vpop.permute.xlu1 %739 }
  0xfe   : > { %v745_v37 = vsel %vm320_vm1, %v740_v36, 0 }
 0x101   : > { %v738_v38 = vpop.permute.xlu1 %737 }
 0x153   : > { %v361_v11 = vpop.f32.mrb[0].mxu0 }
 0x154   : > { %v367_v12 = vsel %vm319_vm3, %v361_v11, -1e+30  ;;  %v1116_v13 = vpop.f32.mrb[1].mxu0 }
 0x155   : > { %v364_v14 = vpop.f32.mrb[2].mxu0  ;;  %v370_v15 = vsel %vm320_vm1, %v367_v12, -inf }
 0x156   : > { %371 = vmax.xlane.f32.xlu0 %v370_v15  ;;  %v1117_v16 = vpop.f32.mrb[3].mxu0 }
 0x1e3   : > { %v372_v20 = vpop.xlane.xlu0 %371 }
 0x1e4   : > { %v1733_v21 = vmax.f32 %v1730_v19, %v372_v20 }
 0x1e6   : > { %v374_v22 = vsub.f32 %v1730_v19, %v1733_v21  ;;  %449 = vst.msk [vmem:[#allocation2] sm:$0xff] %vm292_vm2, %v1733_v21  ;;  %379 = vperm.xlu0 %1242, %v1733_v21  }
 0x1e8   : > { %v375_v62 = vmul.f32 1.442695, %v374_v22 }
 0x265   : > { %v380_v25 = vpop.permute.xlu0 %379 }
 0x266   : > { %v382_v26 = vsub.f32 %v367_v12, %v380_v25  ;;  %v392_v25 = vld [vmem:[#allocation4] sm:$0xff] }
 0x268   : > { %v383_v27 = vmul.f32 1.442695, %v382_v26 }
 0x26a   : > { %1246 = vpow2.f32 %v383_v27 }
 0x26b   : > { %1248 = vpow2.f32 %v375_v62 }
 0x274   : > { %v1743_v30 = vpop.eup %1246 }
 0x275   : > { %v399_v32 = vpack.c.bf16 %v1743_v30, %v1743_v30  ;;  %v1783_v6 = vpop.eup %1248  ;;  %v386_v12 = vsel %vm320_vm1, %v1743_v30, 0.0 }
 0x277   : > { %1121 = vmatmul.mubr.msk.bf16.vlgmr.msra.gmra.mrb[0].mxu1 %vm320_vm1, %v399_v32 }
 0x278   : > { %1125 = vmatpush3.bf16.xpose.msra.mxu1 %v462_v31  ;;  %1126 = vmatprep.mubr.msk.bf16.mxu1 %vm1452_vm0, %v1451_v0 }
 0x279   : > { %1136 = vmatprep.subr.bf16.mxu1 %v1451_v0 }
 0x27f   : > { %1127 = vmatmul.mubr.msk.bf16.vlgmr.msra.gmra.mrb[4].mxu1 %vm320_vm1, %v452_v29 }
 0x280   : > { %1137 = vmatpush3.bf16.xpose.msra.mxu1 %v605_v35  ;;  %1138 = vmatprep.mubr.msk.bf16.mxu1 %vm1452_vm0, %v1451_v0 }
 0x281   : > { %1148 = vmatprep.subr.bf16.mxu1 %v1451_v0 }
 0x287   : > { %1139 = vmatmul.mubr.msk.bf16.vlgmr.msra.gmra.mrb[8].mxu1 %vm320_vm1, %v598_v34 }
 0x288   : > { %1149 = vmatpush3.bf16.xpose.msra.mxu1 %v745_v37  ;;  %1150 = vmatprep.mubr.msk.bf16.mxu1 %vm1452_vm0, %v1451_v0 }
 0x28f   : > { %1151 = vmatmul.mubr.msk.bf16.vlgmr.msra.gmra.mrb[12].mxu1 %vm320_vm1, %v738_v38 }
 0x34a   : > { %v1762_v39 = vpop.f32.mrb[0].mxu1 }
 0x34b   : > { %v1122_v40 = vpop.f32.mrb[1].mxu1 }
 0x34c   : > { %v444_v41 = vpop.f32.mrb[2].mxu1 }
 0x34d   : > { %v1123_v42 = vpop.f32.mrb[3].mxu1 }
 0x352   : > { %v498_v43 = vpop.f32.mrb[4].mxu1 }
 0x353   : > { %v504_v44 = vsel %vm319_vm3, %v498_v43, -1e+30  ;;  %v1128_v45 = vpop.f32.mrb[5].mxu1 }
 0x354   : > { %v501_v46 = vpop.f32.mrb[6].mxu1  ;;  %v509_v47 = vsel %vm320_vm1, %v504_v44, -inf }
 0x355   : > { %510 = vmax.xlane.f32.xlu1 %v509_v47  ;;  %v1129_v48 = vpop.f32.mrb[7].mxu1  ;;  %v369_v46 = vld [vmem:[#allocation3] sm:$0xff] }
 0x356   : > { %v385_v47 = vmul.f32 %v1783_v6, %v369_v46 }
 0x35a   : > { %v641_v49 = vpop.f32.mrb[8].mxu1 }
 0x35b   : > { %v647_v50 = vsel %vm319_vm3, %v641_v49, -1e+30  ;;  %v1140_v51 = vpop.f32.mrb[9].mxu1 }
 0x35c   : > { %v644_v52 = vpop.f32.mrb[10].mxu1  ;;  %v652_v53 = vsel %vm320_vm1, %v647_v50, -inf }
 0x35d   : > { %653 = vmax.xlane.f32.xlu0 %v652_v53  ;;  %v1141_v54 = vpop.f32.mrb[11].mxu1 }
 0x35e   : > { %v651_v54 = vld [vmem:[#allocation3 + $0x10] sm:$0xff] }
 0x362   : > { %v781_v55 = vpop.f32.mrb[12].mxu1 }
 0x363   : > { %v1775_v56 = vsel %vm319_vm3, %v781_v55, -1e+30  ;;  %v1152_v57 = vpop.f32.mrb[13].mxu1 }
 0x364   : > { %v784_v58 = vpop.f32.mrb[14].mxu1  ;;  %v792_v59 = vsel %vm320_vm1, %v1775_v56, -inf }
 0x365   : > { %793 = vmax.xlane.f32.xlu1 %v792_v59  ;;  %v1153_v60 = vpop.f32.mrb[15].mxu1  ;;  %v791_v59 = vld [vmem:[#allocation3 + $0x18] sm:$0xff] }
 0x3e2   : > { %v511_v63 = vpop.xlane.xlu1 %510 }
 0x3e3   : > { %v512_v1 = vmax.f32 %v506_v61, %v511_v63 }
 0x3e5   : > { %596 = vst.msk [vmem:[#allocation2 + $0x8] sm:$0xff] %vm292_vm2, %v512_v1  ;;  %518 = vperm.xlu1 %1243, %v512_v1   ;;  %v513_v11 = vsub.f32 %v506_v61, %v512_v1 }
 0x3e7   : > { %v514_v13 = vmul.f32 1.442695, %v513_v11 }
 0x3e9   : > { %541 = vrot.lane.b32.xlu1 %v1086_v2, %s1455_s18  ;;  %1250 = vpow2.f32 %v514_v13 }
 0x3ea   : > { %v654_v4 = vpop.xlane.xlu0 %653 }
 0x3eb   : > { %v655_v5 = vmax.f32 %v649_v3, %v654_v4 }
 0x3ed   : > { %736 = vst.msk [vmem:[#allocation2 + $0x10] sm:$0xff] %vm292_vm2, %v655_v5  ;;  %661 = vperm.xlu0 %1242, %v655_v5   ;;  %v656_v14 = vsub.f32 %v649_v3, %v655_v5 }
 0x3ef   : > { %v657_v15 = vmul.f32 1.442695, %v656_v14 }
 0x3f1   : > { %395 = vperm.xlu0 %1242, %v1783_v6   ;;  %1252 = vpow2.f32 %v657_v15 }
 0x3f2   : > { %v794_v8 = vpop.xlane.xlu1 %793 }
 0x3f3   : > { %v1789_v9 = vmax.f32 %v1785_v7, %v794_v8  ;;  %v1251_v16 = vpop.eup %1250 }
 0x3f5   : > { %v796_v10 = vsub.f32 %v1785_v7, %v1789_v9  ;;  %876 = vst.msk [vmem:[#allocation2 + $0x18] sm:$0xff] %vm292_vm2, %v1789_v9  ;;  %801 = vperm.xlu1 %1243, %v1789_v9  }
 0x3f7   : > { %v797_v51 = vmul.f32 1.442695, %v796_v10 }
 0x3f9   : > { %681 = vrot.lane.b32.xlu1 %v1086_v2, %s1456_s24 }
 0x3fb   : > { %v1253_v17 = vpop.eup %1252 }
 0x3fc   : > { %v667_v55 = vmul.f32 %v1253_v17, %v651_v54 }
 0x3fd   : > { %821 = vrot.lane.b32.xlu1 %v1086_v2, %s1457_s7 }
 0x421   : > { %387 = vadd.xlane.f32.xlu1 %v386_v12 }
 0x432   : > { %533 = vperm.xlu1 %1243, %v1251_v16  }
 0x436   : > { %676 = vperm.xlu1 %1243, %v1253_v17  }
 0x464   : > { %v519_v18 = vpop.permute.xlu1 %518 }
 0x465   : > { %v521_v19 = vsub.f32 %v504_v44, %v519_v18 }
 0x467   : > { %v522_v20 = vmul.f32 1.442695, %v521_v19 }
 0x468   : > { %v542_v21 = vpop.permute.xlu1 %541 }
 0x469   : > { %1254 = vpow2.f32 %v522_v20  ;;  %v547_v22 = vsel %vm403_vm4, %v542_v21, 0 }
 0x46a   : > { %1131 = vmatpush3.bf16.msra.mxu0 %v547_v22 }
 0x46b   : > { %1142 = vmatprep.subr.bf16.mxu0 %v1451_v0 }
 0x46c   : > { %v662_v23 = vpop.permute.xlu0 %661 }
 0x46d   : > { %v664_v24 = vsub.f32 %v647_v50, %v662_v23  ;;  %v508_v50 = vld [vmem:[#allocation3 + $0x8] sm:$0xff] }
 0x46f   : > { %v665_v26 = vmul.f32 1.442695, %v664_v24 }
 0x470   : > { %v396_v27 = vpop.permute.xlu0 %395 }
 0x471   : > { %1256 = vpow2.f32 %v665_v26  ;;  %v398_v28 = vmul.f32 %v396_v27, %v392_v25 }
 0x473   : > { %v1255_v29 = vpop.eup %1254  ;;  %v447_v30 = vadd.f32 %v1762_v39, %v398_v28 }
 0x474   : > { %v802_v31 = vpop.permute.xlu1 %801  ;;  %v525_v32 = vsel %vm320_vm1, %v1255_v29, 0.0  ;;  %v537_v33 = vpack.c.bf16 %v1255_v29, %v1255_v29 }
 0x475   : > { %448 = vst.msk [vmem:[#allocation4] sm:$0xff] %vm320_vm1, %v447_v30  ;;  %v804_v34 = vsub.f32 %v1775_v56, %v802_v31  ;;  %526 = vadd.xlane.f32.xlu0 %v525_v32 }
 0x476   : > { %1133 = vmatmul.mubr.msk.bf16.vlgmr.msra.gmra.mrb[4].mxu0 %vm320_vm1, %v537_v33 }
 0x477   : > { %v805_v35 = vmul.f32 1.442695, %v804_v34  ;;  %1144 = vmatprep.mubr.msk.bf16.mxu0 %vm1452_vm0, %v1451_v0 }
 0x478   : > { %v682_v36 = vpop.permute.xlu1 %681 }
 0x479   : > { %1258 = vpow2.f32 %v805_v35  ;;  %v687_v37 = vsel %vm403_vm4, %v682_v36, 0 }
 0x47a   : > { %1143 = vmatpush3.bf16.msra.mxu0 %v687_v37  ;;  %1260 = vpow2.f32 %v797_v51 }
 0x47b   : > { %v1257_v38 = vpop.eup %1256  ;;  %1154 = vmatprep.subr.bf16.mxu0 %v1451_v0 }
 0x47c   : > { %v668_v39 = vsel %vm320_vm1, %v1257_v38, 0.0  ;;  %v680_v40 = vpack.c.bf16 %v1257_v38, %v1257_v38  ;;  %v822_v41 = vpop.permute.xlu1 %821  ;;  %v530_v21 = vld [vmem:[#allocation4] sm:$0xff] }
 0x47d   : > { %669 = vadd.xlane.f32.xlu0 %v668_v39  ;;  %v827_v42 = vsel %vm403_vm4, %v822_v41, 0 }
 0x47e   : > { %1145 = vmatmul.mubr.msk.bf16.vlgmr.msra.gmra.mrb[8].mxu0 %vm320_vm1, %v680_v40 }
 0x47f   : > { %1155 = vmatpush3.bf16.msra.mxu0 %v827_v42  ;;  %1156 = vmatprep.mubr.msk.bf16.mxu0 %vm1452_vm0, %v1451_v0  ;;  %v524_v0 = vmul.f32 %v1251_v16, %v508_v50 }
 0x483   : > { %v1259_v43 = vpop.eup %1258 }
 0x484   : > { %v808_v44 = vsel %vm320_vm1, %v1259_v43, 0.0  ;;  %v820_v45 = vpack.c.bf16 %v1259_v43, %v1259_v43  ;;  %v1261_v58 = vpop.eup %1260 }
 0x485   : > { %809 = vadd.xlane.f32.xlu0 %v808_v44  ;;  %v807_v60 = vmul.f32 %v1261_v58, %v791_v59 }
 0x486   : > { %1157 = vmatmul.mubr.msk.bf16.vlgmr.msra.gmra.mrb[12].mxu0 %vm320_vm1, %v820_v45 }
 0x4ae   : > { %v388_v48 = vpop.xlane.xlu1 %387 }
 0x4af   : > { %v389_v49 = vadd.f32 %v388_v48, %v385_v47 }
 0x4b1   : > { %391 = vst.msk [vmem:[#allocation3] sm:$0xff] %vm292_vm2, %v389_v49 }
 0x4b2   : > { %v534_v20 = vpop.permute.xlu1 %533 }
 0x4b3   : > { %v536_v22 = vmul.f32 %v534_v20, %v530_v21 }
 0x4b6   : > { %v677_v25 = vpop.permute.xlu1 %676 }
 0x4b8   : > { %v881_v63 = vld [vmem:[#allocation3] sm:$0xff] }
 0x4b9   : > { %1262 = vrcp.f32 %v881_v63 }
 0x4c3   : > { %v1263_v6 = vpop.eup %1262 }
 0x502   : > { %v527_v52 = vpop.xlane.xlu0 %526 }
 0x503   : > { %v528_v53 = vadd.f32 %v527_v52, %v524_v0 }
 0x505   : > { %529 = vst.msk [vmem:[#allocation3 + $0x8] sm:$0xff] %vm292_vm2, %v528_v53 }
 0x50a   : > { %v670_v56 = vpop.xlane.xlu0 %669 }
 0x50b   : > { %v671_v57 = vadd.f32 %v670_v56, %v667_v55 }
 0x50c   : > { %v891_v7 = vld [vmem:[#allocation3 + $0x8] sm:$0xff] }
 0x50d   : > { %672 = vst.msk [vmem:[#allocation3 + $0x10] sm:$0xff] %vm292_vm2, %v671_v57 }
 0x512   : > { %v810_v61 = vpop.xlane.xlu0 %809 }
 0x513   : > { %v811_v62 = vadd.f32 %v810_v61, %v807_v60 }
 0x514   : > { %v901_v1 = vld [vmem:[#allocation3 + $0x10] sm:$0xff] }
 0x515   : > { %812 = vst.msk [vmem:[#allocation3 + $0x18] sm:$0xff] %vm292_vm2, %v811_v62  ;;  %1264 = vrcp.f32 %v901_v1 }
 0x516   : > { %1266 = vrcp.f32 %v891_v7 }
 0x51c   : > { %v911_v13 = vld [vmem:[#allocation3 + $0x18] sm:$0xff] }
 0x51d   : > { %1268 = vrcp.f32 %v911_v13 }
 0x51f   : > { %v1265_v8 = vpop.eup %1264 }
 0x520   : > { %v1267_v18 = vpop.eup %1266 }
 0x527   : > { %v1269_v19 = vpop.eup %1268 }
 0x549   : > { %v583_v2 = vpop.f32.mrb[4].mxu0 }
 0x54a   : > { %v1134_v3 = vpop.f32.mrb[5].mxu0  ;;  %590 = vrot.lane.b32.xlu0 %v583_v2, %s1458_s10 }
 0x54b   : > { %v586_v4 = vpop.f32.mrb[6].mxu0 }
 0x54c   : > { %v1135_v5 = vpop.f32.mrb[7].mxu0 }
 0x54e   : > { %885 = vperm.xlu0 %1242, %v1263_v6  }
 0x551   : > { %v723_v9 = vpop.f32.mrb[8].mxu0 }
 0x552   : > { %v1146_v10 = vpop.f32.mrb[9].mxu0  ;;  %730 = vrot.lane.b32.xlu1 %v723_v9, %s1459_s6  ;;  %905 = vperm.xlu0 %1242, %v1265_v8  }
 0x553   : > { %v726_v11 = vpop.f32.mrb[10].mxu0 }
 0x554   : > { %v1147_v12 = vpop.f32.mrb[11].mxu0 }
 0x556   : > { %816 = vperm.xlu1 %1243, %v1261_v58  }
 0x559   : > { %v863_v14 = vpop.f32.mrb[12].mxu0 }
 0x55a   : > { %v1158_v15 = vpop.f32.mrb[13].mxu0  ;;  %870 = vrot.lane.b32.xlu1 %v863_v14, %s1460_s9 }
 0x55b   : > { %v866_v16 = vpop.f32.mrb[14].mxu0 }
 0x55c   : > { %v1159_v17 = vpop.f32.mrb[15].mxu0 }
 0x55e   : > { %895 = vperm.xlu1 %1243, %v1267_v18  }
 0x562   : > { %915 = vperm.xlu1 %1243, %v1269_v19  }
 0x5bc   : > { %v591_v23 = vpop.permute.xlu0 %590 }
 0x5bd   : > { %v593_v24 = vadd.f32 %v591_v23, %v536_v22 }
 0x5bf   : > { %595 = vst.msk [vmem:[#allocation4] sm:$0xff] %vm594_vm6, %v593_v24 }
 0x5c4   : > { %v731_v28 = vpop.permute.xlu1 %730 }
 0x5c6   : > { %v673_v26 = vld [vmem:[#allocation4] sm:$0xff] }
 0x5c7   : > { %v679_v27 = vmul.f32 %v677_v25, %v673_v26 }
 0x5c9   : > { %v733_v29 = vadd.f32 %v731_v28, %v679_v27 }
 0x5cb   : > { %735 = vst.msk [vmem:[#allocation4] sm:$0xff] %vm734_vm7, %v733_v29 }
 0x5cd   : > { %v886_v35 = vpop.permute.xlu0 %885 }
 0x5d1   : > { %v906_v41 = vpop.permute.xlu0 %905 }
 0x5d2   : > { %v813_v31 = vld [vmem:[#allocation4] sm:$0xff] }
 0x5d5   : > { %v817_v30 = vpop.permute.xlu1 %816 }
 0x5d6   : > { %v819_v32 = vmul.f32 %v817_v30, %v813_v31 }
 0x5d9   : > { %v871_v33 = vpop.permute.xlu1 %870 }
 0x5da   : > { %v873_v34 = vadd.f32 %v871_v33, %v819_v32 }
 0x5dc   : > { %875 = vst.msk [vmem:[#allocation4] sm:$0xff] %vm874_vm8, %v873_v34 }
 0x5dd   : > { %v896_v38 = vpop.permute.xlu1 %895 }
 0x5e1   : > { %v916_v44 = vpop.permute.xlu1 %915 }
 0x5e3   : > { %v880_v36 = vld [vmem:[#allocation4] sm:$0xff] }
 0x5e4   : > { %v888_v37 = vmul.f32 %v886_v35, %v880_v36 }
 0x5e6   : > { %889 = vst.msk [vmem:[#allocation4] sm:$0xff] %vm320_vm1, %v888_v37 }
 0x5ed   : > { %v890_v39 = vld [vmem:[#allocation4] sm:$0xff] }
 0x5ee   : > { %v898_v40 = vmul.f32 %v896_v38, %v890_v39 }
 0x5f0   : > { %899 = vst.msk [vmem:[#allocation4] sm:$0xff] %vm594_vm6, %v898_v40 }
 0x5f7   : > { %v900_v42 = vld [vmem:[#allocation4] sm:$0xff] }
 0x5f8   : > { %v908_v43 = vmul.f32 %v906_v41, %v900_v42 }
 0x5fa   : > { %909 = vst.msk [vmem:[#allocation4] sm:$0xff] %vm734_vm7, %v908_v43 }
 0x601   : > { %v910_v45 = vld [vmem:[#allocation4] sm:$0xff] }
 0x602   : > { %v918_v46 = vmul.f32 %v916_v44, %v910_v45 }
 0x604   : > { %919 = vst.msk [vmem:[#allocation4] sm:$0xff] %vm874_vm8, %v918_v46 }
 0x60b   : > { %v920_v47 = vld [vmem:[#allocation4] sm:$0xff] }
 0x60c   : > { %v921_v48 = vpack.c.bf16 %v920_v47, %v920_v47 }
 0x60e   : > { %923 = vst.msk [vmem:[%s286_s28] sm:$0xf] %vm922_vm9, %v921_v48 }
 0x60f   : > { %1373 = shalt.err (!%p1370_p13)
}
 0x610   : > { %s1374_s21 = scalar_lea.hbm %s1838_s5, 64  ;;  %s1378_s19 = scalar_lea.hbm %s1890_s3, 128 }
 0x611   : > { %p1375_p11 = scmp.ne.s32.totalorder %s1838_s5, %s1374_s21  ;;  %p1379_p7 = scmp.lt.u32.totalorder %s1838_s5, %s1890_s3 }
 0x612   : > { %p1380_p3 = scmp.lt.u32.totalorder %s1378_s19, %s1374_s21  ;;  %p1382_p4 = scmp.lt.u32.totalorder %s1374_s21, %s1838_s5 }
 0x613   : > { %p1376_p2 = pnand %p1375_p11, %p1913_p10 }
 0x614   : > { %p1381_p0 = por %p1380_p3, %p1379_p7 }
 0x615   : > { %p1377_p5 = pneg %p1376_p2 }
 0x616   : > { %p1383_p12 = por %p1382_p4, %p1381_p0 }
 0x618   : > { %p1384_p1 = pnand %p1383_p12, %p1377_p5 }
 0x61a   : > { %1387 = shalt.err (!%p1384_p1)
}
 0x61b   : > { %1166 = dma.vmem_to_hbm [thread:$0]  (%p1913_p10), %s1840_s30, 64, %s1838_s5, %s925_s23  }
 0x61c PF: > { %s951_s7 = sand.u32 1, %s1426_s12   ;;  %p1914_p8 = scmp.ne.s32.totalorder %s1903_s27, 0 }
 0x61d   : > { %p1915_p9 = scmp.ge.s32.totalorder %s1446_s17, 2  ;;  %s952_s20 = scalar_lea.sflag [#allocation7], %s951_s7 }
 0x61f   : > { %p1179_p6 = pnand %p1915_p9, %p1914_p8 }
 0x621   : > { %1421 = dma.done.wait (!%p1179_p6), %s952_s20, 64  }
 0x622   : > { %1423 = vsyncadd (!%p1179_p6), %s952_s20, 4294967232  ;;  %s22_s17 = sadd.s32 1, %s1446_s17   ;;  %s1916_s25 = sld [smem:[#allocation17_spill]] }
 0x623   : > { %p19_p13 = scmp.ge.s32.totalorder %s22_s17, 4   ;;  %s1917_s15 = sld [smem:[#allocation15_spill]] }
 0x624   : > { %s1918_s16 = sld [smem:[#allocation16_spill]]  ;;  %s1919_s12 = smov %s1430_s13 }
 0x625   : > { %s1920_s13 = smov %s1434_s14  ;;  %21 = sbr.rel (!%p19_p13) target bundleno = 10 (0xa), region = 115 }
 0x628   : > { %s1921_s14 = smov %s1916_s25 }
 0x62c   :  { %957 = vsyncpa [#allocation6], 1 }
 0x62d   :  { %959 = vsyncpa [#allocation6 + $0x1], 1 }
 0x62e   :  { %960 = vsyncpa [#allocation9], 1 }
 0x62f   :  { %962 = vsyncpa [#allocation9 + $0x1], 1 }
 0x630   :  { %963 = vsyncpa [#allocation7], 1 }
 0x631   :  { %965 = vsyncpa [#allocation7 + $0x1], 1 }

</bundles_post_ra>
